<compile_context>
chip_gen: v5e
topology: v5e:2x2
jax: 0.10.0
libtpu: 0.0.40
codegen_flags: <defaults>
</compile_context>

<pallas_src>
import functools
import math

import jax
import jax.numpy as jnp
from jax.experimental import pallas as pl
from jax.experimental.pallas import tpu as pltpu

POSITION_EMBED_DIM = 60


# ----------------------------------------------------------------------------
# Pallas kernel
# ----------------------------------------------------------------------------
def _transformer_block_kernel(
    fq_ref, fk_ref, g_ref,
    w1rep_ref, w1blk_ref, b1t_ref,
    eblk_ref, wd1s_ref, wd1c_ref, bd1t_ref, wd2_ref, bd2t_ref,
    wg1_ref, bg1t_ref, wg2_ref, bg2t_ref,
    gsum_ref, wf2t_ref, bf2_ref,
    res_ref, attn_ref,
    *, d_model, num_k, compute_dtype):
  """Fused fc1 / sincos-embed / fc_delta / fc_gamma / softmax / agg / fc2."""
  D, K = d_model, num_k
  KD = K * D

  def mm(a, w_ref):
    # Weights are pre-cast to compute_dtype in the wrapper; accumulate in f32.
    return jnp.dot(a.astype(compute_dtype), w_ref[...],
                   preferred_element_type=jnp.float32)

  fq = fq_ref[...]                      # (tn, P)    raw query features
  fk = fk_ref[...]                      # (tn, K*P)  raw gathered neighbours
  g = g_ref[...]                        # (tn, K*3)  xyz - knn_xyz

  # fc1: query rows replicated over the K neighbour lane-groups, and fc1 on the
  # gathered raw neighbour features (the gather commutes with the affine fc1).
  q_t = mm(fq, w1rep_ref) + b1t_ref[...]                  # (tn, K*D)
  kv = mm(fk, w1blk_ref) + b1t_ref[...]                   # (tn, K*D)

  # Positional encoding computed in-kernel: per-axis angles = delta * omega,
  # sin/cos on the EUP, then the fc_delta MLP with block-diagonal weights.
  ang = jnp.dot(g, eblk_ref[...], preferred_element_type=jnp.float32)
  pos = jnp.maximum(mm(jnp.sin(ang), wd1s_ref) + mm(jnp.cos(ang), wd1c_ref)
                    + bd1t_ref[...], 0.0)
  pos = mm(pos, wd2_ref) + bd2t_ref[...]                  # (tn, K*D)

  # fc_gamma MLP on (q - k + pos_enc).
  gin = q_t - kv + pos
  h = jnp.maximum(mm(gin, wg1_ref) + bg1t_ref[...], 0.0)
  logits = mm(h, wg2_ref) + bg2t_ref[...]                 # (tn, K*D)

  # Softmax over the K neighbour groups: lanes {d, d+D, ..., d+(K-1)D} form a
  # group; reductions are XLU lane-roll trees (direction irrelevant — the
  # orbit of stride-D rolls covers the whole group).
  scaled = logits * (1.0 / math.sqrt(D))

  def reduce_k(x, op):
    if (K & (K - 1)) == 0:              # power-of-two K: log2(K) roll steps
      sh = D
      while sh < KD:
        x = op(x, pltpu.roll(x, shift=sh, axis=1))
        sh *= 2
      return x
    acc, y = x, x                       # general K: K-1 roll steps
    for _ in range(K - 1):
      y = pltpu.roll(y, shift=D, axis=1)
      acc = op(acc, y)
    return acc

  m = reduce_k(scaled, jnp.maximum)
  e = jnp.exp(scaled - m)
  s = reduce_k(e, jnp.add)
  p = e * pl.reciprocal(s, approx=True)                   # (tn, K*D)
  attn_ref[...] = p.astype(attn_ref.dtype)                # lane-dense store

  # res = fc2(sum_K attn * (v + pos)) + fc1(features)
  agg = mm(p * (kv + pos), gsum_ref)                      # (tn, D)
  out = mm(agg, wf2t_ref) + bf2_ref[...] + q_t[:, :D]
  res_ref[...] = out.astype(res_ref.dtype)


# ----------------------------------------------------------------------------
# Positional-embedding helper (shared by wrapper weight-prep and reference)
# ----------------------------------------------------------------------------
def _sincos_omega(half):
  return 1.0 / (10000.0 ** (jnp.arange(half, dtype=jnp.float32) / half))


def get_3d_sincos_pos_embed_from_point(embed_dim, pts):
  # TODO(synk): this helper is not defined in the provided module; standard
  # per-axis sin/cos embedding (embed_dim//3 dims per coordinate, half sin /
  # half cos) is assumed.
  per_axis = embed_dim // 3
  half = per_axis // 2
  omega = _sincos_omega(half)

  def emb1d(p):
    out = p[..., None] * omega
    return jnp.concatenate([jnp.sin(out), jnp.cos(out)], axis=-1)

  return jnp.concatenate([emb1d(pts[..., i]) for i in range(3)], axis=-1)


def _index_points(points, idx):
  # points: (B, N, C), idx: (B, M, K) int -> (B, M, K, C)
  return jax.vmap(lambda p, i: p[i])(points, idx)


# ----------------------------------------------------------------------------
# Wrapper (knn gather stays in plain JAX; everything else fused in the kernel)
# ----------------------------------------------------------------------------
def transformer_block_pallas(features, xyz, knn_idx, knn_xyz, params, *,
                             tn=256, use_bf16_matmul=False, attn_dtype=None):
  B, N, P = features.shape
  K = knn_idx.shape[-1]
  D = params["w1"].shape[0]
  PE = POSITION_EMBED_DIM
  half = PE // 6                      # frequencies per (axis, sin/cos) block
  KD = K * D
  compute_dtype = jnp.bfloat16 if use_bf16_matmul else jnp.float32
  if attn_dtype is None:
    attn_dtype = features.dtype

  # Data-dependent knn gather of the small raw features + coordinate deltas in
  # the wrapper; the sincos embedding itself is computed inside the kernel.
  feat_knn = _index_points(features, knn_idx)              # (B, N, K, P)
  g_xyz = xyz[:, :, None, :] - knn_xyz                     # (B, N, K, 3)

  BN = B * N
  fq = features.reshape(BN, P).astype(jnp.float32)
  fk = feat_knn.reshape(BN, K * P).astype(jnp.float32)     # lane-dense
  g = g_xyz.reshape(BN, K * 3).astype(jnp.float32)         # lane-dense

  # Row tile: multiple of 8; pad BN up and slice the outputs afterwards
  # (instead of the old tn = BN fallback that disabled tiling/pipelining).
  tn = max(8, (min(tn, max(BN, 8)) // 8) * 8)
  bn_pad = pl.cdiv(BN, tn) * tn
  if bn_pad != BN:
    pad = ((0, bn_pad - BN), (0, 0))
    fq, fk, g = jnp.pad(fq, pad), jnp.pad(fk, pad), jnp.pad(g, pad)

  # --- weight preparation: block-diagonal / replicated lane-dense layouts ---
  f32 = jnp.float32
  eye_k = jnp.eye(K, dtype=f32)
  blockdiag = lambda w: jnp.kron(eye_k, w.astype(f32))

  w1t = params["w1"].T.astype(f32)                         # (P, D)
  wd1t = params["wd1"].T.astype(f32)                       # (PE, D)
  wd2t = params["wd2"].T.astype(f32)
  wg1t = params["wg1"].T.astype(f32)
  wg2t = params["wg2"].T.astype(f32)
  wf2t = params["wf2"].T.astype(f32)

  # Split fc_delta layer-1 rows into sin / cos halves matching the in-kernel
  # [x*omega, y*omega, z*omega] angle layout.
  ax = jnp.arange(3)[:, None] * (2 * half)
  fr = jnp.arange(half)[None, :]
  wd1s = wd1t[(ax + fr).reshape(-1)]                       # (3*half, D)
  wd1c = wd1t[(ax + half + fr).reshape(-1)]                # (3*half, D)

  omega = _sincos_omega(half)
  eblk = jnp.kron(jnp.eye(3 * K, dtype=f32), omega[None, :])  # (3K, 3K*half)

  cd = compute_dtype
  w1rep = jnp.tile(w1t, (1, K)).astype(cd)                 # (P, KD)
  w1blk = blockdiag(w1t).astype(cd)                        # (K*P, KD)
  wd1sb = blockdiag(wd1s).astype(cd)                       # (3K*half, KD)
  wd1cb = blockdiag(wd1c).astype(cd)
  wd2b = blockdiag(wd2t).astype(cd)                        # (KD, KD)
  wg1b = blockdiag(wg1t).astype(cd)
  wg2b = blockdiag(wg2t).astype(cd)
  gsum = jnp.tile(jnp.eye(D, dtype=f32), (K, 1)).astype(cd)   # (KD, D)
  wf2tc = wf2t.astype(cd)

  tile_b = lambda b: jnp.tile(b.reshape(1, D).astype(f32), (1, K))   # (1, KD)
  b1t = tile_b(params["b1"])
  bd1t, bd2t = tile_b(params["bd1"]), tile_b(params["bd2"])
  bg1t, bg2t = tile_b(params["bg1"]), tile_b(params["bg2"])
  bf2 = params["bf2"].reshape(1, D).astype(f32)

  weights = [w1rep, w1blk, b1t, eblk, wd1sb, wd1cb, bd1t, wd2b, bd2t,
             wg1b, bg1t, wg2b, bg2t, gsum, wf2tc, bf2]

  kernel = functools.partial(_transformer_block_kernel, d_model=D, num_k=K,
                             compute_dtype=compute_dtype)

  row2 = lambda i: (i, 0)
  # Weight/bias operands are revisited constant blocks (index_map == (0, 0));
  # at production d_model consider pipeline_mode=pl.Buffered(1) on them.
  in_specs = ([pl.BlockSpec((tn, P), row2),
               pl.BlockSpec((tn, K * P), row2),
               pl.BlockSpec((tn, 3 * K), row2)]
              + [pl.BlockSpec(tuple(w.shape), lambda i: (0, 0))
                 for w in weights])
  out_specs = [pl.BlockSpec((tn, D), row2),
               pl.BlockSpec((tn, KD), row2)]

  itemsize = lambda dt: jnp.dtype(dt).itemsize
  cost = pl.CostEstimate(
      flops=int(2 * bn_pad * (P * D + D * D
                              + K * (P * D + PE * D + 3 * D * D + 2 * D))),
      transcendentals=int(bn_pad * K * (PE + D)),
      bytes_accessed=int(4 * bn_pad * (P + K * P + 3 * K)
                         + bn_pad * D * itemsize(features.dtype)
                         + bn_pad * KD * itemsize(attn_dtype)
                         + sum(int(w.size) * itemsize(w.dtype)
                               for w in weights)))

  res, attn = pl.pallas_call(
      kernel,
      out_shape=(jax.ShapeDtypeStruct((bn_pad, D), features.dtype),
                 jax.ShapeDtypeStruct((bn_pad, KD), attn_dtype)),
      grid_spec=pltpu.PrefetchScalarGridSpec(
          num_scalar_prefetch=0,
          grid=(bn_pad // tn,),
          in_specs=in_specs,
          out_specs=out_specs),
      compiler_params=pltpu.CompilerParams(
          dimension_semantics=("parallel",)),
      cost_estimate=cost,
  )(fq, fk, g, *weights)

  res = res[:BN].reshape(B, N, D)
  attn = attn[:BN].reshape(B, N, K, D)
  return res, attn


# ----------------------------------------------------------------------------
# Pure-JAX reference (mirrors the PyTorch forward)
# ----------------------------------------------------------------------------
def transformer_block_ref(features, xyz, knn_idx, knn_xyz, params):
  x = features @ params["w1"].T + params["b1"]             # (B, N, D)
  k = _index_points(x, knn_idx)                            # (B, N, K, D)
  v = k
  g_xyz = xyz[:, :, None, :] - knn_xyz
  pe = get_3d_sincos_pos_embed_from_point(POSITION_EMBED_DIM, g_xyz)
  pos = (jnp.maximum(pe @ params["wd1"].T + params["bd1"], 0.0)
         @ params["wd2"].T + params["bd2"])
  gin = x[:, :, None, :] - k + pos
  logits = (jnp.maximum(gin @ params["wg1"].T + params["bg1"], 0.0)
            @ params["wg2"].T + params["bg2"])
  attn = jax.nn.softmax(logits / math.sqrt(x.shape[-1]), axis=-2)
  res = jnp.einsum("bmnf,bmnf->bmf", attn, v + pos)
  res = res @ params["wf2"].T + params["bf2"] + x
  return res, attn


if __name__ == "__main__":
  B, N, K = 2, 16, 8
  d_points, d_model = 4, 32
  PE = POSITION_EMBED_DIM

  key = jax.random.PRNGKey(0)
  keys = jax.random.split(key, 16)
  features = jax.random.normal(keys[0], (B, N, d_points), jnp.float32)
  xyz = jax.random.normal(keys[1], (B, N, 3), jnp.float32)
  knn_idx = jax.random.randint(keys[2], (B, N, K), 0, N)
  knn_xyz = _index_points(xyz, knn_idx)

  def linear_init(kw, kb, out_dim, in_dim):
    bound = 1.0 / math.sqrt(in_dim)
    W = jax.random.uniform(kw, (out_dim, in_dim), jnp.float32, -bound, bound)
    b = jax.random.uniform(kb, (out_dim,), jnp.float32, -bound, bound)
    return W, b

  params = {}
  params["w1"], params["b1"] = linear_init(keys[3], keys[4], d_model, d_points)
  params["wd1"], params["bd1"] = linear_init(keys[5], keys[6], d_model, PE)
  params["wd2"], params["bd2"] = linear_init(keys[7], keys[8], d_model, d_model)
  params["wg1"], params["bg1"] = linear_init(keys[9], keys[10], d_model, d_model)
  params["wg2"], params["bg2"] = linear_init(keys[11], keys[12], d_model, d_model)
  params["wf2"], params["bf2"] = linear_init(keys[13], keys[14], d_model, d_model)
  # NOTE: w_qs / w_ks / w_vs exist in the module but are unused in forward().

  res_ref, attn_ref = transformer_block_ref(features, xyz, knn_idx, knn_xyz,
                                            params)

  # f32 MXU-operand path (default), 2 grid steps.
  res, attn = transformer_block_pallas(features, xyz, knn_idx, knn_xyz, params,
                                       tn=16)
  res = jax.block_until_ready(res)
  attn = jax.block_until_ready(attn)
  assert res.shape == (B, N, d_model), res.shape
  assert attn.shape == (B, N, K, d_model), attn.shape
  err_r = float(jnp.max(jnp.abs(res - res_ref)))
  err_a = float(jnp.max(jnp.abs(attn - attn_ref)))
  # Tolerance accounts for the EUP approximate reciprocal in the softmax.
  assert jnp.allclose(res, res_ref, atol=2e-3, rtol=2e-3), err_r
  assert jnp.allclose(attn, attn_ref, atol=2e-3, rtol=2e-3), err_a

  # bf16 MXU-operand path (v6e/v7x default recommendation) + non-divisor tile
  # size, which exercises the row-padding path.  Loose sanity bound only.
  res_bf, attn_bf = transformer_block_pallas(features, xyz, knn_idx, knn_xyz,
                                             params, tn=24,
                                             use_bf16_matmul=True)
  res_bf = jax.block_until_ready(res_bf)
  assert bool(jnp.all(jnp.isfinite(res_bf)))
  assert bool(jnp.all(jnp.isfinite(attn_bf)))
  assert float(jnp.max(jnp.abs(res_bf - res_ref))) < 0.5
  assert float(jnp.max(jnp.abs(attn_bf - attn_ref))) < 0.25

  print("KERNEL_OK")
</pallas_src>

<mosaic_0001>
module attributes {stable_mosaic.version = 11 : i64} {
  func.func @_transformer_block_kernel(%arg0: i32, %arg1: memref<16x4xf32, #tpu.memory_space<vmem>>, %arg2: memref<16x32xf32, #tpu.memory_space<vmem>>, %arg3: memref<16x24xf32, #tpu.memory_space<vmem>>, %arg4: memref<4x256xf32, #tpu.memory_space<vmem>>, %arg5: memref<32x256xf32, #tpu.memory_space<vmem>>, %arg6: memref<1x256xf32, #tpu.memory_space<vmem>>, %arg7: memref<24x240xf32, #tpu.memory_space<vmem>>, %arg8: memref<240x256xf32, #tpu.memory_space<vmem>>, %arg9: memref<240x256xf32, #tpu.memory_space<vmem>>, %arg10: memref<1x256xf32, #tpu.memory_space<vmem>>, %arg11: memref<256x256xf32, #tpu.memory_space<vmem>>, %arg12: memref<1x256xf32, #tpu.memory_space<vmem>>, %arg13: memref<256x256xf32, #tpu.memory_space<vmem>>, %arg14: memref<1x256xf32, #tpu.memory_space<vmem>>, %arg15: memref<256x256xf32, #tpu.memory_space<vmem>>, %arg16: memref<1x256xf32, #tpu.memory_space<vmem>>, %arg17: memref<256x32xf32, #tpu.memory_space<vmem>>, %arg18: memref<32x32xf32, #tpu.memory_space<vmem>>, %arg19: memref<1x32xf32, #tpu.memory_space<vmem>>, %arg20: memref<16x32xf32, #tpu.memory_space<vmem>>, %arg21: memref<16x256xf32, #tpu.memory_space<vmem>>) attributes {dimension_semantics = [#tpu.dimension_semantics<parallel>], iteration_bounds = array<i64: 2>, scalar_prefetch = 0 : i64, scratch_operands = 0 : i64, tpu.core_type = #tpu.core_type<tc>, window_params = [{transform_indices = @transform_0, window_bounds = array<i64: 16, 4>}, {transform_indices = @transform_1, window_bounds = array<i64: 16, 32>}, {transform_indices = @transform_2, window_bounds = array<i64: 16, 24>}, {pipeline_mode = #tpu.pipeline_mode<synchronous>, transform_indices = @transform_3, window_bounds = array<i64: 4, 256>}, {pipeline_mode = #tpu.pipeline_mode<synchronous>, transform_indices = @transform_4, window_bounds = array<i64: 32, 256>}, {pipeline_mode = #tpu.pipeline_mode<synchronous>, transform_indices = @transform_5, window_bounds = array<i64: 1, 256>}, {pipeline_mode = #tpu.pipeline_mode<synchronous>, transform_indices = @transform_6, window_bounds = array<i64: 24, 240>}, {pipeline_mode = #tpu.pipeline_mode<synchronous>, transform_indices = @transform_7, window_bounds = array<i64: 240, 256>}, {pipeline_mode = #tpu.pipeline_mode<synchronous>, transform_indices = @transform_8, window_bounds = array<i64: 240, 256>}, {pipeline_mode = #tpu.pipeline_mode<synchronous>, transform_indices = @transform_9, window_bounds = array<i64: 1, 256>}, {pipeline_mode = #tpu.pipeline_mode<synchronous>, transform_indices = @transform_10, window_bounds = array<i64: 256, 256>}, {pipeline_mode = #tpu.pipeline_mode<synchronous>, transform_indices = @transform_11, window_bounds = array<i64: 1, 256>}, {pipeline_mode = #tpu.pipeline_mode<synchronous>, transform_indices = @transform_12, window_bounds = array<i64: 256, 256>}, {pipeline_mode = #tpu.pipeline_mode<synchronous>, transform_indices = @transform_13, window_bounds = array<i64: 1, 256>}, {pipeline_mode = #tpu.pipeline_mode<synchronous>, transform_indices = @transform_14, window_bounds = array<i64: 256, 256>}, {pipeline_mode = #tpu.pipeline_mode<synchronous>, transform_indices = @transform_15, window_bounds = array<i64: 1, 256>}, {pipeline_mode = #tpu.pipeline_mode<synchronous>, transform_indices = @transform_16, window_bounds = array<i64: 256, 32>}, {pipeline_mode = #tpu.pipeline_mode<synchronous>, transform_indices = @transform_17, window_bounds = array<i64: 32, 32>}, {pipeline_mode = #tpu.pipeline_mode<synchronous>, transform_indices = @transform_18, window_bounds = array<i64: 1, 32>}, {transform_indices = @transform_19, window_bounds = array<i64: 16, 32>}, {transform_indices = @transform_20, window_bounds = array<i64: 16, 256>}]} {
    %c0 = arith.constant 0 : index
    %c0_0 = arith.constant 0 : index
    %0 = vector.load %arg1[%c0, %c0_0] : memref<16x4xf32, #tpu.memory_space<vmem>>, vector<16x4xf32>
    %c0_1 = arith.constant 0 : index
    %c0_2 = arith.constant 0 : index
    %1 = vector.load %arg2[%c0_1, %c0_2] : memref<16x32xf32, #tpu.memory_space<vmem>>, vector<16x32xf32>
    %c0_3 = arith.constant 0 : index
    %c0_4 = arith.constant 0 : index
    %2 = vector.load %arg3[%c0_3, %c0_4] : memref<16x24xf32, #tpu.memory_space<vmem>>, vector<16x24xf32>
    %c0_5 = arith.constant 0 : index
    %c0_6 = arith.constant 0 : index
    %3 = vector.load %arg4[%c0_5, %c0_6] : memref<4x256xf32, #tpu.memory_space<vmem>>, vector<4x256xf32>
    %cst = arith.constant dense<0.000000e+00> : vector<16x256xf32>
    %4 = tpu.matmul %0, %3, %cst {dimension_numbers = #tpu.dot_dimension_numbers<[1], [0], [0], [1], [0, 0, 1, 1], [], []>} : vector<16x4xf32>, vector<4x256xf32>, vector<16x256xf32> -> vector<16x256xf32>
    %c0_7 = arith.constant 0 : index
    %c0_8 = arith.constant 0 : index
    %5 = vector.load %arg6[%c0_7, %c0_8] : memref<1x256xf32, #tpu.memory_space<vmem>>, vector<1x256xf32>
    %6 = vector.broadcast %5 : vector<1x256xf32> to vector<16x256xf32>
    %7 = arith.addf %4, %6 : vector<16x256xf32>
    %c0_9 = arith.constant 0 : index
    %c0_10 = arith.constant 0 : index
    %8 = vector.load %arg5[%c0_9, %c0_10] : memref<32x256xf32, #tpu.memory_space<vmem>>, vector<32x256xf32>
    %cst_11 = arith.constant dense<0.000000e+00> : vector<16x256xf32>
    %9 = tpu.matmul %1, %8, %cst_11 {dimension_numbers = #tpu.dot_dimension_numbers<[1], [0], [0], [1], [0, 0, 1, 1], [], []>} : vector<16x32xf32>, vector<32x256xf32>, vector<16x256xf32> -> vector<16x256xf32>
    %c0_12 = arith.constant 0 : index
    %c0_13 = arith.constant 0 : index
    %10 = vector.load %arg6[%c0_12, %c0_13] : memref<1x256xf32, #tpu.memory_space<vmem>>, vector<1x256xf32>
    %11 = vector.broadcast %10 : vector<1x256xf32> to vector<16x256xf32>
    %12 = arith.addf %9, %11 : vector<16x256xf32>
    %c0_14 = arith.constant 0 : index
    %c0_15 = arith.constant 0 : index
    %13 = vector.load %arg7[%c0_14, %c0_15] : memref<24x240xf32, #tpu.memory_space<vmem>>, vector<24x240xf32>
    %cst_16 = arith.constant dense<0.000000e+00> : vector<16x240xf32>
    %14 = tpu.matmul %2, %13, %cst_16 {dimension_numbers = #tpu.dot_dimension_numbers<[1], [0], [0], [1], [0, 0, 1, 1], [], []>} : vector<16x24xf32>, vector<24x240xf32>, vector<16x240xf32> -> vector<16x240xf32>
    %15 = math.sin %14 : vector<16x240xf32>
    %c0_17 = arith.constant 0 : index
    %c0_18 = arith.constant 0 : index
    %16 = vector.load %arg8[%c0_17, %c0_18] : memref<240x256xf32, #tpu.memory_space<vmem>>, vector<240x256xf32>
    %cst_19 = arith.constant dense<0.000000e+00> : vector<16x256xf32>
    %17 = tpu.matmul %15, %16, %cst_19 {dimension_numbers = #tpu.dot_dimension_numbers<[1], [0], [0], [1], [0, 0, 1, 1], [], []>} : vector<16x240xf32>, vector<240x256xf32>, vector<16x256xf32> -> vector<16x256xf32>
    %18 = math.cos %14 : vector<16x240xf32>
    %c0_20 = arith.constant 0 : index
    %c0_21 = arith.constant 0 : index
    %19 = vector.load %arg9[%c0_20, %c0_21] : memref<240x256xf32, #tpu.memory_space<vmem>>, vector<240x256xf32>
    %cst_22 = arith.constant dense<0.000000e+00> : vector<16x256xf32>
    %20 = tpu.matmul %18, %19, %cst_22 {dimension_numbers = #tpu.dot_dimension_numbers<[1], [0], [0], [1], [0, 0, 1, 1], [], []>} : vector<16x240xf32>, vector<240x256xf32>, vector<16x256xf32> -> vector<16x256xf32>
    %21 = arith.addf %17, %20 : vector<16x256xf32>
    %c0_23 = arith.constant 0 : index
    %c0_24 = arith.constant 0 : index
    %22 = vector.load %arg10[%c0_23, %c0_24] : memref<1x256xf32, #tpu.memory_space<vmem>>, vector<1x256xf32>
    %23 = vector.broadcast %22 : vector<1x256xf32> to vector<16x256xf32>
    %24 = arith.addf %21, %23 : vector<16x256xf32>
    %cst_25 = arith.constant 0.000000e+00 : f32
    %25 = vector.broadcast %cst_25 : f32 to vector<16x256xf32>
    %26 = arith.maximumf %24, %25 : vector<16x256xf32>
    %c0_26 = arith.constant 0 : index
    %c0_27 = arith.constant 0 : index
    %27 = vector.load %arg11[%c0_26, %c0_27] : memref<256x256xf32, #tpu.memory_space<vmem>>, vector<256x256xf32>
    %cst_28 = arith.constant dense<0.000000e+00> : vector<16x256xf32>
    %28 = tpu.matmul %26, %27, %cst_28 {dimension_numbers = #tpu.dot_dimension_numbers<[1], [0], [0], [1], [0, 0, 1, 1], [], []>} : vector<16x256xf32>, vector<256x256xf32>, vector<16x256xf32> -> vector<16x256xf32>
    %c0_29 = arith.constant 0 : index
    %c0_30 = arith.constant 0 : index
    %29 = vector.load %arg12[%c0_29, %c0_30] : memref<1x256xf32, #tpu.memory_space<vmem>>, vector<1x256xf32>
    %30 = vector.broadcast %29 : vector<1x256xf32> to vector<16x256xf32>
    %31 = arith.addf %28, %30 : vector<16x256xf32>
    %32 = arith.subf %7, %12 : vector<16x256xf32>
    %33 = arith.addf %32, %31 : vector<16x256xf32>
    %c0_31 = arith.constant 0 : index
    %c0_32 = arith.constant 0 : index
    %34 = vector.load %arg13[%c0_31, %c0_32] : memref<256x256xf32, #tpu.memory_space<vmem>>, vector<256x256xf32>
    %cst_33 = arith.constant dense<0.000000e+00> : vector<16x256xf32>
    %35 = tpu.matmul %33, %34, %cst_33 {dimension_numbers = #tpu.dot_dimension_numbers<[1], [0], [0], [1], [0, 0, 1, 1], [], []>} : vector<16x256xf32>, vector<256x256xf32>, vector<16x256xf32> -> vector<16x256xf32>
    %c0_34 = arith.constant 0 : index
    %c0_35 = arith.constant 0 : index
    %36 = vector.load %arg14[%c0_34, %c0_35] : memref<1x256xf32, #tpu.memory_space<vmem>>, vector<1x256xf32>
    %37 = vector.broadcast %36 : vector<1x256xf32> to vector<16x256xf32>
    %38 = arith.addf %35, %37 : vector<16x256xf32>
    %cst_36 = arith.constant 0.000000e+00 : f32
    %39 = vector.broadcast %cst_36 : f32 to vector<16x256xf32>
    %40 = arith.maximumf %38, %39 : vector<16x256xf32>
    %c0_37 = arith.constant 0 : index
    %c0_38 = arith.constant 0 : index
    %41 = vector.load %arg15[%c0_37, %c0_38] : memref<256x256xf32, #tpu.memory_space<vmem>>, vector<256x256xf32>
    %cst_39 = arith.constant dense<0.000000e+00> : vector<16x256xf32>
    %42 = tpu.matmul %40, %41, %cst_39 {dimension_numbers = #tpu.dot_dimension_numbers<[1], [0], [0], [1], [0, 0, 1, 1], [], []>} : vector<16x256xf32>, vector<256x256xf32>, vector<16x256xf32> -> vector<16x256xf32>
    %c0_40 = arith.constant 0 : index
    %c0_41 = arith.constant 0 : index
    %43 = vector.load %arg16[%c0_40, %c0_41] : memref<1x256xf32, #tpu.memory_space<vmem>>, vector<1x256xf32>
    %44 = vector.broadcast %43 : vector<1x256xf32> to vector<16x256xf32>
    %45 = arith.addf %42, %44 : vector<16x256xf32>
    %cst_42 = arith.constant 0.176776692 : f32
    %46 = vector.broadcast %cst_42 : f32 to vector<16x256xf32>
    %47 = arith.mulf %45, %46 : vector<16x256xf32>
    %c32_i32 = arith.constant 32 : i32
    %48 = tpu.dynamic_rotate %47 by %c32_i32 dim 1 : vector<16x256xf32>, i32 -> vector<16x256xf32>
    %49 = arith.maximumf %47, %48 : vector<16x256xf32>
    %c64_i32 = arith.constant 64 : i32
    %50 = tpu.dynamic_rotate %49 by %c64_i32 dim 1 : vector<16x256xf32>, i32 -> vector<16x256xf32>
    %51 = arith.maximumf %49, %50 : vector<16x256xf32>
    %c128_i32 = arith.constant 128 : i32
    %52 = tpu.dynamic_rotate %51 by %c128_i32 dim 1 : vector<16x256xf32>, i32 -> vector<16x256xf32>
    %53 = arith.maximumf %51, %52 : vector<16x256xf32>
    %54 = arith.subf %47, %53 : vector<16x256xf32>
    %55 = math.exp %54 : vector<16x256xf32>
    %c32_i32_43 = arith.constant 32 : i32
    %56 = tpu.dynamic_rotate %55 by %c32_i32_43 dim 1 : vector<16x256xf32>, i32 -> vector<16x256xf32>
    %57 = arith.addf %55, %56 : vector<16x256xf32>
    %c64_i32_44 = arith.constant 64 : i32
    %58 = tpu.dynamic_rotate %57 by %c64_i32_44 dim 1 : vector<16x256xf32>, i32 -> vector<16x256xf32>
    %59 = arith.addf %57, %58 : vector<16x256xf32>
    %c128_i32_45 = arith.constant 128 : i32
    %60 = tpu.dynamic_rotate %59 by %c128_i32_45 dim 1 : vector<16x256xf32>, i32 -> vector<16x256xf32>
    %61 = arith.addf %59, %60 : vector<16x256xf32>
    %62 = tpu.reciprocal %61 {approx = true} : vector<16x256xf32> -> vector<16x256xf32>
    %63 = arith.mulf %55, %62 : vector<16x256xf32>
    %c0_46 = arith.constant 0 : index
    %c0_47 = arith.constant 0 : index
    %64 = vector.load %arg21[%c0_46, %c0_47] : memref<16x256xf32, #tpu.memory_space<vmem>>, vector<16x256xf32>
    tpu.vector_store %arg21[%c0_46, %c0_47], %63 {strides = array<i32>} : memref<16x256xf32, #tpu.memory_space<vmem>>, vector<16x256xf32>,
    %65 = arith.addf %12, %31 : vector<16x256xf32>
    %66 = arith.mulf %63, %65 : vector<16x256xf32>
    %c0_48 = arith.constant 0 : index
    %c0_49 = arith.constant 0 : index
    %67 = vector.load %arg17[%c0_48, %c0_49] : memref<256x32xf32, #tpu.memory_space<vmem>>, vector<256x32xf32>
    %cst_50 = arith.constant dense<0.000000e+00> : vector<16x32xf32>
    %68 = tpu.matmul %66, %67, %cst_50 {dimension_numbers = #tpu.dot_dimension_numbers<[1], [0], [0], [1], [0, 0, 1, 1], [], []>} : vector<16x256xf32>, vector<256x32xf32>, vector<16x32xf32> -> vector<16x32xf32>
    %c0_51 = arith.constant 0 : index
    %c0_52 = arith.constant 0 : index
    %69 = vector.load %arg18[%c0_51, %c0_52] : memref<32x32xf32, #tpu.memory_space<vmem>>, vector<32x32xf32>
    %cst_53 = arith.constant dense<0.000000e+00> : vector<16x32xf32>
    %70 = tpu.matmul %68, %69, %cst_53 {dimension_numbers = #tpu.dot_dimension_numbers<[1], [0], [0], [1], [0, 0, 1, 1], [], []>} : vector<16x32xf32>, vector<32x32xf32>, vector<16x32xf32> -> vector<16x32xf32>
    %c0_54 = arith.constant 0 : index
    %c0_55 = arith.constant 0 : index
    %71 = vector.load %arg19[%c0_54, %c0_55] : memref<1x32xf32, #tpu.memory_space<vmem>>, vector<1x32xf32>
    %72 = vector.broadcast %71 : vector<1x32xf32> to vector<16x32xf32>
    %73 = arith.addf %70, %72 : vector<16x32xf32>
    %74 = vector.extract_strided_slice %7 {offsets = [0, 0], sizes = [16, 32], strides = [1, 1]} : vector<16x256xf32> to vector<16x32xf32>
    %75 = arith.addf %73, %74 : vector<16x32xf32>
    %c0_56 = arith.constant 0 : index
    %c0_57 = arith.constant 0 : index
    %76 = vector.load %arg20[%c0_56, %c0_57] : memref<16x32xf32, #tpu.memory_space<vmem>>, vector<16x32xf32>
    tpu.vector_store %arg20[%c0_56, %c0_57], %75 {strides = array<i32>} : memref<16x32xf32, #tpu.memory_space<vmem>>, vector<16x32xf32>,
    return
  }
  func.func @transform_0(%arg0: i32) -> (i32, i32) {
    %c0_i32 = arith.constant 0 : i32
    %c0_i32_0 = arith.constant 0 : i32
    return %arg0, %c0_i32 : i32, i32
  }
  func.func @transform_1(%arg0: i32) -> (i32, i32) {
    %c0_i32 = arith.constant 0 : i32
    %c0_i32_0 = arith.constant 0 : i32
    return %arg0, %c0_i32 : i32, i32
  }
  func.func @transform_2(%arg0: i32) -> (i32, i32) {
    %c0_i32 = arith.constant 0 : i32
    %c0_i32_0 = arith.constant 0 : i32
    return %arg0, %c0_i32 : i32, i32
  }
  func.func @transform_3(%arg0: i32) -> (i32, i32) {
    %c0_i32 = arith.constant 0 : i32
    %c0_i32_0 = arith.constant 0 : i32
    %c0_i32_1 = arith.constant 0 : i32
    return %c0_i32, %c0_i32_0 : i32, i32
  }
  func.func @transform_4(%arg0: i32) -> (i32, i32) {
    %c0_i32 = arith.constant 0 : i32
    %c0_i32_0 = arith.constant 0 : i32
    %c0_i32_1 = arith.constant 0 : i32
    return %c0_i32, %c0_i32_0 : i32, i32
  }
  func.func @transform_5(%arg0: i32) -> (i32, i32) {
    %c0_i32 = arith.constant 0 : i32
    %c0_i32_0 = arith.constant 0 : i32
    %c0_i32_1 = arith.constant 0 : i32
    return %c0_i32, %c0_i32_0 : i32, i32
  }
  func.func @transform_6(%arg0: i32) -> (i32, i32) {
    %c0_i32 = arith.constant 0 : i32
    %c0_i32_0 = arith.constant 0 : i32
    %c0_i32_1 = arith.constant 0 : i32
    return %c0_i32, %c0_i32_0 : i32, i32
  }
  func.func @transform_7(%arg0: i32) -> (i32, i32) {
    %c0_i32 = arith.constant 0 : i32
    %c0_i32_0 = arith.constant 0 : i32
    %c0_i32_1 = arith.constant 0 : i32
    return %c0_i32, %c0_i32_0 : i32, i32
  }
  func.func @transform_8(%arg0: i32) -> (i32, i32) {
    %c0_i32 = arith.constant 0 : i32
    %c0_i32_0 = arith.constant 0 : i32
    %c0_i32_1 = arith.constant 0 : i32
    return %c0_i32, %c0_i32_0 : i32, i32
  }
  func.func @transform_9(%arg0: i32) -> (i32, i32) {
    %c0_i32 = arith.constant 0 : i32
    %c0_i32_0 = arith.constant 0 : i32
    %c0_i32_1 = arith.constant 0 : i32
    return %c0_i32, %c0_i32_0 : i32, i32
  }
  func.func @transform_10(%arg0: i32) -> (i32, i32) {
    %c0_i32 = arith.constant 0 : i32
    %c0_i32_0 = arith.constant 0 : i32
    %c0_i32_1 = arith.constant 0 : i32
    return %c0_i32, %c0_i32_0 : i32, i32
  }
  func.func @transform_11(%arg0: i32) -> (i32, i32) {
    %c0_i32 = arith.constant 0 : i32
    %c0_i32_0 = arith.constant 0 : i32
    %c0_i32_1 = arith.constant 0 : i32
    return %c0_i32, %c0_i32_0 : i32, i32
  }
  func.func @transform_12(%arg0: i32) -> (i32, i32) {
    %c0_i32 = arith.constant 0 : i32
    %c0_i32_0 = arith.constant 0 : i32
    %c0_i32_1 = arith.constant 0 : i32
    return %c0_i32, %c0_i32_0 : i32, i32
  }
  func.func @transform_13(%arg0: i32) -> (i32, i32) {
    %c0_i32 = arith.constant 0 : i32
    %c0_i32_0 = arith.constant 0 : i32
    %c0_i32_1 = arith.constant 0 : i32
    return %c0_i32, %c0_i32_0 : i32, i32
  }
  func.func @transform_14(%arg0: i32) -> (i32, i32) {
    %c0_i32 = arith.constant 0 : i32
    %c0_i32_0 = arith.constant 0 : i32
    %c0_i32_1 = arith.constant 0 : i32
    return %c0_i32, %c0_i32_0 : i32, i32
  }
  func.func @transform_15(%arg0: i32) -> (i32, i32) {
    %c0_i32 = arith.constant 0 : i32
    %c0_i32_0 = arith.constant 0 : i32
    %c0_i32_1 = arith.constant 0 : i32
    return %c0_i32, %c0_i32_0 : i32, i32
  }
  func.func @transform_16(%arg0: i32) -> (i32, i32) {
    %c0_i32 = arith.constant 0 : i32
    %c0_i32_0 = arith.constant 0 : i32
    %c0_i32_1 = arith.constant 0 : i32
    return %c0_i32, %c0_i32_0 : i32, i32
  }
  func.func @transform_17(%arg0: i32) -> (i32, i32) {
    %c0_i32 = arith.constant 0 : i32
    %c0_i32_0 = arith.constant 0 : i32
    %c0_i32_1 = arith.constant 0 : i32
    return %c0_i32, %c0_i32_0 : i32, i32
  }
  func.func @transform_18(%arg0: i32) -> (i32, i32) {
    %c0_i32 = arith.constant 0 : i32
    %c0_i32_0 = arith.constant 0 : i32
    %c0_i32_1 = arith.constant 0 : i32
    return %c0_i32, %c0_i32_0 : i32, i32
  }
  func.func @transform_19(%arg0: i32) -> (i32, i32) {
    %c0_i32 = arith.constant 0 : i32
    %c0_i32_0 = arith.constant 0 : i32
    return %arg0, %c0_i32 : i32, i32
  }
  func.func @transform_20(%arg0: i32) -> (i32, i32) {
    %c0_i32 = arith.constant 0 : i32
    %c0_i32_0 = arith.constant 0 : i32
    return %arg0, %c0_i32 : i32, i32
  }
}

</mosaic_0001>

<bundles_post_ra>
// kernel: tpu_custom_call.1
= control target key start
LH: loop header
LB: loop body
LE: loop exit
PB: predicated region body
PF: predicated region fallthrough
CT: control target
= control target key end

     0   :  { %s5128_s0 = inlined_call_operand.vmem [shape: f32[32,4], index: 0, kind: input, shape index: {}]   ;;  %s5129_s1 = inlined_call_operand.vmem [shape: f32[32,32], index: 1, kind: input, shape index: {}]   ;;  %s5130_s2 = inlined_call_operand.vmem [shape: f32[32,24], index: 2, kind: input, shape index: {}]   ;;  %s5131_s3 = inlined_call_operand.vmem [shape: f32[4,256], index: 3, kind: input, shape index: {}]   ;;  %s5132_s4 = inlined_call_operand.vmem [shape: f32[32,256], index: 4, kind: input, shape index: {}]   ;;  %s5133_s5 = inlined_call_operand.vmem [shape: f32[1,256], index: 5, kind: input, shape index: {}]   ;;  %s5134_s6 = inlined_call_operand.vmem [shape: f32[24,240], index: 6, kind: input, shape index: {}]   ;;  %s5135_s7 = inlined_call_operand.hbm [shape: f32[240,256], index: 7, kind: input, shape index: {}]   ;;  %s5136_s8 = inlined_call_operand.hbm [shape: f32[240,256], index: 8, kind: input, shape index: {}]   ;;  %s5137_s9 = inlined_call_operand.vmem [shape: f32[1,256], index: 9, kind: input, shape index: {}]   ;;  %s5138_s10 = inlined_call_operand.hbm [shape: f32[256,256], index: 10, kind: input, shape index: {}]   ;;  %s5139_s11 = inlined_call_operand.vmem [shape: f32[1,256], index: 11, kind: input, shape index: {}]   ;;  %s5140_s12 = inlined_call_operand.hbm [shape: f32[256,256], index: 12, kind: input, shape index: {}]   ;;  %s5141_s13 = inlined_call_operand.vmem [shape: f32[1,256], index: 13, kind: input, shape index: {}]   ;;  %s5142_s14 = inlined_call_operand.hbm [shape: f32[256,256], index: 14, kind: input, shape index: {}]   ;;  %s5143_s15 = inlined_call_operand.vmem [shape: f32[1,256], index: 15, kind: input, shape index: {}]   ;;  %s5144_s16 = inlined_call_operand.vmem [shape: f32[256,32], index: 16, kind: input, shape index: {}]   ;;  %s5145_s17 = inlined_call_operand.vmem [shape: f32[32,32], index: 17, kind: input, shape index: {}]   ;;  %s5146_s18 = inlined_call_operand.vmem [shape: f32[1,32], index: 18, kind: input, shape index: {}]   ;;  %s5147_s19 = inlined_call_operand.hbm [shape: f32[32,32], index: 19, kind: output, shape index: {0}]   ;;  %s5148_s20 = inlined_call_operand.hbm [shape: f32[32,256], index: 20, kind: output, shape index: {1}]  }
   0x1   :  { %5158 = sst [smem:[#allocation25_spill]] %s5128_s0 }
   0x2   :  { %5159 = sst [smem:[#allocation26_spill]] %s5129_s1 }
   0x3   :  { %5160 = sst [smem:[#allocation27_spill]] %s5130_s2 }
   0x4   :  { %5161 = sst [smem:[#allocation28_spill]] %s5131_s3 }
   0x5   :  { %5162 = sst [smem:[#allocation29_spill]] %s5132_s4 }
   0x6   :  { %5163 = sst [smem:[#allocation30_spill]] %s5133_s5 }
   0x7   :  { %5164 = sst [smem:[#allocation31_spill]] %s5136_s8 }
   0x8   :  { %5165 = sst [smem:[#allocation32_spill]] %s5140_s12 }
   0x9   :  { %5166 = sst [smem:[#allocation33_spill]] %s5146_s18 }
   0xa   :  { %5167 = sst [smem:[#allocation34_spill]] %s5147_s19 }
   0xb   :  { %5168 = sst [smem:[#allocation35_spill]] %s5148_s20 }
   0xc   :  { %26 = vsyncpa [#allocation3], 0 }
   0xd   :  { %27 = vsyncpa [#allocation6], 0 }
   0xe   :  { %28 = vsyncpa [#allocation9], 0 }
   0xf   :  { %29 = vsyncpa [#allocation4], 0 }
  0x10   :  { %31 = vsyncpa [#allocation4 + $0x1], 0 }
  0x11   :  { %32 = vsyncpa [#allocation13], 0 }
  0x12   :  { %34 = vsyncpa [#allocation13 + $0x1], 0  ;;  %s4051_s1 = smov 0   ;;  %s4053_s22 = smov 0  }
  0x13   :  { %s4055_s23 = smov 0   ;;  %s4057_s24 = smov 0  }
  0x14 LB: > { %5169 = sst [smem:[#allocation19_spill]] %s3912_s1  ;;  %s4072_s2 = sadd.s32 4294967295, %s3924_s24   ;;  %s3924_s24 = sphi %s4057_s24, %s5202_s24   ;;  %s3920_s23 = sphi %s4055_s23, %s5204_s23   ;;  %s3916_s22 = sphi %s4053_s22, %s5206_s22   ;;  %s3912_s1 = sphi %s4051_s1, %s5205_s1  }
  0x15   : > { %5170 = sst [smem:[#allocation20_spill]] %s3920_s23  ;;  %s3463_s25 = sadd.s32 4294967294, %s3924_s24  }
  0x16   : > { %5171 = sst [smem:[#allocation21_spill]] %s3924_s24  ;;  %s4076_s3 = sadd.s32 1, %s3924_s24  }
  0x17   : > { %5172 = sst [smem:[#allocation22_spill]] %s4076_s3  ;;  %s461_s26 = sadd.s32 1, %s3920_s23 }
  0x18   : > { %s458_s27 = ssub.s32 %s3924_s24, %s4076_s3  ;;  %p471_p0 = scmp.ne.s32.totalorder %s3920_s23, %s3916_s22 }
  0x19   : > { %p459_p1 = scmp.eq.s32.totalorder %s458_s27, 0  ;;  %p472_p2 = scmp.eq.s32.totalorder %s4072_s2, 1 }
  0x1a   : > { %p477_p3 = scmp.ne.s32.totalorder %s3916_s22, %s3912_s1  ;;  %p478_p4 = scmp.eq.s32.totalorder %s3463_s25, 1 }
  0x1b   : > { %s4087_s28 = scalar_select %p459_p1, %s3920_s23, %s461_s26  }
  0x1c   : > { %p4089_p5 = por %p472_p2, %p471_p0  ;;  %p4093_p6 = por %p478_p4, %p477_p3 }
  0x1d   : > { %5173 = sst [smem:[#allocation23_spill]] %s4087_s28  ;;  %p3464_p7 = scmp.ge.s32.totalorder %s3924_s24, 1 }
  0x1e   : > { %s5175_s29 = scalar_select %p4093_p6, 1, 0 }
  0x1f   : > { %p511_p8 = scmp.lt.s32.totalorder %s3924_s24, 3  ;;  %p3592_p9 = scmp.eq.s32.totalorder %s4072_s2, 0 }
  0x20   : > { %5176 = sst [smem:[#allocation24_spill]] %s5175_s29  ;;  %s3926_s3 = smov [#allocation5]  }
  0x21   : > { %p4100_p10 = pnand %p3464_p7, %p511_p8  ;;  %s5178_s8 = sld [smem:[#allocation31_spill]] }
  0x22   : > { %s5179_s12 = sld [smem:[#allocation32_spill]]  ;;  %s550_s29 = sshll.u32 %s3926_s3, 4  ;;  %s551_s29 = int_to_ptr.vmem [resolvable:$true] %s550_s29 }
  0x23   : > { %p3569_p11 = pneg %p4100_p10  ;;  %s3927_s0 = smov 256  }
  0x24   : > { %s3928_s21 = smov 16   ;;  %s534_s1 = sshll.u32 %s5135_s7, 4  ;;  %s535_s1 = int_to_ptr.hbm [resolvable:$true] %s534_s1 }
  0x25   : > { %p4114_p12 = pnand %p3592_p9, %p3569_p11  ;;  %s565_s19 = sshll.u32 %s5138_s10, 4  ;;  %s566_s19 = int_to_ptr.hbm [resolvable:$true] %s565_s19 }
  0x26   : > { %s3930_s18 = smov [#allocation2]   ;;  %s599_s27 = sshll.u32 %s5142_s14, 4  ;;  %s600_s27 = int_to_ptr.hbm [resolvable:$true] %s599_s27 }
  0x27   : > { %s548_s25 = sshll.u32 %s5178_s8, 4  ;;  %s3929_s8 = smov [#allocation8]   ;;  %s549_s25 = int_to_ptr.hbm [resolvable:$true] %s548_s25 }
  0x28   : > { %s582_s28 = sshll.u32 %s5179_s12, 4  ;;  %s584_s26 = sshll.u32 %s3929_s8, 4  ;;  %s583_s28 = int_to_ptr.hbm [resolvable:$true] %s582_s28  ;;  %s585_s26 = int_to_ptr.vmem [resolvable:$true] %s584_s26 }
  0x29   : > { %3575 = dma.hbm_to_vmem [thread:$0]  (!%p4114_p12), %s549_s25, 7680, %s551_s29, [#allocation6], %s3927_s0, %s3927_s0, %s3928_s21  }
  0x2a   : > { %3581 = dma.hbm_to_vmem [thread:$0]  (!%p4114_p12), %s583_s28, 8192, %s585_s26, [#allocation9], %s3927_s0, %s3927_s0, %s3928_s21  }
  0x2b   : > { %s536_s20 = sshll.u32 %s3930_s18, 4  ;;  %s3931_s8 = smov [#allocation7]   ;;  %s537_s20 = int_to_ptr.vmem [resolvable:$true] %s536_s20 }
  0x2c   : > { %3572 = dma.hbm_to_vmem [thread:$0]  (!%p4114_p12), %s535_s1, 7680, %s537_s20, [#allocation3], %s3927_s0, %s3927_s0, %s3928_s21  }
  0x2d   : > { %s567_s29 = sshll.u32 %s3931_s8, 4  ;;  %s3932_s28 = smov [#allocation10]   ;;  %s568_s29 = int_to_ptr.vmem [resolvable:$true] %s567_s29 }
  0x2e   : > { %3578 = dma.hbm_to_vmem [thread:$0]  (!%p4114_p12), %s566_s19, 8192, %s568_s29, [#allocation6], %s3927_s0, %s3927_s0, %s3928_s21  }
  0x2f   : > { %s601_s24 = sshll.u32 %s3932_s28, 4  ;;  %656 = sbr.rel (%p4100_p10) target bundleno = 1739 (0x6cb), region = 96  ;;  %s602_s24 = int_to_ptr.vmem [resolvable:$true] %s601_s24 }
  0x30   : > { %3584 = dma.hbm_to_vmem [thread:$0]  (!%p4114_p12), %s600_s27, 8192, %s602_s24, [#allocation9], %s3927_s0, %s3927_s0, %s3928_s21  }
  0x34   : > { %3891 = dma.done.wait (%p3592_p9), [#allocation3], 7680  }
  0x35   : > { %3893 = vsyncadd (%p3592_p9), [#allocation3], 4294959616 }
  0x36   : > { %3895 = dma.done.wait (%p3592_p9), [#allocation6], 15872  }
  0x37   : > { %3897 = vsyncadd (%p3592_p9), [#allocation6], 4294951424 }
  0x38   : > { %3899 = dma.done.wait (%p3592_p9), [#allocation9], 16384  }
  0x39   : > { %3901 = vsyncadd (%p3592_p9), [#allocation9], 4294950912  ;;  %s3479_s18 = sshll.u32 %s4072_s2, 1  ;;  %s5181_s23 = sld [smem:[#allocation29_spill]]  ;;  %vm853_vm0 = vcmask 261120   ;;  %vm794_vm1 = vcmask 1043456  }
  0x3a   : > { %p751_p13 = scmp.lt.s32.totalorder %s3479_s18, 3  ;;  %s5183_s8 = sld [smem:[#allocation28_spill]]  ;;  %vm787_vm2 = vcmask 31744   ;;  %v910_v8 = vld [vmem:[%s5134_s6 + $0x20] sm:$0xff]  ;;  %v908_v12 = vld [vmem:[%s5134_s6 + $0x10] sm:$0xff]  ;;  %v911_v18 = vld [vmem:[%s5134_s6 + $0x28] sm:$0xff] }
  0x3b   : > { %s5184_s28 = sld [smem:[#allocation26_spill]]  ;;  %v906_v15 = vld [vmem:[%s5134_s6] sm:$0xff]  ;;  %v909_v19 = vld [vmem:[%s5134_s6 + $0x18] sm:$0xff]  ;;  %v907_v20 = vld [vmem:[%s5134_s6 + $0x8] sm:$0xff]  ;;  %vm912_vm3 = vcmask 195584   ;;  %s3940_s25 = smov 32  }
  0x3c   : > { %s5208_s18 = smov (!%p751_p13, %s3479_s18), 3  ;;  %s5185_s0 = sld [smem:[#allocation25_spill]]  ;;  %v3933_v44 = vmov 683565275   ;;  %v3934_v46 = vmov 2475754826  }
  0x3d   : > { %s4152_s19 = sshll.u32 %s5208_s18, 3  ;;  %s5186_s27 = sld [smem:[#allocation27_spill]]  ;;  %v3935_v48 = vmov 2131351028   ;;  %v3936_v50 = vmov 2102212464  }
  0x3e   : > { %v3937_v52 = vmov 920167782   ;;  %v3938_v61 = vmov 1326507024   ;;  %s5195_s5 = sld [smem:[#allocation30_spill]]  ;;  %s3941_s12 = smov 64  }
  0x3f   : > { %s5182_s30 = smov %s5181_s23  ;;  %v852_v0 = vld [vmem:[%s5181_s23 + $0x38] sm:$0xff] }
  0x40   : > { %v850_v1 = vld [vmem:[%s5182_s30 + $0x28] sm:$0xff]  ;;  %895 = vmatpush.msra.mxu3 %v852_v0  ;;  %v776_v2 = vld [vmem:[%s5183_s8] sm:$0xff]  ;;  %v848_v3 = vld [vmem:[%s5182_s30 + $0x18] sm:$0xff]  ;;  %s3544_s8 = sshll.u32 %s4072_s2, 5 }
  0x41   : > { %s760_s24 = scalar_lea.vmem %s5184_s28, %s4152_s19  ;;  %784 = vst [vmem:[#allocation1] ss:$2 sm:$0xff] %v776_v2  ;;  %v846_v4 = vld [vmem:[%s5182_s30 + $0x8] sm:$0xff]  ;;  %v851_v7 = vld [vmem:[%s5182_s30 + $0x30] sm:$0xff]  ;;  %v849_v11 = vld [vmem:[%s5182_s30 + $0x20] sm:$0xff]  ;;  %s5031_s28 = sand.u32 1, %s3916_s22  }
  0x42   : > { %896 = vmatpush.msra.mxu3 %v850_v1  ;;  %v772_v5 = vld [vmem:[%s760_s24] sm:$0xff]  ;;  %s754_s21 = scalar_lea.vmem %s5185_s0, %s4152_s19  ;;  %v773_v13 = vld [vmem:[%s760_s24 + $0x8] sm:$0xff]  ;;  %v847_v14 = vld [vmem:[%s5182_s30 + $0x10] sm:$0xff]  ;;  %s3478_s23 = sshll.u32 %s5031_s28, 5 }
  0x43   : > { %v770_v6 = vld [vmem:[%s754_s21] sm:$0xff]  ;;  %v771_v17 = vld [vmem:[%s754_s21 + $0x8] sm:$0xff]  ;;  %s766_s21 = scalar_lea.vmem %s5186_s27, %s4152_s19  ;;  %s5046_s0 = scalar_lea.vmem [#allocation12], %s3478_s23 }
  0x44   : > { %897 = vmatpush.msra.mxu3 %v848_v3  ;;  %v845_v16 = vld [vmem:[%s5182_s30] sm:$0xff]  ;;  %v775_v22 = vld [vmem:[%s766_s21 + $0x8] sm:$0xff]  ;;  %s3291_s29 = sshll.u32 %s5046_s0, 4  ;;  %s3261_s20 = scalar_lea.sflag [#allocation13], %s5031_s28  ;;  %s3292_s29 = int_to_ptr.vmem [resolvable:$true] %s3291_s29 }
  0x45   : > { %v774_v21 = vld [vmem:[%s766_s21] sm:$0xff]  ;;  %s5196_s21 = sld [smem:[#allocation35_spill]] }
  0x46   : > { %898 = vmatpush.msra.mxu3 %v846_v4 }
  0x47   : > { %3493 = vmatmul.msk.f32.vlgmr.msra.gmra.mxu3 %vm853_vm0, %v772_v5 }
  0x48   : > { %v785_v9 = vld.sshfl [vmem:[#allocation1] sm:$0xff pattern:$0x75316420]  ;;  %v786_v10 = vld.sshfl [vmem:[#allocation1 + $0x8] sm:$0xff pattern:$0x75316420] }
  0x49   : > { %3485 = vmatpush.msk.msra.mxu0 %vm794_vm1, %v785_v9  ;;  %3488 = vmatpush.msk.msra.mxu1 %vm794_vm1, %v786_v10 }
  0x4a   : > { %3486 = vmatmul.msk.f32.vlgmr.msra.gmra.mxu0 %vm787_vm2, %v770_v6  ;;  %3489 = vmatmul.msk.f32.vlgmr.msra.gmra.mxu1 %vm787_vm2, %v770_v6 }
  0x4b   : > { %872 = vmatpush.msrb.mxu1 %v851_v7  ;;  %932 = vmatpush.msrb.mxu0 %v910_v8  ;;  %s3290_s18 = scalar_lea.hbm %s5196_s21, %s3544_s8 }
  0x4c   : > { %s3293_s19 = sshll.u32 %s3290_s18, 4  ;;  %s3294_s19 = int_to_ptr.hbm [resolvable:$true] %s3293_s19 }
  0x4d   : > { %873 = vmatpush.msrb.mxu1 %v849_v11  ;;  %933 = vmatpush.msrb.mxu0 %v908_v12  ;;  %s3832_s1 = sshra.s32 %s3294_s19, 4  ;;  %s3833_s1 = int_to_ptr.hbm [resolvable:$true] %s3832_s1 }
  0x4e   : > { %s3834_s23 = scalar_lea.hbm %s3833_s1, 32  ;;  %p3839_p3 = scmp.lt.s32.totalorder %s3833_s1, %s5196_s21 }
  0x4f   : > { %3494 = vmatmul.msk.f32.gmra.mxu3 %vm853_vm0, %v773_v13  ;;  %874 = vmatpush.msrb.mxu1 %v847_v14  ;;  %p3835_p0 = scmp.ne.s32.totalorder %s3833_s1, %s3834_s23 }
  0x50   : > { %934 = vmatpush.msrb.mxu0 %v906_v15 }
  0x51   : > { %875 = vmatpush.msrb.mxu1 %v845_v16  ;;  %p3836_p1 = pnand %p3835_p0, %p4089_p5 }
  0x52   : > { %3487 = vmatmul.msk.f32.gmra.mxu0 %vm787_vm2, %v771_v17  ;;  %3490 = vmatmul.msk.f32.gmra.mxu1 %vm787_vm2, %v771_v17 }
  0x53   : > { %955 = vmatpush.msra.mxu1 %v911_v18  ;;  %p3837_p2 = pneg %p3836_p1 }
  0x55   : > { %956 = vmatpush.msra.mxu1 %v909_v19 }
  0x57   : > { %957 = vmatpush.msra.mxu1 %v907_v20 }
  0x5a   : > { %3491 = vmatmul.msk.f32.vlgmr.msrb.gmra.mxu1 %vm853_vm0, %v772_v5  ;;  %3495 = vmatmul.msk.f32.vlgmr.msrb.gmra.mxu0 %vm912_vm3, %v774_v21 }
  0x62   : > { %3492 = vmatmul.msk.f32.gmra.mxu1 %vm853_vm0, %v773_v13  ;;  %3496 = vmatmul.msk.f32.gmra.mxu0 %vm912_vm3, %v775_v22 }
  0x6a   : > { %3497 = vmatmul.msk.f32.vlgmr.msra.gmra.mxu1 %vm912_vm3, %v774_v21 }
  0x72   : > { %3498 = vmatmul.msk.f32.gmra.mxu1 %vm912_vm3, %v775_v22 }
  0xc7   : > { %v4219_v23 = vpop.f32.mrf.mxu0  ;;  %v4227_v28 = vpop.f32.mrf.mxu1 }
  0xcf   : > { %v4221_v24 = vpop.f32.mrf.mxu0  ;;  %v4237_v41 = vpop.f32.mrf.mxu1 }
  0xd7   : > { %v4223_v25 = vpop.f32.mrf.mxu0  ;;  %v4257_v17 = vpop.f32.mrf.mxu1 }
  0xd8   : > { %v965_v26 = vand.u32 2147483647, %v4223_v25  ;;  %v968_v27 = vand.u32 2139095040, %v4223_v25 }
  0xda   : > { %v969_v29 = vshrl.u32 %v968_v27, 23  ;;  %v972_v30 = vand.u32 8388607, %v965_v26 }
  0xdc   : > { %v3499_v31 = vadd.s32 4294967169, %v969_v29  ;;  %v973_v32 = vor.u32 8388608, %v972_v30 }
  0xde   : > { %v975_v33 = vadd.s32 1, %v3499_v31  ;;  %v4233_v36 = vshll.u32 %v973_v32, 8 }
  0xdf   : > { %v4231_v34 = vpop.f32.mrf.mxu0 }
  0xe0   : > { %vm976_vm4 = vcmp.gt.s32.totalorder %v975_v33, 0  ;;  %v1275_v37 = vand.u32 2147483647, %v4231_v34  ;;  %v1278_v38 = vand.u32 2139095040, %v4231_v34  ;;  %v1014_v54 = vand.u32 65535, %v4233_v36 }
  0xe1   : > { %v977_v35 = vsel %vm976_vm4, %v975_v33, 0  ;;  %v1015_v5 = vshrl.u32 %v4233_v36, 16 }
  0xe2   : > { %v978_v39 = vshrl.u32 %v977_v35, 5  ;;  %v979_v40 = vand.u32 31, %v977_v35  ;;  %v1279_v42 = vshrl.u32 %v1278_v38, 23  ;;  %v1282_v55 = vand.u32 8388607, %v1275_v37 }
  0xe4   : > { %v980_v43 = vsub.s32 32, %v979_v40  ;;  %v982_v45 = vshll.u32 %v3933_v44, %v979_v40  ;;  %v985_v47 = vshll.u32 %v3934_v46, %v979_v40  ;;  %v988_v49 = vshll.u32 %v3935_v48, %v979_v40 }
  0xe5   : > { %v991_v51 = vshll.u32 %v3936_v50, %v979_v40  ;;  %v994_v53 = vshll.u32 %v3937_v52, %v979_v40  ;;  %vm997_vm5 = vcmp.lt.s32.totalorder %v978_v39, 1  ;;  %vm1000_vm6 = vcmp.lt.s32.totalorder %v978_v39, 4 }
  0xe6   : > { %v983_v56 = vshrl.u32 %v3934_v46, %v980_v43  ;;  %v986_v57 = vshrl.u32 %v3935_v48, %v980_v43  ;;  %v989_v58 = vshrl.u32 %v3936_v50, %v980_v43  ;;  %v981_v59 = vshrl.u32 %v3933_v44, %v980_v43 }
  0xe7   : > { %v992_v60 = vshrl.u32 %v3937_v52, %v980_v43  ;;  %v995_v62 = vshrl.u32 %v3938_v61, %v980_v43  ;;  %v3505_v2 = vadd.s32 4294967169, %v1279_v42  ;;  %vm999_vm7 = vcmp.lt.s32.totalorder %v978_v39, 3 }
  0xe8   : > { %v984_v63 = vor.u32 %v983_v56, %v982_v45  ;;  %v987_v0 = vor.u32 %v986_v57, %v985_v47  ;;  %v990_v1 = vor.u32 %v989_v58, %v988_v49  ;;  %vm998_vm8 = vcmp.lt.s32.totalorder %v978_v39, 2 }
  0xe9   : > { %v993_v3 = vor.u32 %v992_v60, %v991_v51  ;;  %v996_v4 = vor.u32 %v995_v62, %v994_v53  ;;  %v1283_v11 = vor.u32 8388608, %v1282_v55  ;;  %v1285_v12 = vadd.s32 1, %v3505_v2 }
  0xea   : > { %v1002_v6 = vsel %vm1000_vm6, %v990_v1, 2102212464  ;;  %v1005_v7 = vsel %vm997_vm5, %v984_v63, %v987_v0  ;;  %v1009_v8 = vsel %vm997_vm5, %v987_v0, %v990_v1  ;;  %v1001_v13 = vsel %vm997_vm5, %v981_v59, %v984_v63 }
  0xeb   : > { %v1006_v9 = vsel %vm1000_vm6, %v993_v3, 920167782  ;;  %v1010_v10 = vsel %vm1000_vm6, %v996_v4, 1326507024  ;;  %v1003_v14 = vsel %vm999_vm7, %v987_v0, %v1002_v6  ;;  %vm1286_vm9 = vcmp.gt.s32.totalorder %v1285_v12, 0  ;;  %v4269_v4 = vpop.f32.mrf.mxu1 }
  0xec   : > { %v1007_v15 = vsel %vm999_vm7, %v990_v1, %v1006_v9  ;;  %v1011_v16 = vsel %vm999_vm7, %v993_v3, %v1010_v10  ;;  %v4262_v29 = vsel %vm998_vm8, %v1001_v13, %v1003_v14  ;;  %v4264_v33 = vshll.u32 %v1283_v11, 8 }
  0xed   : > { %v1008_v18 = vsel %vm998_vm8, %v1005_v7, %v1007_v15  ;;  %v1012_v19 = vsel %vm998_vm8, %v1009_v8, %v1011_v16  ;;  %v1287_v42 = vsel %vm1286_vm9, %v1285_v12, 0  ;;  %v3939_v59 = vmov 0  }
  0xee   : > { %v1016_v20 = vand.u32 65535, %v1012_v19  ;;  %v1017_v21 = vshrl.u32 %v1012_v19, 16  ;;  %v1038_v22 = vand.u32 65535, %v1008_v18  ;;  %v1039_v27 = vshrl.u32 %v1008_v18, 16 }
  0xef   : > { %v1289_v58 = vand.u32 31, %v1287_v42 }
  0xf0   : > { %v1018_v30 = vmul.u32 %v1016_v20, %v1014_v54  ;;  %v1019_v31 = vmul.u32 %v1017_v21, %v1014_v54  ;;  %v1020_v32 = vmul.u32 %v1016_v20, %v1015_v5  ;;  %v1040_v35 = vmul.u32 %v1038_v22, %v1014_v54 }
  0xf1   : > { %v1041_v38 = vmul.u32 %v1039_v27, %v1014_v54  ;;  %v1042_v40 = vmul.u32 %v1038_v22, %v1015_v5  ;;  %v1021_v43 = vmul.u32 %v1017_v21, %v1015_v5  ;;  %v1043_v49 = vmul.u32 %v1039_v27, %v1015_v5 }
  0xf2   : > { %v1022_v45 = vshll.u32 %v1019_v31, 16  ;;  %v1024_v47 = vshll.u32 %v1020_v32, 16  ;;  %v1023_v51 = vshrl.u32 %v1019_v31, 16  ;;  %v1025_v53 = vshrl.u32 %v1020_v32, 16 }
  0xf3   : > { %v1044_v55 = vshll.u32 %v1041_v38, 16  ;;  %v1046_v56 = vshll.u32 %v1042_v40, 16  ;;  %v1045_v57 = vshrl.u32 %v1041_v38, 16  ;;  %v1047_v62 = vshrl.u32 %v1042_v40, 16 }
  0xf4   : > { %vm1026_vm10 = vc.u32 %v1018_v30, %v1022_v45  ;;  %v1028_v39 = vadd.s32 %v1022_v45, %v1018_v30  ;;  %v1290_v1 = vsub.s32 32, %v1289_v58  ;;  %v4271_v5 = vshrl.u32 %v1287_v42, 5 }
  0xf5   : > { %v1027_v60 = vsel %vm1026_vm10, 1, %v3939_v59  ;;  %vm1048_vm11 = vc.u32 %v1040_v35, %v1044_v55  ;;  %v1050_v54 = vadd.s32 %v1044_v55, %v1040_v35  ;;  %v1292_v9 = vshll.u32 %v3933_v44, %v1289_v58 }
  0xf6   : > { %v1029_v63 = vadd.s32 %v1027_v60, %v1021_v43  ;;  %vm1030_vm12 = vc.u32 %v1028_v39, %v1024_v47  ;;  %v1049_v0 = vsel %vm1048_vm11, 1, %v3939_v59  ;;  %v1293_v11 = vshrl.u32 %v3934_v46, %v1290_v1  ;;  %v4317_v39 = vpop.f32.mrf.mxu1 }
  0xf7   : > { %v1031_v2 = vsel %vm1030_vm12, 1, %v3939_v59  ;;  %v1051_v3 = vadd.s32 %v1049_v0, %v1043_v49  ;;  %vm1052_vm13 = vc.u32 %v1050_v54, %v1046_v56  ;;  %v4274_v8 = vadd.s32 %v1050_v54, %v1046_v56 }
  0xf8   : > { %v1033_v6 = vadd.s32 %v1031_v2, %v1029_v63  ;;  %v1053_v7 = vsel %vm1052_vm13, 1, %v3939_v59  ;;  %v1295_v12 = vshll.u32 %v3934_v46, %v1289_v58  ;;  %v1296_v13 = vshrl.u32 %v3935_v48, %v1290_v1 }
  0xf9   : > { %v1055_v10 = vadd.s32 %v1053_v7, %v1051_v3  ;;  %v1298_v15 = vshll.u32 %v3935_v48, %v1289_v58  ;;  %v1299_v16 = vshrl.u32 %v3936_v50, %v1290_v1  ;;  %v1301_v18 = vshll.u32 %v3936_v50, %v1289_v58 }
  0xfa   : > { %v1034_v14 = vadd.s32 %v1033_v6, %v1023_v51  ;;  %v4283_v20 = vor.u32 %v1293_v11, %v1292_v9  ;;  %v4285_v21 = vor.u32 %v1296_v13, %v1295_v12  ;;  %v1302_v22 = vshrl.u32 %v3937_v52, %v1290_v1 }
  0xfb   : > { %v1056_v19 = vadd.s32 %v1055_v10, %v1045_v57  ;;  %v1300_v30 = vor.u32 %v1299_v16, %v1298_v15  ;;  %v1304_v31 = vshll.u32 %v3937_v52, %v1289_v58  ;;  %v1305_v32 = vshrl.u32 %v3938_v61, %v1290_v1 }
  0xfc   : > { %v4288_v27 = vadd.s32 %v1034_v14, %v1025_v53  ;;  %v1303_v38 = vor.u32 %v1302_v22, %v1301_v18  ;;  %vm1307_vm14 = vcmp.lt.s32.totalorder %v4271_v5, 1  ;;  %v1058_v40 = vmul.u32 %v4233_v36, %v4262_v29 }
  0xfd   : > { %v1057_v35 = vadd.s32 %v1056_v19, %v1047_v62  ;;  %v1306_v42 = vor.u32 %v1305_v32, %v1304_v31  ;;  %vm1309_vm1 = vcmp.lt.s32.totalorder %v4271_v5, 3  ;;  %vm1308_vm2 = vcmp.lt.s32.totalorder %v4271_v5, 2 }
  0xfe   : > { %vm1060_vm15 = vc.u32 %v4288_v27, %v4274_v8  ;;  %vm1310_vm3 = vcmp.lt.s32.totalorder %v4271_v5, 4  ;;  %v1315_v45 = vsel %vm1307_vm14, %v4283_v20, %v4285_v21  ;;  %v1319_v36 = vsel %vm1307_vm14, %v4285_v21, %v1300_v30 }
  0xff   : > { %v1061_v43 = vadd.s32 1, %v1057_v35  ;;  %v1316_v47 = vsel %vm1310_vm3, %v1303_v38, 920167782  ;;  %v1320_v29 = vsel %vm1310_vm3, %v1306_v42, 1326507024  ;;  %v1324_v49 = vand.u32 65535, %v4264_v33 }
 0x100   : > { %v1317_v53 = vsel %vm1309_vm1, %v1300_v30, %v1316_v47  ;;  %v1321_v55 = vsel %vm1309_vm1, %v1303_v38, %v1320_v29  ;;  %v1325_v56 = vshrl.u32 %v4264_v33, 16  ;;  %v1120_v3 = vand.u32 2147483647, %v4317_v39 }
 0x101   : > { %v1062_v51 = vsel %vm1060_vm15, %v1061_v43, %v1057_v35  ;;  %v1318_v58 = vsel %vm1308_vm2, %v1315_v45, %v1317_v53  ;;  %v1322_v60 = vsel %vm1308_vm2, %v1319_v36, %v1321_v55  ;;  %v1291_v6 = vshrl.u32 %v3933_v44, %v1290_v1 }
 0x102   : > { %v1063_v57 = vadd.s32 %v1062_v51, %v1058_v40  ;;  %v1326_v62 = vand.u32 65535, %v1322_v60  ;;  %v1327_v54 = vshrl.u32 %v1322_v60, 16  ;;  %v1348_v63 = vand.u32 65535, %v1318_v58 }
 0x103   : > { %v1349_v0 = vshrl.u32 %v1318_v58, 16  ;;  %v1123_v19 = vand.u32 2139095040, %v4317_v39  ;;  %v1312_v31 = vsel %vm1310_vm3, %v1300_v30, 2102212464 }
 0x104   : > { %v1064_v2 = vadd.s32 536870912, %v1063_v57  ;;  %v1328_v7 = vmul.u32 %v1326_v62, %v1324_v49  ;;  %v1329_v9 = vmul.u32 %v1327_v54, %v1324_v49  ;;  %v1330_v10 = vmul.u32 %v1326_v62, %v1325_v56 }
 0x105   : > { %v1350_v12 = vmul.u32 %v1348_v63, %v1324_v49  ;;  %v1351_v13 = vmul.u32 %v1349_v0, %v1324_v49  ;;  %v1352_v14 = vmul.u32 %v1348_v63, %v1325_v56  ;;  %v1331_v15 = vmul.u32 %v1327_v54, %v1325_v56 }
 0x106   : > { %v4325_v11 = vshrl.u32 %v1064_v2, 30  ;;  %v1332_v16 = vshll.u32 %v1329_v9, 16  ;;  %v1334_v18 = vshll.u32 %v1330_v10, 16  ;;  %v1353_v32 = vmul.u32 %v1349_v0, %v1325_v56 }
 0x107   : > { %v1354_v1 = vshll.u32 %v1351_v13, 16  ;;  %v1333_v35 = vshrl.u32 %v1329_v9, 16  ;;  %v1356_v40 = vshll.u32 %v1352_v14, 16  ;;  %v1124_v29 = vshrl.u32 %v1123_v19, 23 }
 0x108   : > { %v1066_v22 = vshll.u32 %v4325_v11, 30  ;;  %vm1336_vm4 = vc.u32 %v1328_v7, %v1332_v16  ;;  %v1338_v38 = vadd.s32 %v1332_v16, %v1328_v7  ;;  %v1355_v55 = vshrl.u32 %v1351_v13, 16 }
 0x109   : > { %v1337_v43 = vsel %vm1336_vm4, 1, %v3939_v59  ;;  %vm1358_vm5 = vc.u32 %v1350_v12, %v1354_v1  ;;  %v1360_v45 = vadd.s32 %v1354_v1, %v1350_v12  ;;  %v3502_v56 = vadd.s32 4294967169, %v1124_v29 }
 0x10a   : > { %v4331_v42 = vsub.s32 %v1063_v57, %v1066_v22  ;;  %v1339_v47 = vadd.s32 %v1337_v43, %v1331_v15  ;;  %vm1340_vm6 = vc.u32 %v1338_v38, %v1334_v18  ;;  %v1359_v36 = vsel %vm1358_vm5, 1, %v3939_v59 }
 0x10b   : > { %v1341_v49 = vsel %vm1340_vm6, 1, %v3939_v59  ;;  %v1361_v51 = vadd.s32 %v1359_v36, %v1353_v32  ;;  %vm1362_vm8 = vc.u32 %v1360_v45, %v1356_v40  ;;  %v1335_v58 = vshrl.u32 %v1330_v10, 16 }
 0x10c   : > { %vm1068_vm7 = vcmp.lt.s32.totalorder %v4331_v42, 0  ;;  %v1069_v30 = vsub.s32 0, %v4331_v42  ;;  %v1343_v53 = vadd.s32 %v1341_v49, %v1339_v47  ;;  %v1363_v60 = vsel %vm1362_vm8, 1, %v3939_v59  ;;  %v4365_v49 = vpop.f32.mrf.mxu1 }
 0x10d   : > { %v1127_v62 = vand.u32 8388607, %v1120_v3  ;;  %v1365_v0 = vadd.s32 %v1363_v60, %v1361_v51  ;;  %v1130_v2 = vadd.s32 1, %v3502_v56  ;;  %v1311_v7 = vsel %vm1307_vm14, %v1291_v6, %v4283_v20 }
 0x10e   : > { %v1070_v57 = vsel %vm1068_vm7, %v1069_v30, %v4331_v42  ;;  %v1344_v63 = vadd.s32 %v1343_v53, %v1333_v35  ;;  %v1313_v9 = vsel %vm1309_vm1, %v4285_v21, %v1312_v31  ;;  %v1357_v12 = vshrl.u32 %v1352_v14, 16 }
 0x10f   : > { %v1071_v54 = vclz %v1070_v57  ;;  %v1366_v15 = vadd.s32 %v1365_v0, %v1355_v55  ;;  %vm1131_vm9 = vcmp.gt.s32.totalorder %v1130_v2, 0  ;;  %v4350_v16 = vadd.s32 %v1360_v45, %v1356_v40 }
 0x110   : > { %v4348_v10 = vadd.s32 %v1344_v63, %v1335_v58  ;;  %v1128_v18 = vor.u32 8388608, %v1127_v62  ;;  %v1132_v19 = vsel %vm1131_vm9, %v1130_v2, 0  ;;  %v1314_v22 = vsel %vm1308_vm2, %v1311_v7, %v1313_v9 }
 0x111   : > { %v3500_v13 = vadd.s32 4294967294, %v1071_v54  ;;  %v1367_v32 = vadd.s32 %v1366_v15, %v1357_v12  ;;  %v1134_v21 = vand.u32 31, %v1132_v19  ;;  %v1368_v31 = vmul.u32 %v4264_v33, %v1314_v22 }
 0x112   : > { %vm1370_vm11 = vc.u32 %v4348_v10, %v4350_v16  ;;  %v4357_v1 = vshrl.u32 %v1132_v19, 5  ;;  %v4359_v38 = vshll.u32 %v1128_v18, 8  ;;  %v1059_v56 = vadd.s32 %v4274_v8, %v4288_v27 }
 0x113   : > { %vm3501_vm10 = vcmp.lt.s32.totalorder %v3500_v13, 0  ;;  %v1371_v14 = vadd.s32 1, %v1367_v32  ;;  %v1135_v35 = vsub.s32 32, %v1134_v21  ;;  %v1137_v5 = vshll.u32 %v3933_v44, %v1134_v21 }
 0x114   : > { %v1074_v20 = vsel %vm3501_vm10, 0, %v3500_v13  ;;  %v1140_v29 = vshll.u32 %v3934_v46, %v1134_v21  ;;  %v1143_v33 = vshll.u32 %v3935_v48, %v1134_v21  ;;  %v1146_v53 = vshll.u32 %v3936_v50, %v1134_v21 }
 0x115   : > { %v1079_v6 = vsub.s32 4294967266, %v1074_v20  ;;  %v1075_v40 = vsub.s32 32, %v1074_v20  ;;  %v1372_v45 = vsel %vm1370_vm11, %v1371_v14, %v1367_v32  ;;  %v1138_v36 = vshrl.u32 %v3934_v46, %v1135_v35 }
 0x116   : > { %v1373_v47 = vadd.s32 %v1372_v45, %v1368_v31  ;;  %v1141_v30 = vshrl.u32 %v3935_v48, %v1135_v35  ;;  %v1144_v51 = vshrl.u32 %v3936_v50, %v1135_v35  ;;  %v1147_v55 = vshrl.u32 %v3937_v52, %v1135_v35 }
 0x117   : > { %v1080_v43 = vadd.s32 127, %v1079_v6  ;;  %v1139_v58 = vor.u32 %v1138_v36, %v1137_v5  ;;  %v1433_v0 = vand.u32 2139095040, %v4365_v49  ;;  %v1149_v7 = vshll.u32 %v3937_v52, %v1134_v21 }
 0x118   : > { %v1374_v57 = vadd.s32 536870912, %v1373_v47  ;;  %v4373_v60 = vor.u32 %v1141_v30, %v1140_v29  ;;  %v1145_v54 = vor.u32 %v1144_v51, %v1143_v33  ;;  %v1148_v63 = vor.u32 %v1147_v55, %v1146_v53 }
 0x119   : > { %v1081_v62 = vshll.u32 %v1080_v43, 23  ;;  %v1150_v9 = vshrl.u32 %v3938_v61, %v1135_v35  ;;  %v1169_v12 = vand.u32 65535, %v4359_v38  ;;  %v1076_v13 = vshll.u32 %v4331_v42, %v1074_v20 }
 0x11a   : > { %v4376_v2 = vshrl.u32 %v1374_v57, 30  ;;  %v1077_v8 = vshrl.u32 %v1059_v56, %v1075_v40  ;;  %vm1152_vm12 = vcmp.lt.s32.totalorder %v4357_v1, 1  ;;  %v1170_v27 = vshrl.u32 %v4359_v38, 16 }
 0x11b   : > { %v1151_v18 = vor.u32 %v1150_v9, %v1149_v7  ;;  %vm1155_vm13 = vcmp.lt.s32.totalorder %v4357_v1, 4  ;;  %v1160_v19 = vsel %vm1152_vm12, %v1139_v58, %v4373_v60  ;;  %v1082_v22 = vor.u32 4788187, %v1081_v62 }
 0x11c   : > { %v1376_v15 = vshll.u32 %v4376_v2, 30  ;;  %vm1154_vm14 = vcmp.lt.s32.totalorder %v4357_v1, 3  ;;  %v1161_v42 = vsel %vm1155_vm13, %v1148_v63, 920167782  ;;  %v1164_v32 = vsel %vm1152_vm12, %v4373_v60, %v1145_v54 }
 0x11d   : > { %vm1153_vm15 = vcmp.lt.s32.totalorder %v4357_v1, 2  ;;  %v1162_v21 = vsel %vm1154_vm14, %v1145_v54, %v1161_v42  ;;  %v1165_v6 = vsel %vm1155_vm13, %v1151_v18, 1326507024  ;;  %v1078_v14 = vor.u32 %v1077_v8, %v1076_v13 }
 0x11e   : > { %v4395_v20 = vsub.s32 %v1373_v47, %v1376_v15  ;;  %v1163_v31 = vsel %vm1153_vm15, %v1160_v19, %v1162_v21  ;;  %v1166_v40 = vsel %vm1154_vm14, %v1148_v63, %v1165_v6  ;;  %v1434_v43 = vshrl.u32 %v1433_v0, 23 }
 0x11f   : > { %v1167_v5 = vsel %vm1153_vm15, %v1164_v32, %v1166_v40  ;;  %v1193_v47 = vand.u32 65535, %v1163_v31  ;;  %v1083_v36 = vand.u32 2147483647, %v1082_v22  ;;  %v1194_v33 = vshrl.u32 %v1163_v31, 16 }
 0x120   : > { %vm1378_vm1 = vcmp.lt.s32.totalorder %v4395_v20, 0  ;;  %v1379_v45 = vsub.s32 0, %v4395_v20  ;;  %v1171_v29 = vand.u32 65535, %v1167_v5  ;;  %v1172_v30 = vshrl.u32 %v1167_v5, 16 }
 0x121   : > { %v1136_v53 = vshrl.u32 %v3933_v44, %v1135_v35  ;;  %v1197_v55 = vmul.u32 %v1193_v47, %v1170_v27  ;;  %v1430_v56 = vand.u32 2147483647, %v4365_v49  ;;  %v1085_v57 = vcvt.s32.f32 %v1078_v14 }
 0x122   : > { %v1380_v51 = vsel %vm1378_vm1, %v1379_v45, %v4395_v20  ;;  %v1174_v63 = vmul.u32 %v1172_v30, %v1169_v12  ;;  %v3508_v0 = vadd.s32 4294967169, %v1434_v43  ;;  %v1157_v9 = vsel %vm1155_vm13, %v1145_v54, 2102212464 }
 0x123   : > { %v1381_v62 = vclz %v1380_v51  ;;  %v1156_v7 = vsel %vm1152_vm12, %v1136_v53, %v1139_v58  ;;  %v1175_v13 = vmul.u32 %v1171_v29, %v1170_v27  ;;  %v1196_v8 = vmul.u32 %v1194_v33, %v1169_v12 }
 0x124   : > { %v1086_v15 = vmul.f32 %v1085_v57, %v1083_v36  ;;  %v1173_v19 = vmul.u32 %v1171_v29, %v1169_v12  ;;  %v1177_v22 = vshll.u32 %v1174_v63, 16  ;;  %v1176_v35 = vmul.u32 %v1172_v30, %v1170_v27 }
 0x125   : > { %v3506_v18 = vadd.s32 4294967294, %v1381_v62  ;;  %v1195_v42 = vmul.u32 %v1193_v47, %v1169_v12  ;;  %v1199_v32 = vshll.u32 %v1196_v8, 16  ;;  %v1201_v21 = vshll.u32 %v1197_v55, 16 }
 0x126   : > { %v1179_v6 = vshll.u32 %v1175_v13, 16  ;;  %vm1181_vm3 = vc.u32 %v1173_v19, %v1177_v22  ;;  %v1183_v14 = vadd.s32 %v1177_v22, %v1173_v19  ;;  %vm967_vm4 = vcmp.lt.s32.totalorder %v4223_v25, 0 }
 0x127   : > { %vm3507_vm2 = vcmp.lt.s32.totalorder %v3506_v18, 0  ;;  %v1182_v31 = vsel %vm1181_vm3, 1, %v3939_v59  ;;  %vm1203_vm5 = vc.u32 %v1195_v42, %v1199_v32  ;;  %v1205_v54 = vadd.s32 %v1199_v32, %v1195_v42 }
 0x128   : > { %v1384_v58 = vsel %vm3507_vm2, 0, %v3506_v18  ;;  %v1158_v43 = vsel %vm1154_vm14, %v4373_v60, %v1157_v9  ;;  %v1184_v45 = vadd.s32 %v1182_v31, %v1176_v35  ;;  %v1198_v12 = vmul.u32 %v1194_v33, %v1170_v27 }
 0x129   : > { %v1389_v40 = vsub.s32 4294967266, %v1384_v58  ;;  %v1385_v5 = vsub.s32 32, %v1384_v58  ;;  %vm1185_vm6 = vc.u32 %v1183_v14, %v1179_v6  ;;  %v1204_v47 = vsel %vm1203_vm5, 1, %v3939_v59 }
 0x12a   : > { %vm1207_vm7 = vc.u32 %v1205_v54, %v1201_v21  ;;  %v1369_v36 = vadd.s32 %v4350_v16, %v4348_v10  ;;  %v1186_v30 = vsel %vm1185_vm6, 1, %v3939_v59  ;;  %v1206_v51 = vadd.s32 %v1204_v47, %v1198_v12  ;;  %v2290_v47 = vld [vmem:[#allocation5 + $0xe8] sm:$0xff] }
 0x12b   : > { %v1390_v29 = vadd.s32 127, %v1389_v40  ;;  %v1178_v53 = vshrl.u32 %v1174_v63, 16  ;;  %v1188_v57 = vadd.s32 %v1186_v30, %v1184_v45  ;;  %v1208_v62 = vsel %vm1207_vm7, 1, %v3939_v59 }
 0x12c   : > { %v1440_v18 = vadd.s32 1, %v3508_v0  ;;  %v1087_v60 = vxor.u32 2147483648, %v1086_v15  ;;  %v1159_v27 = vsel %vm1153_vm15, %v1156_v7, %v1158_v43  ;;  %v1200_v33 = vshrl.u32 %v1196_v8, 16 }
 0x12d   : > { %v1210_v9 = vadd.s32 %v1208_v62, %v1206_v51  ;;  %v1387_v19 = vshrl.u32 %v1369_v36, %v1385_v5  ;;  %v1180_v22 = vshrl.u32 %v1175_v13, 16  ;;  %v1189_v35 = vadd.s32 %v1188_v57, %v1178_v53  ;;  %v2289_v5 = vld [vmem:[#allocation5 + $0xe0] sm:$0xff]  ;;  %v2287_v62 = vld [vmem:[#allocation5 + $0xd0] sm:$0xff] }
 0x12e   : > { %vm1441_vm8 = vcmp.gt.s32.totalorder %v1440_v18, 0  ;;  %v1391_v10 = vshll.u32 %v1390_v29, 23  ;;  %v1202_v16 = vshrl.u32 %v1197_v55, 16  ;;  %v1386_v63 = vshll.u32 %v4395_v20, %v1384_v58  ;;  %v2292_v58 = vld [vmem:[#allocation5 + $0xf8] sm:$0xff] }
 0x12f   : > { %v1211_v42 = vadd.s32 %v1210_v9, %v1200_v33  ;;  %v1442_v32 = vsel %vm1441_vm8, %v1440_v18, 0  ;;  %v4430_v6 = vadd.s32 %v1189_v35, %v1180_v22  ;;  %v4432_v14 = vadd.s32 %v1205_v54, %v1201_v21  ;;  %2374 = vmatpush.msra.mxu0 %v2292_v58  ;;  %v2288_v18 = vld [vmem:[#allocation5 + $0xd8] sm:$0xff]  ;;  %v2285_v22 = vld [vmem:[#allocation5 + $0xc0] sm:$0xff]  ;;  %v2286_v35 = vld [vmem:[#allocation5 + $0xc8] sm:$0xff] }
 0x130   : > { %v1444_v0 = vand.u32 31, %v1442_v32  ;;  %vm4436_vm9 = vcmp.le.f32.partialorder %v965_v26, 0.7853982  ;;  %v1088_v7 = vsel %vm967_vm4, %v1087_v60, %v1086_v15  ;;  %v1213_v55 = vmul.u32 %v4359_v38, %v1159_v27  ;;  %v2291_v26 = vld [vmem:[#allocation5 + $0xf0] sm:$0xff]  ;;  %v2282_v58 = vld [vmem:[#allocation5 + $0xa8] sm:$0xff] }
 0x131   : > { %v1212_v13 = vadd.s32 %v1211_v42, %v1202_v16  ;;  %v4443_v8 = vor.u32 %v1387_v19, %v1386_v63  ;;  %vm1215_vm10 = vc.u32 %v4430_v6, %v4432_v14  ;;  %v1437_v20 = vand.u32 8388607, %v1430_v56  ;;  %2328 = vmatpush.msra.mxu2 %v2291_v26  ;;  %2375 = vmatpush.msra.mxu0 %v2290_v47  ;;  %v2283_v63 = vld [vmem:[#allocation5 + $0xb0] sm:$0xff]  ;;  %v2281_v26 = vld [vmem:[#allocation5 + $0xa0] sm:$0xff]  ;;  %v2280_v47 = vld [vmem:[#allocation5 + $0x98] sm:$0xff] }
 0x132   : > { %v4449_v21 = vsub.s32 32, %v1444_v0  ;;  %v1392_v31 = vor.u32 4788187, %v1391_v10  ;;  %v1447_v40 = vshll.u32 %v3933_v44, %v1444_v0  ;;  %v1450_v15 = vshll.u32 %v3934_v46, %v1444_v0 }
 0x133   : > { %v1216_v54 = vadd.s32 1, %v1212_v13  ;;  %v1453_v45 = vshll.u32 %v3935_v48, %v1444_v0  ;;  %v4463_v29 = vshrl.u32 %v1442_v32, 5  ;;  %v1456_v30 = vshll.u32 %v3936_v50, %v1444_v0  ;;  %2329 = vmatpush.msra.mxu2 %v2289_v5  ;;  %2376 = vmatpush.msra.mxu0 %v2288_v18  ;;  %v2279_v5 = vld [vmem:[#allocation5 + $0x90] sm:$0xff] }
 0x134   : > { %v1448_v38 = vshrl.u32 %v3934_v46, %v4449_v21  ;;  %v1451_v43 = vshrl.u32 %v3935_v48, %v4449_v21  ;;  %v1454_v12 = vshrl.u32 %v3936_v50, %v4449_v21  ;;  %v1457_v46 = vshrl.u32 %v3937_v52, %v4449_v21 }
 0x135   : > { %v1217_v36 = vsel %vm1215_vm10, %v1216_v54, %v1212_v13  ;;  %v1438_v48 = vor.u32 8388608, %v1437_v20  ;;  %v1459_v33 = vshll.u32 %v3937_v52, %v1444_v0  ;;  %v1460_v50 = vshrl.u32 %v3938_v61, %v4449_v21  ;;  %2330 = vmatpush.msra.mxu2 %v2287_v62  ;;  %2377 = vmatpush.msra.mxu0 %v2286_v35  ;;  %v2284_v0 = vld [vmem:[#allocation5 + $0xb8] sm:$0xff] }
 0x136   : > { %v1218_v51 = vadd.s32 %v1217_v36, %v1213_v55  ;;  %v4468_v53 = vor.u32 %v1448_v38, %v1447_v40  ;;  %v4470_v57 = vor.u32 %v1451_v43, %v1450_v15  ;;  %v4472_v60 = vor.u32 %v1454_v12, %v1453_v45 }
 0x137   : > { %v1458_v27 = vor.u32 %v1457_v46, %v1456_v30  ;;  %v4480_v9 = vsel %vm4436_vm9, %v4223_v25, %v1088_v7  ;;  %v1393_v10 = vand.u32 2147483647, %v1392_v31  ;;  %v1395_v16 = vcvt.s32.f32 %v4443_v8  ;;  %2331 = vmatpush.msra.mxu2 %v2285_v22  ;;  %2378 = vmatpush.msra.mxu0 %v2284_v0 }
 0x138   : > { %v1219_v19 = vadd.s32 536870912, %v1218_v51  ;;  %v1461_v42 = vor.u32 %v1460_v50, %v1459_v33  ;;  %vm1462_vm11 = vcmp.lt.s32.totalorder %v4463_v29, 1  ;;  %vm1465_vm12 = vcmp.lt.s32.totalorder %v4463_v29, 4  ;;  %v2278_v33 = vld [vmem:[#allocation5 + $0x88] sm:$0xff] }
 0x139   : > { %v1470_v61 = vsel %vm1462_vm11, %v4468_v53, %v4470_v57  ;;  %v4491_v32 = vshll.u32 %v1438_v48, 8  ;;  %vm1464_vm13 = vcmp.lt.s32.totalorder %v4463_v29, 3  ;;  %v1471_v7 = vsel %vm1465_vm12, %v1458_v27, 920167782  ;;  %2332 = vmatpush.msra.mxu2 %v2283_v63  ;;  %2379 = vmatpush.msra.mxu0 %v2282_v58  ;;  %v2317_v58 = vld [vmem:[#allocation5 + $0x1c0] sm:$0xff] }
 0x13a   : > { %v4484_v52 = vshrl.u32 %v1219_v19, 30  ;;  %v1474_v13 = vsel %vm1462_vm11, %v4470_v57, %v4472_v60  ;;  %v1475_v55 = vsel %vm1465_vm12, %v1461_v42, 1326507024  ;;  %vm1463_vm14 = vcmp.lt.s32.totalorder %v4463_v29, 2  ;;  %v2275_v42 = vld [vmem:[#allocation5 + $0x70] sm:$0xff]  ;;  %v2306_v29 = vld [vmem:[#allocation5 + $0x168] sm:$0xff] }
 0x13b   : > { %v1472_v20 = vsel %vm1464_vm13, %v4472_v60, %v1471_v7  ;;  %v4509_v31 = vmul.f32 %v4480_v9, %v4480_v9  ;;  %v4511_v54 = vmul.f32 %v1395_v16, %v1393_v10  ;;  %v1476_v15 = vsel %vm1464_vm13, %v1458_v27, %v1475_v55  ;;  %2333 = vmatpush.msra.mxu2 %v2281_v26  ;;  %v2277_v27 = vld [vmem:[#allocation5 + $0x80] sm:$0xff] }
 0x13c   : > { %v1221_v8 = vshll.u32 %v4484_v52, 30  ;;  %v1473_v40 = vsel %vm1463_vm14, %v1470_v61, %v1472_v20  ;;  %v1477_v43 = vsel %vm1463_vm14, %v1474_v13, %v1476_v15  ;;  %v1480_v45 = vshrl.u32 %v4491_v32, 16  ;;  %2380 = vmatpush.msra.mxu0 %v2280_v47  ;;  %v2319_v61 = vld [vmem:[#allocation5 + $0x1d0] sm:$0xff]  ;;  %v2320_v13 = vld [vmem:[#allocation5 + $0x1d8] sm:$0xff]  ;;  %v2273_v26 = vld [vmem:[#allocation5 + $0x60] sm:$0xff] }
 0x13d   : > { %v1503_v12 = vand.u32 65535, %v1473_v40  ;;  %v1479_v36 = vand.u32 65535, %v4491_v32  ;;  %v1481_v30 = vand.u32 65535, %v1477_v43  ;;  %v1482_v46 = vshrl.u32 %v1477_v43, 16  ;;  %2334 = vmatpush.msra.mxu2 %v2279_v5  ;;  %2353 = vmatpush.msrb.mxu3 %v2319_v61  ;;  %v2318_v5 = vld [vmem:[#allocation5 + $0x1c8] sm:$0xff] }
 0x13e   : > { %v4517_v38 = vsub.s32 %v1218_v51, %v1221_v8  ;;  %v1504_v48 = vshrl.u32 %v1473_v40, 16  ;;  %v4525_v62 = vadd.s32 %v4432_v14, %v4430_v6  ;;  %vm1277_vm1 = vcmp.lt.s32.totalorder %v4231_v34, 0  ;;  %2381 = vmatpush.msra.mxu0 %v2278_v33  ;;  %2399 = vmatpush.msrb.mxu1 %v2320_v13  ;;  %v2270_v61 = vld [vmem:[#allocation5 + $0x48] sm:$0xff] }
 0x13f   : > { %v4529_v18 = vmul.u32 %v1503_v12, %v1480_v45  ;;  %v1397_v50 = vxor.u32 2147483648, %v4511_v54  ;;  %v4535_v19 = vshrl.u32 %v3933_v44, %v4449_v21  ;;  %v4537_v22 = vmul.u32 %v1482_v46, %v1479_v36  ;;  %2335 = vmatpush.msra.mxu2 %v2277_v27  ;;  %v2276_v44 = vld [vmem:[#allocation5 + $0x78] sm:$0xff]  ;;  %2354 = vmatpush.msrb.mxu3 %v2317_v58  ;;  %v2311_v58 = vld [vmem:[#allocation5 + $0x190] sm:$0xff] }
 0x140   : > { %vm1223_vm15 = vcmp.lt.s32.totalorder %v4517_v38, 0  ;;  %v1224_v51 = vsub.s32 0, %v4517_v38  ;;  %v4539_v6 = vmul.u32 %v1481_v30, %v1480_v45  ;;  %v4545_v35 = vsel %vm1465_vm12, %v4472_v60, 2102212464  ;;  %2382 = vmatpush.msra.mxu0 %v2276_v44  ;;  %2400 = vmatpush.msrb.mxu1 %v2318_v5 }
 0x141   : > { %v1505_v10 = vmul.u32 %v1503_v12, %v1479_v36  ;;  %v4547_v16 = vmul.u32 %v1504_v48, %v1479_v36  ;;  %v1483_v63 = vmul.u32 %v1481_v30, %v1479_v36  ;;  %v1486_v0 = vmul.u32 %v1482_v46, %v1480_v45  ;;  %2336 = vmatpush.msra.mxu2 %v2275_v42  ;;  %v2274_v12 = vld [vmem:[#allocation5 + $0x68] sm:$0xff]  ;;  %v2271_v46 = vld [vmem:[#allocation5 + $0x50] sm:$0xff]  ;;  %v2313_v42 = vld [vmem:[#allocation5 + $0x1a0] sm:$0xff] }
 0x142   : > { %v1225_v14 = vsel %vm1223_vm15, %v1224_v51, %v4517_v38  ;;  %v1487_v7 = vshll.u32 %v4537_v22, 16  ;;  %v1488_v55 = vshrl.u32 %v4537_v22, 16  ;;  %v1508_v8 = vmul.u32 %v1504_v48, %v1480_v45  ;;  %2383 = vmatpush.msra.mxu0 %v2274_v12  ;;  %v2315_v48 = vld [vmem:[#allocation5 + $0x1b0] sm:$0xff]  ;;  %v2272_v51 = vld [vmem:[#allocation5 + $0x58] sm:$0xff] }
 0x143   : > { %v1226_v21 = vclz %v1225_v14  ;;  %v1509_v60 = vshll.u32 %v4547_v16, 16  ;;  %v1511_v20 = vshll.u32 %v4529_v18, 16  ;;  %v1489_v15 = vshll.u32 %v4539_v6, 16  ;;  %2337 = vmatpush.msra.mxu2 %v2273_v26  ;;  %2355 = vmatpush.msrb.mxu3 %v2315_v48  ;;  %v2267_v26 = vld [vmem:[#allocation5 + $0x30] sm:$0xff]  ;;  %v1612_v45 = vld [vmem:[#allocation2 + $0xd8] sm:$0xff] }
 0x144   : > { %vm1491_vm2 = vc.u32 %v1483_v63, %v1487_v7  ;;  %v1493_v43 = vadd.s32 %v1487_v7, %v1483_v63  ;;  %vm4556_vm3 = vcmp.le.f32.partialorder %v1275_v37, 0.7853982  ;;  %v1490_v47 = vshrl.u32 %v4539_v6, 16  ;;  %v2316_v37 = vld [vmem:[#allocation5 + $0x1b8] sm:$0xff]  ;;  %2384 = vmatpush.msra.mxu0 %v2272_v51  ;;  %v2314_v7 = vld [vmem:[#allocation5 + $0x1a8] sm:$0xff] }
 0x145   : > { %v3503_v40 = vadd.s32 4294967294, %v1226_v21  ;;  %v1492_v36 = vsel %vm1491_vm2, 1, %v3939_v59  ;;  %vm1513_vm5 = vc.u32 %v1505_v10, %v1509_v60  ;;  %v1515_v30 = vadd.s32 %v1509_v60, %v1505_v10  ;;  %2338 = vmatpush.msra.mxu2 %v2271_v46  ;;  %2401 = vmatpush.msrb.mxu1 %v2316_v37  ;;  %v2269_v10 = vld [vmem:[#allocation5 + $0x40] sm:$0xff]  ;;  %v2264_v37 = vld [vmem:[#allocation5 + $0x18] sm:$0xff] }
 0x146   : > { %v1494_v27 = vadd.s32 %v1492_v36, %v1486_v0  ;;  %vm1495_vm7 = vc.u32 %v1493_v43, %v1489_v15  ;;  %v1514_v33 = vsel %vm1513_vm5, 1, %v3939_v59  ;;  %v1510_v0 = vshrl.u32 %v4547_v16, 16  ;;  %2356 = vmatpush.msrb.mxu3 %v2313_v42  ;;  %2385 = vmatpush.msra.mxu0 %v2270_v61  ;;  %v2312_v36 = vld [vmem:[#allocation5 + $0x198] sm:$0xff]  ;;  %v2261_v42 = vld [vmem:[#allocation5] sm:$0xff] }
 0x147   : > { %vm3504_vm6 = vcmp.lt.s32.totalorder %v3503_v40, 0  ;;  %v1496_v6 = vsel %vm1495_vm7, 1, %v3939_v59  ;;  %v1516_v14 = vadd.s32 %v1514_v33, %v1508_v8  ;;  %vm1517_vm8 = vc.u32 %v1515_v30, %v1511_v20  ;;  %2339 = vmatpush.msra.mxu2 %v2269_v10  ;;  %2402 = vmatpush.msrb.mxu1 %v2314_v7  ;;  %v2305_v61 = vld [vmem:[#allocation5 + $0x160] sm:$0xff] }
 0x148   : > { %v1229_v22 = vsel %vm3504_vm6, 0, %v3503_v40  ;;  %v1498_v63 = vadd.s32 %v1496_v6, %v1494_v27  ;;  %v1398_v13 = vsel %vm1277_vm1, %v1397_v50, %v4511_v54  ;;  %v1518_v60 = vsel %vm1517_vm8, 1, %v3939_v59  ;;  %v2268_v40 = vld [vmem:[#allocation5 + $0x38] sm:$0xff]  ;;  %2357 = vmatpush.msrb.mxu3 %v2311_v58  ;;  %v2309_v50 = vld [vmem:[#allocation5 + $0x180] sm:$0xff]  ;;  %v2303_v58 = vld [vmem:[#allocation5 + $0x150] sm:$0xff] }
 0x149   : > { %v1230_v44 = vsub.s32 32, %v1229_v22  ;;  %v1234_v21 = vsub.s32 4294967266, %v1229_v22  ;;  %v1231_v8 = vshll.u32 %v4517_v38, %v1229_v22  ;;  %v1094_v16 = vmul.f32 -0.001358992, %v4509_v31  ;;  %2340 = vmatpush.msra.mxu2 %v2267_v26  ;;  %2386 = vmatpush.msra.mxu0 %v2268_v40  ;;  %v2304_v40 = vld [vmem:[#allocation5 + $0x158] sm:$0xff] }
 0x14a   : > { %v1499_v12 = vadd.s32 %v1498_v63, %v1488_v55  ;;  %v1520_v5 = vadd.s32 %v1518_v60, %v1516_v14  ;;  %v1466_v59 = vsel %vm1462_vm11, %v4535_v19, %v4468_v53  ;;  %v1468_v54 = vsel %vm1464_vm13, %v4470_v57, %v4545_v35  ;;  %2403 = vmatpush.msrb.mxu1 %v2312_v36  ;;  %v2266_v55 = vld [vmem:[#allocation5 + $0x28] sm:$0xff]  ;;  %v2263_v57 = vld [vmem:[#allocation5 + $0x10] sm:$0xff] }
 0x14b   : > { %v1232_v15 = vshrl.u32 %v4525_v62, %v1230_v44  ;;  %v1235_v43 = vadd.s32 127, %v1234_v21  ;;  %v1512_v38 = vshrl.u32 %v4529_v18, 16  ;;  %v2265_v62 = vld [vmem:[#allocation5 + $0x20] sm:$0xff]  ;;  %v1095_v46 = vadd.f32 0.041655596, %v1094_v16  ;;  %2358 = vmatpush.msrb.mxu3 %v2309_v50  ;;  %v2310_v53 = vld [vmem:[#allocation5 + $0x188] sm:$0xff]  ;;  %2387 = vmatpush.msra.mxu0 %v2266_v55 }
 0x14c   : > { %v4585_v27 = vadd.s32 %v1499_v12, %v1490_v47  ;;  %v1521_v33 = vadd.s32 %v1520_v5, %v1510_v0  ;;  %2341 = vmatpush.msra.mxu2 %v2265_v62  ;;  %v4589_v19 = vadd.s32 %v1515_v30, %v1511_v20  ;;  %2404 = vmatpush.msrb.mxu1 %v2310_v53  ;;  %v2307_v35 = vld [vmem:[#allocation5 + $0x170] sm:$0xff]  ;;  %v1089_v22 = vsub.s32 4, %v4325_v11  ;;  %v2308_v30 = vld [vmem:[#allocation5 + $0x178] sm:$0xff]  ;;  %v2262_v44 = vld [vmem:[#allocation5 + $0x8] sm:$0xff] }
 0x14d   : > { %v1233_v48 = vor.u32 %v1232_v15, %v1231_v8  ;;  %v1236_v51 = vshll.u32 %v1235_v43, 23  ;;  %v1096_v6 = vmul.f32 %v1095_v46, %v4509_v31  ;;  %v1101_v47 = vmul.f32 -0.00019511016, %v4509_v31  ;;  %2359 = vmatpush.msrb.mxu3 %v2307_v35  ;;  %2388 = vmatpush.msra.mxu0 %v2264_v37  ;;  %v1644_v8 = vld [vmem:[#allocation2 + $0x1d8] sm:$0xff]  ;;  %v1641_v5 = vld [vmem:[#allocation2 + $0x1c0] sm:$0xff]  ;;  %v1642_v36 = vld [vmem:[#allocation2 + $0x1c8] sm:$0xff] }
 0x14e   : > { %v4597_v14 = vsel %vm4556_vm3, %v4231_v34, %v1398_v13  ;;  %v1469_v18 = vsel %vm1463_vm14, %v1466_v59, %v1468_v54  ;;  %v1522_v20 = vadd.s32 %v1521_v33, %v1512_v38  ;;  %2342 = vmatpush.msra.mxu2 %v2263_v57  ;;  %vm1525_vm10 = vc.u32 %v4585_v27, %v4589_v19  ;;  %v1643_v13 = vld [vmem:[#allocation2 + $0x1d0] sm:$0xff]  ;;  %v2301_v54 = vld [vmem:[#allocation5 + $0x140] sm:$0xff]  ;;  %v2302_v38 = vld [vmem:[#allocation5 + $0x148] sm:$0xff] }
 0x14f   : > { %v1237_v10 = vor.u32 4788187, %v1236_v51  ;;  %2405 = vmatpush.msrb.mxu1 %v2308_v30  ;;  %v1097_v21 = vadd.f32 -0.4999988, %v1096_v6  ;;  %v1240_v0 = vcvt.s32.f32 %v1233_v48  ;;  %2360 = vmatpush.msrb.mxu3 %v2305_v61  ;;  %v4605_v60 = vmul.f32 %v4597_v14, %v4597_v14  ;;  %v1639_v55 = vld [vmem:[#allocation2 + $0x1b0] sm:$0xff]  ;;  %v1640_v46 = vld [vmem:[#allocation2 + $0x1b8] sm:$0xff] }
 0x150   : > { %v1526_v7 = vadd.s32 1, %v1522_v20  ;;  %2343 = vmatpush.msra.mxu2 %v2261_v42  ;;  %v1523_v26 = vmul.u32 %v4491_v32, %v1469_v18  ;;  %2389 = vmatpush.msra.mxu0 %v2262_v44  ;;  %v1090_v16 = vsel %vm967_vm4, %v1089_v22, %v4325_v11  ;;  %v1102_v15 = vadd.f32 0.008332121, %v1101_v47  ;;  %v2299_v51 = vld [vmem:[#allocation5 + $0x130] sm:$0xff]  ;;  %v2300_v33 = vld [vmem:[#allocation5 + $0x138] sm:$0xff]  ;;  %v1637_v35 = vld [vmem:[#allocation2 + $0x1a0] sm:$0xff] }
 0x151   : > { %v1238_v63 = vand.u32 2147483647, %v1237_v10  ;;  %2406 = vmatpush.msrb.mxu1 %v2306_v29  ;;  %v1098_v32 = vmul.f32 %v1097_v21, %v4509_v31  ;;  %2361 = vmatpush.msrb.mxu3 %v2303_v58  ;;  %vm4618_vm4 = vcmp.le.f32.partialorder %v1120_v3, 0.7853982  ;;  %vm1122_vm11 = vcmp.lt.s32.totalorder %v4317_v39, 0  ;;  %v1638_v37 = vld [vmem:[#allocation2 + $0x1a8] sm:$0xff] }
 0x152   : > { %v1527_v12 = vsel %vm1525_vm10, %v1526_v7, %v1522_v20  ;;  %2451 = vmatpush.msrb.mxu2 %v1643_v13  ;;  %2497 = vmatpush.msrb.mxu0 %v1644_v8  ;;  %v1103_v62 = vmul.f32 %v1102_v15, %v4509_v31  ;;  %v4625_v53 = vsel %vm4436_vm9, 0, %v1090_v16  ;;  %v2297_v22 = vld [vmem:[#allocation5 + $0x120] sm:$0xff]  ;;  %v1404_v47 = vmul.f32 -0.001358992, %v4605_v60  ;;  %v2298_v18 = vld [vmem:[#allocation5 + $0x128] sm:$0xff]  ;;  %v1635_v20 = vld [vmem:[#allocation2 + $0x190] sm:$0xff] }
 0x153   : > { %v1241_v43 = vmul.f32 %v1240_v0, %v1238_v63  ;;  %v1528_v59 = vadd.s32 %v1527_v12, %v1523_v26  ;;  %2407 = vmatpush.msrb.mxu1 %v2304_v40  ;;  %2362 = vmatpush.msrb.mxu3 %v2301_v54  ;;  %v4629_v6 = vadd.f32 1.0, %v1098_v32  ;;  %v1636_v30 = vld [vmem:[#allocation2 + $0x198] sm:$0xff]  ;;  %v1411_v61 = vmul.f32 -0.00019511016, %v4605_v60  ;;  %v2295_v21 = vld [vmem:[#allocation5 + $0x110] sm:$0xff]  ;;  %v1634_v8 = vld [vmem:[#allocation2 + $0x188] sm:$0xff] }
 0x154   : > { %2452 = vmatpush.msrb.mxu2 %v1641_v5  ;;  %2498 = vmatpush.msrb.mxu0 %v1642_v36  ;;  %v1104_v3 = vadd.f32 -0.16666654, %v1103_v62  ;;  %v2296_v63 = vld [vmem:[#allocation5 + $0x118] sm:$0xff]  ;;  %v1789_v0 = vand.u32 3, %v4625_v53  ;;  %v1399_v7 = vsub.s32 4, %v4376_v2  ;;  %vm1108_vm9 = vweird.f32 %v4223_v25  ;;  %v2293_v40 = vld [vmem:[#allocation5 + $0x100] sm:$0xff] }
 0x155   : > { %v1242_v50 = vxor.u32 2147483648, %v1241_v43  ;;  %v1529_v48 = vadd.s32 536870912, %v1528_v59  ;;  %2408 = vmatpush.msrb.mxu1 %v2302_v38  ;;  %2363 = vmatpush.msrb.mxu3 %v2299_v51  ;;  %v1405_v29 = vadd.f32 0.041655596, %v1404_v47  ;;  %v2294_v16 = vld [vmem:[#allocation5 + $0x108] sm:$0xff]  ;;  %v1116_v5 = vxor.u32 2147483648, %v4629_v6 }
 0x156   : > { %2453 = vmatpush.msrb.mxu2 %v1639_v55  ;;  %2499 = vmatpush.msrb.mxu0 %v1640_v46  ;;  %v1105_v42 = vmul.f32 %v1104_v3, %v4509_v31  ;;  %v1633_v31 = vld [vmem:[#allocation2 + $0x180] sm:$0xff]  ;;  %v1615_v36 = vld [vmem:[#allocation2 + $0xf0] sm:$0xff]  ;;  %v1412_v54 = vadd.f32 0.008332121, %v1411_v61  ;;  %v1244_v38 = vsub.s32 4, %v4484_v52  ;;  %vm1790_vm12 = vcmp.lt.s32.totalorder %v1789_v0, 2 }
 0x157   : > { %v1243_v57 = vsel %vm1122_vm11, %v1242_v50, %v1241_v43  ;;  %v4637_v1 = vshrl.u32 %v1529_v48, 30  ;;  %2409 = vmatpush.msrb.mxu1 %v2300_v33  ;;  %2364 = vmatpush.msrb.mxu3 %v2297_v22  ;;  %v1406_v15 = vmul.f32 %v1405_v29, %v4605_v60  ;;  %v1631_v32 = vld [vmem:[#allocation2 + $0x170] sm:$0xff]  ;;  %v1616_v50 = vld [vmem:[#allocation2 + $0xf8] sm:$0xff]  ;;  %vm1791_vm14 = vcmp.eq.s32.totalorder %v1789_v0, 0  ;;  %v1613_v48 = vld [vmem:[#allocation2 + $0xe0] sm:$0xff] }
 0x158   : > { %v4635_v10 = vsel %vm4618_vm4, %v4317_v39, %v1243_v57  ;;  %2454 = vmatpush.msrb.mxu2 %v1637_v35  ;;  %2500 = vmatpush.msrb.mxu0 %v1638_v37  ;;  %v1106_v26 = vadd.f32 1.0, %v1105_v42  ;;  %v1632_v55 = vld [vmem:[#allocation2 + $0x178] sm:$0xff]  ;;  %v1629_v51 = vld [vmem:[#allocation2 + $0x160] sm:$0xff]  ;;  %vm1794_vm15 = vcmp.eq.s32.totalorder %v1789_v0, 2  ;;  %v1614_v3 = vld [vmem:[#allocation2 + $0xe8] sm:$0xff]  ;;  %vm1418_vm6 = vweird.f32 %v4231_v34 }
 0x159   : > { %v4643_v44 = vmul.f32 %v4635_v10, %v4635_v10  ;;  %v1531_v13 = vshll.u32 %v4637_v1, 30  ;;  %2410 = vmatpush.msrb.mxu1 %v2298_v18  ;;  %2365 = vmatpush.msrb.mxu3 %v2295_v21  ;;  %v1630_v57 = vld [vmem:[#allocation2 + $0x168] sm:$0xff]  ;;  %v1407_v35 = vadd.f32 -0.4999988, %v1406_v15  ;;  %v1611_v21 = vld [vmem:[#allocation2 + $0xd0] sm:$0xff]  ;;  %v1628_v29 = vld [vmem:[#allocation2 + $0x158] sm:$0xff] }
 0x15a   : > { %2455 = vmatpush.msrb.mxu2 %v1635_v20  ;;  %2501 = vmatpush.msrb.mxu0 %v1636_v30  ;;  %v4654_v12 = vmul.f32 %v1106_v26, %v4480_v9  ;;  %v1245_v20 = vsel %vm1122_vm11, %v1244_v38, %v4484_v52  ;;  %v1609_v0 = vld [vmem:[#allocation2 + $0xc0] sm:$0xff]  ;;  %v1610_v15 = vld [vmem:[#allocation2 + $0xc8] sm:$0xff]  ;;  %v2594_v25 = vld [vmem:[#allocation7 + $0x1f0] sm:$0xff] }
 0x15b   : > { %v1256_v58 = vmul.f32 -0.00019511016, %v4643_v44  ;;  %v4651_v43 = vsub.s32 %v1528_v59, %v1531_v13  ;;  %2411 = vmatpush.msrb.mxu1 %v2296_v63  ;;  %v1400_v59 = vsel %vm1277_vm1, %v1399_v7, %v4376_v2  ;;  %2366 = vmatpush.msrb.mxu3 %v2293_v40  ;;  %v1413_v2 = vmul.f32 %v1412_v54, %v4605_v60  ;;  %v1627_v63 = vld [vmem:[#allocation2 + $0x150] sm:$0xff]  ;;  %v1625_v26 = vld [vmem:[#allocation2 + $0x140] sm:$0xff]  ;;  %v2589_v34 = vld [vmem:[#allocation7 + $0x1c8] sm:$0xff] }
 0x15c   : > { %2456 = vmatpush.msrb.mxu2 %v1633_v31  ;;  %2502 = vmatpush.msrb.mxu0 %v1634_v8  ;;  %v1113_v46 = vxor.u32 2147483648, %v4654_v12  ;;  %v1796_v47 = vsel %vm1794_vm15, %v1116_v5, %v4654_v12  ;;  %v4677_v18 = vsel %vm4556_vm3, 0, %v1400_v59  ;;  %v1408_v13 = vmul.f32 %v1407_v35, %v4605_v60 }
 0x15d   : > { %v1257_v62 = vadd.f32 0.008332121, %v1256_v58  ;;  %vm1533_vm13 = vcmp.lt.s32.totalorder %v4651_v43, 0  ;;  %v1534_v9 = vsub.s32 0, %v4651_v43  ;;  %2412 = vmatpush.msrb.mxu1 %v2294_v16  ;;  %2426 = vmatpush.msra.mxu3 %v1615_v36  ;;  %v1414_v31 = vadd.f32 -0.16666654, %v1413_v2 }
 0x15e   : > { %2457 = vmatpush.msrb.mxu2 %v1631_v32  ;;  %v1793_v22 = vsel %vm1791_vm14, %v4629_v6, %v1113_v46  ;;  %2503 = vmatpush.msrb.mxu0 %v1632_v55  ;;  %v4688_v58 = vand.u32 3, %v4677_v18  ;;  %v1249_v40 = vmul.f32 -0.001358992, %v4643_v44  ;;  %v1247_v16 = vsel %vm4618_vm4, 0, %v1245_v20  ;;  %v1626_v36 = vld [vmem:[#allocation2 + $0x148] sm:$0xff] }
 0x15f   : > { %v1258_v33 = vmul.f32 %v1257_v62, %v4643_v44  ;;  %v1535_v37 = vsel %vm1533_vm13, %v1534_v9, %v4651_v43  ;;  %2472 = vmatpush.msra.mxu1 %v1616_v50  ;;  %v1797_v61 = vsel %vm1790_vm12, %v1793_v22, %v1796_v47  ;;  %2427 = vmatpush.msra.mxu3 %v1613_v48  ;;  %v4693_v32 = vadd.f32 1.0, %v1408_v13  ;;  %v1607_v62 = vld [vmem:[#allocation2 + $0xb0] sm:$0xff]  ;;  %v1608_v9 = vld [vmem:[#allocation2 + $0xb8] sm:$0xff]  ;;  %v1622_v22 = vld [vmem:[#allocation2 + $0x128] sm:$0xff] }
 0x160   : > { %v1536_v42 = vclz %v1535_v37  ;;  %2458 = vmatpush.msrb.mxu2 %v1629_v51  ;;  %v1798_v7 = vsel %vm1108_vm9, nan, %v1797_v61  ;;  %2504 = vmatpush.msrb.mxu0 %v1630_v57  ;;  %v1415_v54 = vmul.f32 %v1414_v31, %v4605_v60  ;;  %v1623_v50 = vld [vmem:[#allocation2 + $0x130] sm:$0xff]  ;;  %v1524_v55 = vadd.s32 %v4589_v19, %v4585_v27  ;;  %v1624_v48 = vld [vmem:[#allocation2 + $0x138] sm:$0xff]  ;;  %v1605_v60 = vld [vmem:[#allocation2 + $0xa0] sm:$0xff] }
 0x161   : > { %v1259_v30 = vadd.f32 -0.16666654, %v1258_v33  ;;  %2473 = vmatpush.msra.mxu1 %v1614_v3  ;;  %2344 = vmatmul.f32.vlgmr.msra.gmra.mxu2 %v1798_v7  ;;  %v1250_v51 = vadd.f32 0.041655596, %v1249_v40  ;;  %vm2098_vm2 = vcmp.lt.s32.totalorder %v4688_v58, 2  ;;  %v1621_v57 = vld [vmem:[#allocation2 + $0x120] sm:$0xff]  ;;  %vm1263_vm14 = vweird.f32 %v4317_v39 }
 0x162   : > { %v3509_v8 = vadd.s32 4294967294, %v1536_v42  ;;  %2390 = vmatmul.f32.vlgmr.msra.gmra.mxu0 %v1798_v7  ;;  %2428 = vmatpush.msra.mxu3 %v1611_v21  ;;  %v1416_v11 = vadd.f32 1.0, %v1415_v54  ;;  %v1264_v35 = vadd.s32 3, %v1247_v16  ;;  %v1426_v19 = vxor.u32 2147483648, %v4693_v32  ;;  %v1606_v37 = vld [vmem:[#allocation2 + $0xa8] sm:$0xff]  ;;  %v1619_v61 = vld [vmem:[#allocation2 + $0x110] sm:$0xff] }
 0x163   : > { %v1260_v52 = vmul.f32 %v1259_v30, %v4643_v44  ;;  %2459 = vmatpush.msrb.mxu2 %v1627_v63  ;;  %2474 = vmatpush.msra.mxu1 %v1612_v45  ;;  %v1251_v47 = vmul.f32 %v1250_v51, %v4643_v44  ;;  %vm2099_vm3 = vcmp.eq.s32.totalorder %v4688_v58, 0  ;;  %vm2102_vm5 = vcmp.eq.s32.totalorder %v4688_v58, 2  ;;  %v1604_v21 = vld [vmem:[#allocation2 + $0x98] sm:$0xff]  ;;  %v1617_v13 = vld [vmem:[#allocation2 + $0x100] sm:$0xff]  ;;  %v1618_v54 = vld [vmem:[#allocation2 + $0x108] sm:$0xff] }
 0x164   : > { %vm3510_vm1 = vcmp.lt.s32.totalorder %v3509_v8, 0  ;;  %2505 = vmatpush.msrb.mxu0 %v1628_v29  ;;  %2429 = vmatpush.msra.mxu3 %v1609_v0  ;;  %v4703_v27 = vmul.f32 %v1416_v11, %v4597_v14  ;;  %v1620_v63 = vld [vmem:[#allocation2 + $0x118] sm:$0xff]  ;;  %v1943_v31 = vand.u32 3, %v1247_v16  ;;  %vm2321_vm4 = vcmask 916480   ;;  %v1593_v39 = vld [vmem:[#allocation2 + $0x40] sm:$0xff] }
 0x165   : > { %v1261_v38 = vadd.f32 1.0, %v1260_v52  ;;  %v1539_v59 = vsel %vm3510_vm1, 0, %v3509_v8  ;;  %2460 = vmatpush.msrb.mxu2 %v1625_v26  ;;  %2475 = vmatpush.msra.mxu1 %v1610_v15  ;;  %v1252_v7 = vadd.f32 -0.4999988, %v1251_v47  ;;  %v1265_v52 = vand.u32 3, %v1264_v35  ;;  %v1596_v47 = vld [vmem:[#allocation2 + $0x58] sm:$0xff] }
 0x166   : > { %v1540_v33 = vsub.s32 32, %v1539_v59  ;;  %v1544_v3 = vsub.s32 4294967266, %v1539_v59  ;;  %2506 = vmatpush.msrb.mxu0 %v1626_v36  ;;  %2430 = vmatpush.msra.mxu3 %v1607_v62  ;;  %v1541_v20 = vshll.u32 %v4651_v43, %v1539_v59  ;;  %v1423_v14 = vxor.u32 2147483648, %v4703_v27  ;;  %v1601_v43 = vld [vmem:[#allocation2 + $0x80] sm:$0xff]  ;;  %v1602_v36 = vld [vmem:[#allocation2 + $0x88] sm:$0xff]  ;;  %v1600_v59 = vld [vmem:[#allocation2 + $0x78] sm:$0xff] }
 0x167   : > { %v4700_v2 = vmul.f32 %v1261_v38, %v4635_v10  ;;  %2461 = vmatpush.msrb.mxu2 %v1623_v50  ;;  %2476 = vmatpush.msra.mxu1 %v1608_v9  ;;  %v1603_v10 = vld [vmem:[#allocation2 + $0x90] sm:$0xff]  ;;  %v2104_v0 = vsel %vm2102_vm5, %v1426_v19, %v4703_v27  ;;  %v1253_v26 = vmul.f32 %v1252_v7, %v4643_v44  ;;  %vm1945_vm7 = vcmp.eq.s32.totalorder %v1943_v31, 0  ;;  %v1592_v7 = vld [vmem:[#allocation2 + $0x38] sm:$0xff] }
 0x168   : > { %v1542_v30 = vshrl.u32 %v1524_v55, %v1540_v33  ;;  %v1545_v42 = vadd.s32 127, %v1544_v3  ;;  %2507 = vmatpush.msrb.mxu0 %v1624_v48  ;;  %2431 = vmatpush.msra.mxu3 %v1605_v60  ;;  %v2101_v8 = vsel %vm2099_vm3, %v4693_v32, %v1423_v14  ;;  %v1599_v50 = vld [vmem:[#allocation2 + $0x70] sm:$0xff]  ;;  %vm1267_vm8 = vcmp.eq.s32.totalorder %v1265_v52, 0  ;;  %v1597_v48 = vld [vmem:[#allocation2 + $0x60] sm:$0xff]  ;;  %v1598_v33 = vld [vmem:[#allocation2 + $0x68] sm:$0xff] }
 0x169   : > { %2462 = vmatpush.msrb.mxu2 %v1621_v57  ;;  %2477 = vmatpush.msra.mxu1 %v1606_v37  ;;  %v1268_v40 = vxor.u32 2147483648, %v4700_v2  ;;  %v2105_v16 = vsel %vm2098_vm2, %v2101_v8, %v2104_v0  ;;  %v1254_v62 = vadd.f32 1.0, %v1253_v26  ;;  %vm1948_vm10 = vcmp.eq.s32.totalorder %v1943_v31, 2  ;;  %v1587_v0 = vld [vmem:[#allocation2 + $0x10] sm:$0xff]  ;;  %v1588_v26 = vld [vmem:[#allocation2 + $0x18] sm:$0xff] }
 0x16a   : > { %v1543_v45 = vor.u32 %v1542_v30, %v1541_v20  ;;  %v1546_v29 = vshll.u32 %v1545_v42, 23  ;;  %2508 = vmatpush.msrb.mxu0 %v1622_v22  ;;  %2432 = vmatpush.msra.mxu3 %v1603_v10  ;;  %v2106_v38 = vsel %vm1418_vm6, nan, %v2105_v16  ;;  %vm1270_vm11 = vcmp.eq.s32.totalorder %v1265_v52, 2  ;;  %v1595_v22 = vld [vmem:[#allocation2 + $0x50] sm:$0xff]  ;;  %v1594_v10 = vld [vmem:[#allocation2 + $0x48] sm:$0xff] }
 0x16b   : > { %2463 = vmatpush.msrb.mxu2 %v1619_v61  ;;  %2478 = vmatpush.msra.mxu1 %v1604_v21  ;;  %v1271_v58 = vxor.u32 2147483648, %v1254_v62  ;;  %v1947_v11 = vsel %vm1945_vm7, %v1254_v62, %v1268_v40  ;;  %v1269_v9 = vsel %vm1267_vm8, %v1254_v62, %v1268_v40  ;;  %vm1944_vm12 = vcmp.lt.s32.totalorder %v1943_v31, 2 }
 0x16c   : > { %v1547_v15 = vor.u32 4788187, %v1546_v29  ;;  %2509 = vmatpush.msrb.mxu0 %v1620_v63  ;;  %2433 = vmatpush.msra.mxu3 %v1601_v43  ;;  %v1550_v55 = vcvt.s32.f32 %v1543_v45  ;;  %vm1266_vm13 = vcmp.lt.s32.totalorder %v1265_v52, 2  ;;  %vm1432_vm15 = vcmp.lt.s32.totalorder %v4365_v49, 0  ;;  %v1591_v63 = vld [vmem:[#allocation2 + $0x30] sm:$0xff]  ;;  %v1589_v43 = vld [vmem:[#allocation2 + $0x20] sm:$0xff] }
 0x16d   : > { %2464 = vmatpush.msrb.mxu2 %v1617_v13  ;;  %2393 = vmatmul.f32.gmra.mxu0 %v2106_v38  ;;  %v1950_v3 = vsel %vm1948_vm10, %v1271_v58, %v4700_v2  ;;  %v1272_v60 = vsel %vm1270_vm11, %v1271_v58, %v4700_v2  ;;  %vm4732_vm1 = vcmp.le.f32.partialorder %v1430_v56, 0.7853982  ;;  %v1554_v61 = vsub.s32 4, %v4637_v1  ;;  %v1590_v13 = vld [vmem:[#allocation2 + $0x28] sm:$0xff] }
 0x16e   : > { %v1548_v44 = vand.u32 2147483647, %v1547_v15  ;;  %2347 = vmatmul.f32.gmra.mxu2 %v2106_v38  ;;  %2479 = vmatpush.msra.mxu1 %v1602_v36  ;;  %v1951_v35 = vsel %vm1944_vm12, %v1947_v11, %v1950_v3  ;;  %v1273_v37 = vsel %vm1266_vm13, %v1269_v9, %v1272_v60  ;;  %v1585_v36 = vld [vmem:[#allocation2] sm:$0xff]  ;;  %vm1573_vm11 = vweird.f32 %v4365_v49 }
 0x16f   : > { %2510 = vmatpush.msrb.mxu0 %v1618_v54  ;;  %2434 = vmatpush.msra.mxu3 %v1599_v50  ;;  %v1952_v20 = vsel %vm1263_vm14, nan, %v1951_v35  ;;  %v1274_v30 = vsel %vm1263_vm14, nan, %v1273_v37  ;;  %v1555_v31 = vsel %vm1432_vm15, %v1554_v61, %v4637_v1  ;;  %v1586_v54 = vld [vmem:[#allocation2 + $0x8] sm:$0xff]  ;;  %v2592_v61 = vld [vmem:[#allocation7 + $0x1e0] sm:$0xff] }
 0x170   : > { %v1551_v51 = vmul.f32 %v1550_v55, %v1548_v44  ;;  %2480 = vmatpush.msra.mxu1 %v1600_v59  ;;  %3523 = vmatmul.msk.f32.vlgmr.msrb.gmra.mxu3 %vm2321_vm4, %v1952_v20  ;;  %v1557_v40 = vsel %vm4732_vm1, 0, %v1555_v31  ;;  %v1109_v55 = vadd.s32 3, %v4625_v53  ;;  %v2559_v31 = vld [vmem:[#allocation7 + $0xd8] sm:$0xff] }
 0x171   : > { %2435 = vmatpush.msra.mxu3 %v1597_v48  ;;  %3525 = vmatmul.msk.f32.vlgmr.msrb.gmra.mxu1 %vm2321_vm4, %v1952_v20  ;;  %v1574_v1 = vadd.s32 3, %v1557_v40  ;;  %v2251_v11 = vand.u32 3, %v1557_v40  ;;  %v2583_v40 = vld [vmem:[#allocation7 + $0x198] sm:$0xff] }
 0x172   : > { %v1552_v57 = vxor.u32 2147483648, %v1551_v51  ;;  %2481 = vmatpush.msra.mxu1 %v1598_v33  ;;  %v1110_v33 = vand.u32 3, %v1109_v55  ;;  %v2576_v55 = vld [vmem:[#allocation7 + $0x160] sm:$0xff] }
 0x173   : > { %2436 = vmatpush.msra.mxu3 %v1595_v22  ;;  %v1575_v9 = vand.u32 3, %v1574_v1  ;;  %vm2252_vm2 = vcmp.lt.s32.totalorder %v2251_v11, 2  ;;  %vm2253_vm3 = vcmp.eq.s32.totalorder %v2251_v11, 0  ;;  %vm2256_vm5 = vcmp.eq.s32.totalorder %v2251_v11, 2  ;;  %v2553_v1 = vld [vmem:[#allocation7 + $0xa8] sm:$0xff]  ;;  %v2548_v11 = vld [vmem:[#allocation7 + $0x80] sm:$0xff] }
 0x174   : > { %v1553_v2 = vsel %vm1432_vm15, %v1552_v57, %v1551_v51  ;;  %2482 = vmatpush.msra.mxu1 %v1596_v47  ;;  %vm1112_vm12 = vcmp.eq.s32.totalorder %v1110_v33, 0  ;;  %vm1115_vm13 = vcmp.eq.s32.totalorder %v1110_v33, 2  ;;  %vm1111_vm14 = vcmp.lt.s32.totalorder %v1110_v33, 2  ;;  %v4774_v33 = vpop.f32.mrf.mxu3 }
 0x175   : > { %v1556_v21 = vsel %vm4732_vm1, %v4365_v49, %v1553_v2  ;;  %3529 = vmatmul.msk.f32.vlgmr.msrb.gmra.mxu0 %vm2321_vm4, %v1274_v30  ;;  %2437 = vmatpush.msra.mxu3 %v1593_v39  ;;  %vm1576_vm7 = vcmp.lt.s32.totalorder %v1575_v9, 2  ;;  %vm1577_vm8 = vcmp.eq.s32.totalorder %v1575_v9, 0  ;;  %vm1580_vm10 = vcmp.eq.s32.totalorder %v1575_v9, 2  ;;  %v2574_v9 = vld [vmem:[#allocation7 + $0x150] sm:$0xff] }
 0x176   : > { %v1558_v56 = vmul.f32 %v1556_v21, %v1556_v21  ;;  %3527 = vmatmul.msk.f32.vlgmr.msrb.gmra.mxu2 %vm2321_vm4, %v1274_v30  ;;  %2483 = vmatpush.msra.mxu1 %v1594_v10  ;;  %v1419_v30 = vadd.s32 3, %v4677_v18  ;;  %v1114_v42 = vsel %vm1112_vm12, %v4629_v6, %v1113_v46  ;;  %v1117_v49 = vsel %vm1115_vm13, %v1116_v5, %v4654_v12  ;;  %v2595_v5 = vld [vmem:[#allocation7 + $0x1f8] sm:$0xff] }
 0x177   : > { %2438 = vmatpush.msra.mxu3 %v1591_v63  ;;  %v1118_v2 = vsel %vm1111_vm14, %v1114_v42, %v1117_v49  ;;  %v2560_v63 = vld [vmem:[#allocation7 + $0xe0] sm:$0xff]  ;;  %v2543_v42 = vld [vmem:[#allocation7 + $0x58] sm:$0xff]  ;;  %v2569_v49 = vld [vmem:[#allocation7 + $0x128] sm:$0xff] }
 0x178   : > { %v1559_v45 = vmul.f32 -0.001358992, %v1558_v56  ;;  %v1566_v29 = vmul.f32 -0.00019511016, %v1558_v56  ;;  %2484 = vmatpush.msra.mxu1 %v1592_v7  ;;  %v1420_v39 = vand.u32 3, %v1419_v30  ;;  %v1119_v10 = vsel %vm1108_vm9, nan, %v1118_v2 }
 0x179   : > { %2439 = vmatpush.msra.mxu3 %v1589_v43  ;;  %v2586_v7 = vld [vmem:[#allocation7 + $0x1b0] sm:$0xff]  ;;  %v2568_v30 = vld [vmem:[#allocation7 + $0x120] sm:$0xff] }
 0x17a   : > { %v1560_v52 = vadd.f32 0.041655596, %v1559_v45  ;;  %v1567_v8 = vadd.f32 0.008332121, %v1566_v29  ;;  %2485 = vmatpush.msra.mxu1 %v1590_v13  ;;  %vm1422_vm15 = vcmp.eq.s32.totalorder %v1420_v39, 0  ;;  %vm1425_vm1 = vcmp.eq.s32.totalorder %v1420_v39, 2 }
 0x17b   : > { %2440 = vmatpush.msra.mxu3 %v1587_v0  ;;  %v1424_v46 = vsel %vm1422_vm15, %v4693_v32, %v1423_v14  ;;  %v1427_v18 = vsel %vm1425_vm1, %v1426_v19, %v4703_v27  ;;  %v2590_v14 = vld [vmem:[#allocation7 + $0x1d0] sm:$0xff]  ;;  %v2588_v27 = vld [vmem:[#allocation7 + $0x1c0] sm:$0xff]  ;;  %v2563_v19 = vld [vmem:[#allocation7 + $0xf8] sm:$0xff] }
 0x17c   : > { %v1561_v15 = vmul.f32 %v1560_v52, %v1558_v56  ;;  %v1568_v16 = vmul.f32 %v1567_v8, %v1558_v56  ;;  %2486 = vmatpush.msra.mxu1 %v1588_v26  ;;  %v2562_v32 = vld [vmem:[#allocation7 + $0xf0] sm:$0xff]  ;;  %2648 = vmatpush.msra.mxu0 %v2563_v19  ;;  %v2561_v45 = vld [vmem:[#allocation7 + $0xe8] sm:$0xff]  ;;  %v2587_v29 = vld [vmem:[#allocation7 + $0x1b8] sm:$0xff]  ;;  %v4776_v2 = vpop.f32.mrf.mxu3 }
 0x17d   : > { %2441 = vmatpush.msra.mxu3 %v1585_v36  ;;  %2602 = vmatpush.msra.mxu2 %v2562_v32  ;;  %v2558_v43 = vld [vmem:[#allocation7 + $0xd0] sm:$0xff]  ;;  %v2584_v13 = vld [vmem:[#allocation7 + $0x1a0] sm:$0xff]  ;;  %v2585_v52 = vld [vmem:[#allocation7 + $0x1a8] sm:$0xff] }
 0x17e   : > { %v1562_v38 = vadd.f32 -0.4999988, %v1561_v15  ;;  %v1569_v62 = vadd.f32 -0.16666654, %v1568_v16  ;;  %2487 = vmatpush.msra.mxu1 %v1586_v54  ;;  %2649 = vmatpush.msra.mxu0 %v2561_v45  ;;  %v2556_v8 = vld [vmem:[#allocation7 + $0xc0] sm:$0xff]  ;;  %v2582_v0 = vld [vmem:[#allocation7 + $0x190] sm:$0xff] }
 0x17f   : > { %2625 = vmatpush.msrb.mxu3 %v2594_v25  ;;  %2603 = vmatpush.msra.mxu2 %v2560_v63  ;;  %v2557_v26 = vld [vmem:[#allocation7 + $0xc8] sm:$0xff]  ;;  %v2554_v15 = vld [vmem:[#allocation7 + $0xb0] sm:$0xff]  ;;  %v2580_v16 = vld [vmem:[#allocation7 + $0x180] sm:$0xff] }
 0x180   : > { %v1563_v50 = vmul.f32 %v1562_v38, %v1558_v56  ;;  %v1570_v44 = vmul.f32 %v1569_v62, %v1558_v56  ;;  %2671 = vmatpush.msrb.mxu1 %v2595_v5  ;;  %v2591_v56 = vld [vmem:[#allocation7 + $0x1d8] sm:$0xff]  ;;  %2650 = vmatpush.msra.mxu0 %v2559_v31  ;;  %v2581_v54 = vld [vmem:[#allocation7 + $0x188] sm:$0xff]  ;;  %v2552_v38 = vld [vmem:[#allocation7 + $0xa0] sm:$0xff] }
 0x181   : > { %2626 = vmatpush.msrb.mxu3 %v2592_v61  ;;  %2604 = vmatpush.msra.mxu2 %v2558_v43  ;;  %v2555_v36 = vld [vmem:[#allocation7 + $0xb8] sm:$0xff]  ;;  %v2578_v62 = vld [vmem:[#allocation7 + $0x170] sm:$0xff]  ;;  %v2564_v5 = vld [vmem:[#allocation7 + $0x100] sm:$0xff] }
 0x182   : > { %v1564_v59 = vadd.f32 1.0, %v1563_v50  ;;  %v1571_v58 = vadd.f32 1.0, %v1570_v44  ;;  %2651 = vmatpush.msra.mxu0 %v2557_v26  ;;  %v2579_v50 = vld [vmem:[#allocation7 + $0x178] sm:$0xff]  ;;  %v2550_v44 = vld [vmem:[#allocation7 + $0x90] sm:$0xff] }
 0x183   : > { %2627 = vmatpush.msrb.mxu3 %v2590_v14  ;;  %2605 = vmatpush.msra.mxu2 %v2556_v8  ;;  %v2538_v25 = vld [vmem:[#allocation7 + $0x30] sm:$0xff]  ;;  %v2539_v61 = vld [vmem:[#allocation7 + $0x38] sm:$0xff]  ;;  %v2536_v14 = vld [vmem:[#allocation7 + $0x20] sm:$0xff] }
 0x184   : > { %v1572_v48 = vmul.f32 %v1571_v58, %v1556_v21  ;;  %v1581_v51 = vxor.u32 2147483648, %v1564_v59  ;;  %v2593_v21 = vld [vmem:[#allocation7 + $0x1e8] sm:$0xff]  ;;  %2652 = vmatpush.msra.mxu0 %v2555_v36  ;;  %v2534_v32 = vld [vmem:[#allocation7 + $0x10] sm:$0xff]  ;;  %v2535_v19 = vld [vmem:[#allocation7 + $0x18] sm:$0xff] }
 0x185   : > { %2672 = vmatpush.msrb.mxu1 %v2593_v21  ;;  %2628 = vmatpush.msrb.mxu3 %v2588_v27  ;;  %v2577_v58 = vld [vmem:[#allocation7 + $0x168] sm:$0xff]  ;;  %v2765_v43 = vld [vmem:[#allocation8 + $0x1f8] sm:$0xff]  ;;  %v2760_v8 = vld [vmem:[#allocation8 + $0x1d0] sm:$0xff] }
 0x186   : > { %v1578_v3 = vxor.u32 2147483648, %v1572_v48  ;;  %v2258_v57 = vsel %vm2256_vm5, %v1581_v51, %v1572_v48  ;;  %v1582_v37 = vsel %vm1580_vm10, %v1581_v51, %v1572_v48  ;;  %2606 = vmatpush.msra.mxu2 %v2554_v15  ;;  %2653 = vmatpush.msra.mxu0 %v2553_v1  ;;  %v2549_v48 = vld [vmem:[#allocation7 + $0x88] sm:$0xff]  ;;  %v2575_v51 = vld [vmem:[#allocation7 + $0x158] sm:$0xff]  ;;  %v2732_v26 = vld [vmem:[#allocation8 + $0xf0] sm:$0xff] }
 0x187   : > { %2673 = vmatpush.msrb.mxu1 %v2591_v56  ;;  %2629 = vmatpush.msrb.mxu3 %v2586_v7  ;;  %v2565_v21 = vld [vmem:[#allocation7 + $0x108] sm:$0xff]  ;;  %v2730_v15 = vld [vmem:[#allocation8 + $0xe0] sm:$0xff]  ;;  %v2729_v1 = vld [vmem:[#allocation8 + $0xd8] sm:$0xff] }
 0x188   : > { %v2255_v60 = vsel %vm2253_vm3, %v1564_v59, %v1578_v3  ;;  %v1579_v35 = vsel %vm1577_vm8, %v1564_v59, %v1578_v3  ;;  %2607 = vmatpush.msra.mxu2 %v2552_v38  ;;  %v2551_v59 = vld [vmem:[#allocation7 + $0x98] sm:$0xff]  ;;  %v2546_v3 = vld [vmem:[#allocation7 + $0x70] sm:$0xff]  ;;  %v2537_v56 = vld [vmem:[#allocation7 + $0x28] sm:$0xff] }
 0x189   : > { %v2259_v53 = vsel %vm2252_vm2, %v2255_v60, %v2258_v57  ;;  %v1583_v22 = vsel %vm1576_vm7, %v1579_v35, %v1582_v37  ;;  %2674 = vmatpush.msrb.mxu1 %v2589_v34  ;;  %2630 = vmatpush.msrb.mxu3 %v2584_v13  ;;  %v2572_v60 = vld [vmem:[#allocation7 + $0x140] sm:$0xff]  ;;  %v2547_v57 = vld [vmem:[#allocation7 + $0x78] sm:$0xff]  ;;  %v2573_v35 = vld [vmem:[#allocation7 + $0x148] sm:$0xff] }
 0x18a   : > { %v2260_v47 = vsel %vm1573_vm11, nan, %v2259_v53  ;;  %v1584_v20 = vsel %vm1573_vm11, nan, %v1583_v22  ;;  %2608 = vmatpush.msra.mxu2 %v2550_v44  ;;  %2654 = vmatpush.msra.mxu0 %v2551_v59  ;;  %v2544_v37 = vld [vmem:[#allocation7 + $0x60] sm:$0xff]  ;;  %v2570_v53 = vld [vmem:[#allocation7 + $0x130] sm:$0xff]  ;;  %v2545_v22 = vld [vmem:[#allocation7 + $0x68] sm:$0xff] }
 0x18b   : > { %3524 = vmatmul.msk.f32.gmra.mxu3 %vm2321_vm4, %v2260_v47  ;;  %3526 = vmatmul.msk.f32.gmra.mxu1 %vm2321_vm4, %v2260_v47  ;;  %v2571_v47 = vld [vmem:[#allocation7 + $0x138] sm:$0xff]  ;;  %v2532_v34 = vld [vmem:[#allocation7] sm:$0xff]  ;;  %v2533_v7 = vld [vmem:[#allocation7 + $0x8] sm:$0xff] }
 0x18c   : > { %3528 = vmatmul.msk.f32.gmra.mxu2 %vm2321_vm4, %v1584_v20  ;;  %3530 = vmatmul.msk.f32.gmra.mxu0 %vm2321_vm4, %v1584_v20  ;;  %vm1421_vm4 = vcmp.lt.s32.totalorder %v1420_v39, 2  ;;  %v2542_v20 = vld [vmem:[#allocation7 + $0x50] sm:$0xff]  ;;  %v2762_v13 = vld [vmem:[#allocation8 + $0x1e0] sm:$0xff]  ;;  %v2759_v36 = vld [vmem:[#allocation8 + $0x1c8] sm:$0xff] }
 0x18d   : > { %v1428_v6 = vsel %vm1421_vm4, %v1424_v46, %v1427_v18  ;;  %2675 = vmatpush.msrb.mxu1 %v2587_v29  ;;  %2631 = vmatpush.msrb.mxu3 %v2582_v0  ;;  %v2566_v46 = vld [vmem:[#allocation7 + $0x110] sm:$0xff]  ;;  %v2541_v18 = vld [vmem:[#allocation7 + $0x48] sm:$0xff]  ;;  %v2761_v0 = vld [vmem:[#allocation8 + $0x1d8] sm:$0xff] }
 0x18e   : > { %v1429_v12 = vsel %vm1418_vm6, nan, %v1428_v6  ;;  %2609 = vmatpush.msra.mxu2 %v2548_v11  ;;  %2655 = vmatpush.msra.mxu0 %v2549_v48  ;;  %v2764_v29 = vld [vmem:[#allocation8 + $0x1f0] sm:$0xff]  ;;  %v2757_v44 = vld [vmem:[#allocation8 + $0x1b8] sm:$0xff]  ;;  %v2727_v11 = vld [vmem:[#allocation8 + $0xc8] sm:$0xff] }
 0x18f   : > { %2676 = vmatpush.msrb.mxu1 %v2585_v52  ;;  %2632 = vmatpush.msrb.mxu3 %v2580_v16  ;;  %v2763_v52 = vld [vmem:[#allocation8 + $0x1e8] sm:$0xff]  ;;  %v2758_v16 = vld [vmem:[#allocation8 + $0x1c0] sm:$0xff]  ;;  %v4795_v59 = vld [vmem:[%s5137_s9] sm:$0x3] }
 0x190   : > { %2610 = vmatpush.msra.mxu2 %v2546_v3  ;;  %2656 = vmatpush.msra.mxu0 %v2547_v57  ;;  %v2754_v48 = vld [vmem:[#allocation8 + $0x1a0] sm:$0xff]  ;;  %v2724_v57 = vld [vmem:[#allocation8 + $0xb0] sm:$0xff] }
 0x191   : > { %2677 = vmatpush.msrb.mxu1 %v2583_v40  ;;  %2633 = vmatpush.msrb.mxu3 %v2578_v62  ;;  %v2733_v40 = vld [vmem:[#allocation8 + $0xf8] sm:$0xff]  ;;  %v2728_v62 = vld [vmem:[#allocation8 + $0xd0] sm:$0xff] }
 0x192   : > { %2611 = vmatpush.msra.mxu2 %v2544_v37  ;;  %2657 = vmatpush.msra.mxu0 %v2545_v22  ;;  %v2752_v22 = vld [vmem:[#allocation8 + $0x190] sm:$0xff] }
 0x193   : > { %2442 = vmatmul.f32.vlgmr.msra.gmra.mxu3 %v1119_v10  ;;  %2488 = vmatmul.f32.vlgmr.msra.gmra.mxu1 %v1119_v10  ;;  %v2540_v10 = vld [vmem:[#allocation7 + $0x40] sm:$0xff] }
 0x194   : > { %2678 = vmatpush.msrb.mxu1 %v2581_v54  ;;  %2634 = vmatpush.msrb.mxu3 %v2576_v55  ;;  %v2731_v54 = vld [vmem:[#allocation8 + $0xe8] sm:$0xff] }
 0x195   : > { %2612 = vmatpush.msra.mxu2 %v2542_v20  ;;  %2658 = vmatpush.msra.mxu0 %v2543_v42  ;;  %v2722_v20 = vld [vmem:[#allocation8 + $0xa0] sm:$0xff] }
 0x196   : > { %2679 = vmatpush.msrb.mxu1 %v2579_v50  ;;  %2635 = vmatpush.msrb.mxu3 %v2574_v9  ;;  %v2756_v50 = vld [vmem:[#allocation8 + $0x1b0] sm:$0xff] }
 0x197   : > { %2613 = vmatpush.msra.mxu2 %v2540_v10  ;;  %2659 = vmatpush.msra.mxu0 %v2541_v18  ;;  %v2748_v18 = vld [vmem:[#allocation8 + $0x170] sm:$0xff] }
 0x198   : > { %2680 = vmatpush.msrb.mxu1 %v2577_v58  ;;  %2636 = vmatpush.msrb.mxu3 %v2572_v60  ;;  %v2726_v58 = vld [vmem:[#allocation8 + $0xc0] sm:$0xff] }
 0x199   : > { %2614 = vmatpush.msra.mxu2 %v2538_v25  ;;  %2660 = vmatpush.msra.mxu0 %v2539_v61 }
 0x19a   : > { %2681 = vmatpush.msrb.mxu1 %v2575_v51  ;;  %2637 = vmatpush.msrb.mxu3 %v2570_v53  ;;  %v2755_v51 = vld [vmem:[#allocation8 + $0x1a8] sm:$0xff]  ;;  %v2521_v53 = vperm.slane %v4795_v59, 1 }
 0x19b   : > { %2445 = vmatmul.f32.gmra.mxu3 %v1429_v12  ;;  %2491 = vmatmul.f32.gmra.mxu1 %v1429_v12  ;;  %v2567_v12 = vld [vmem:[#allocation7 + $0x118] sm:$0xff] }
 0x19c   : > { %2682 = vmatpush.msrb.mxu1 %v2573_v35  ;;  %2638 = vmatpush.msrb.mxu3 %v2568_v30  ;;  %v2725_v35 = vld [vmem:[#allocation8 + $0xb8] sm:$0xff]  ;;  %v2723_v30 = vld [vmem:[#allocation8 + $0xa8] sm:$0xff] }
 0x19d   : > { %2615 = vmatpush.msra.mxu2 %v2536_v14  ;;  %2661 = vmatpush.msra.mxu0 %v2537_v56  ;;  %v2520_v14 = vperm.slane %v4795_v59, 0  ;;  %v2743_v59 = vld [vmem:[#allocation8 + $0x148] sm:$0xff] }
 0x19e   : > { %2683 = vmatpush.msrb.mxu1 %v2571_v47  ;;  %2639 = vmatpush.msrb.mxu3 %v2566_v46  ;;  %v2753_v47 = vld [vmem:[#allocation8 + $0x198] sm:$0xff] }
 0x19f   : > { %2616 = vmatpush.msra.mxu2 %v2534_v32  ;;  %2662 = vmatpush.msra.mxu0 %v2535_v19 }
 0x1a0   : > { %2684 = vmatpush.msrb.mxu1 %v2569_v49  ;;  %2640 = vmatpush.msrb.mxu3 %v2564_v5  ;;  %v2750_v49 = vld [vmem:[#allocation8 + $0x180] sm:$0xff] }
 0x1a1   : > { %2617 = vmatpush.msra.mxu2 %v2532_v34  ;;  %2663 = vmatpush.msra.mxu0 %v2533_v7 }
 0x1a2   : > { %2685 = vmatpush.msrb.mxu1 %v2567_v12  ;;  %2795 = vmatpush.msra.mxu3 %v2764_v29 }
 0x1a3   : > { %2772 = vmatpush.msrb.mxu2 %v2732_v26  ;;  %2818 = vmatpush.msrb.mxu0 %v2733_v40  ;;  %v2720_v40 = vld [vmem:[#allocation8 + $0x90] sm:$0xff] }
 0x1a4   : > { %2686 = vmatpush.msrb.mxu1 %v2565_v21  ;;  %2796 = vmatpush.msra.mxu3 %v2762_v13 }
 0x1a5   : > { %2773 = vmatpush.msrb.mxu2 %v2730_v15  ;;  %2819 = vmatpush.msrb.mxu0 %v2731_v54  ;;  %v2746_v15 = vld [vmem:[#allocation8 + $0x160] sm:$0xff] }
 0x1a6   : > { %2841 = vmatpush.msra.mxu1 %v2765_v43  ;;  %2797 = vmatpush.msra.mxu3 %v2760_v8  ;;  %v2718_v54 = vld [vmem:[#allocation8 + $0x80] sm:$0xff] }
 0x1a7   : > { %2774 = vmatpush.msrb.mxu2 %v2728_v62  ;;  %2820 = vmatpush.msrb.mxu0 %v2729_v1  ;;  %v2719_v62 = vld [vmem:[#allocation8 + $0x88] sm:$0xff]  ;;  %v2745_v1 = vld [vmem:[#allocation8 + $0x158] sm:$0xff] }
 0x1a8   : > { %2842 = vmatpush.msra.mxu1 %v2763_v52  ;;  %2798 = vmatpush.msra.mxu3 %v2758_v16  ;;  %v2721_v16 = vld [vmem:[#allocation8 + $0x98] sm:$0xff] }
 0x1a9   : > { %2775 = vmatpush.msrb.mxu2 %v2726_v58  ;;  %2821 = vmatpush.msrb.mxu0 %v2727_v11  ;;  %v2714_v58 = vld [vmem:[#allocation8 + $0x60] sm:$0xff]  ;;  %v2740_v11 = vld [vmem:[#allocation8 + $0x130] sm:$0xff] }
 0x1aa   : > { %2843 = vmatpush.msra.mxu1 %v2761_v0  ;;  %2799 = vmatpush.msra.mxu3 %v2756_v50  ;;  %v2716_v50 = vld [vmem:[#allocation8 + $0x70] sm:$0xff] }
 0x1ab   : > { %2776 = vmatpush.msrb.mxu2 %v2724_v57  ;;  %2822 = vmatpush.msrb.mxu0 %v2725_v35  ;;  %v2739_v57 = vld [vmem:[#allocation8 + $0x128] sm:$0xff]  ;;  %v2710_v35 = vld [vmem:[#allocation8 + $0x40] sm:$0xff] }
 0x1ac   : > { %2844 = vmatpush.msra.mxu1 %v2759_v36  ;;  %2800 = vmatpush.msra.mxu3 %v2754_v48  ;;  %v2747_v36 = vld [vmem:[#allocation8 + $0x168] sm:$0xff]  ;;  %v2741_v48 = vld [vmem:[#allocation8 + $0x138] sm:$0xff] }
 0x1ad   : > { %2777 = vmatpush.msrb.mxu2 %v2722_v20  ;;  %2823 = vmatpush.msrb.mxu0 %v2723_v30  ;;  %v2734_v20 = vld [vmem:[#allocation8 + $0x100] sm:$0xff]  ;;  %v2709_v30 = vld [vmem:[#allocation8 + $0x38] sm:$0xff] }
 0x1ae   : > { %2845 = vmatpush.msra.mxu1 %v2757_v44  ;;  %2801 = vmatpush.msra.mxu3 %v2752_v22  ;;  %v2742_v44 = vld [vmem:[#allocation8 + $0x140] sm:$0xff]  ;;  %v2737_v22 = vld [vmem:[#allocation8 + $0x118] sm:$0xff] }
 0x1af   : > { %2778 = vmatpush.msrb.mxu2 %v2720_v40  ;;  %2824 = vmatpush.msrb.mxu0 %v2721_v16  ;;  %v2920_v40 = vld [vmem:[#allocation10 + $0x1a0] sm:$0xff]  ;;  %v2890_v16 = vld [vmem:[#allocation10 + $0xb0] sm:$0xff] }
 0x1b0   : > { %2846 = vmatpush.msra.mxu1 %v2755_v51  ;;  %2802 = vmatpush.msra.mxu3 %v2750_v49  ;;  %v2712_v51 = vld [vmem:[#allocation8 + $0x50] sm:$0xff]  ;;  %v2706_v49 = vld [vmem:[#allocation8 + $0x20] sm:$0xff] }
 0x1b1   : > { %2779 = vmatpush.msrb.mxu2 %v2718_v54  ;;  %2825 = vmatpush.msrb.mxu0 %v2719_v62  ;;  %v2919_v62 = vld [vmem:[#allocation10 + $0x198] sm:$0xff] }
 0x1b2   : > { %2847 = vmatpush.msra.mxu1 %v2753_v47  ;;  %2803 = vmatpush.msra.mxu3 %v2748_v18  ;;  %v2708_v47 = vld [vmem:[#allocation8 + $0x30] sm:$0xff]  ;;  %v2702_v18 = vld [vmem:[#allocation8] sm:$0xff] }
 0x1b3   : > { %2780 = vmatpush.msrb.mxu2 %v2716_v50 }
 0x1b4   : > { %2804 = vmatpush.msra.mxu3 %v2746_v15  ;;  %v2921_v15 = vld [vmem:[#allocation10 + $0x1a8] sm:$0xff] }
 0x1b5   : > { %2781 = vmatpush.msrb.mxu2 %v2714_v58 }
 0x1b7   : > { %2782 = vmatpush.msrb.mxu2 %v2712_v51 }
 0x1b9   : > { %2783 = vmatpush.msrb.mxu2 %v2710_v35 }
 0x1bb   : > { %2784 = vmatpush.msrb.mxu2 %v2708_v47 }
 0x1bd   : > { %2785 = vmatpush.msrb.mxu2 %v2706_v49 }
 0x1df   : > { %v4778_v39 = vpop.f32.mrf.mxu0 }
 0x1e4   : > { %v4782_v27 = vpop.f32.mrf.mxu2 }
 0x1ea   : > { %v4786_v45 = vpop.f32.mrf.mxu0 }
 0x1ee   : > { %v4780_v6 = vpop.f32.mrf.mxu1 }
 0x1ef   : > { %v2415_v9 = vadd.f32 %v4780_v6, %v4778_v39  ;;  %v2751_v39 = vld [vmem:[#allocation8 + $0x188] sm:$0xff]  ;;  %v2749_v6 = vld [vmem:[#allocation8 + $0x178] sm:$0xff] }
 0x1f0   : > { %2848 = vmatpush.msra.mxu1 %v2751_v39  ;;  %v2707_v39 = vld [vmem:[#allocation8 + $0x28] sm:$0xff] }
 0x1f1   : > { %v4790_v38 = vpop.f32.mrf.mxu2 }
 0x1f2   : > { %v2512_v3 = vpop.f32.mrf.mxu0  ;;  %2849 = vmatpush.msra.mxu1 %v2749_v6  ;;  %v2703_v6 = vld [vmem:[#allocation8 + $0x8] sm:$0xff] }
 0x1f3   : > { %v4784_v63 = vpop.f32.mrf.mxu3 }
 0x1f4   : > { %v2369_v10 = vadd.f32 %v4784_v63, %v4782_v27  ;;  %2850 = vmatpush.msra.mxu1 %v2747_v36  ;;  %v2891_v36 = vld [vmem:[#allocation10 + $0xb8] sm:$0xff] }
 0x1f6   : > { %2851 = vmatpush.msra.mxu1 %v2745_v1 }
 0x1f8   : > { %2852 = vmatpush.msra.mxu1 %v2743_v59 }
 0x1f9   : > { %v2466_v12 = vpop.f32.mrf.mxu2 }
 0x1fa   : > { %2853 = vmatpush.msra.mxu1 %v2741_v48  ;;  %v2917_v48 = vld [vmem:[#allocation10 + $0x188] sm:$0xff] }
 0x1fc   : > { %2854 = vmatpush.msra.mxu1 %v2739_v57  ;;  %v2915_v57 = vld [vmem:[#allocation10 + $0x178] sm:$0xff] }
 0x1fe   : > { %2855 = vmatpush.msra.mxu1 %v2737_v22 }
 0x208   : > { %v4788_v31 = vpop.f32.mrf.mxu1 }
 0x209   : > { %v2418_v5 = vadd.f32 %v4788_v31, %v4786_v45  ;;  %v2515_v19 = vpop.f32.mrf.mxu0 }
 0x20e   : > { %v2371_v55 = vpop.f32.mrf.mxu3 }
 0x20f   : > { %v2372_v7 = vadd.f32 %v2371_v55, %v4790_v38  ;;  %v2469_v52 = vpop.f32.mrf.mxu2  ;;  %v2744_v38 = vld [vmem:[#allocation8 + $0x150] sm:$0xff]  ;;  %v2717_v55 = vld [vmem:[#allocation8 + $0x78] sm:$0xff] }
 0x210   : > { %v2489_v60 = vpop.f32.mrf.mxu1  ;;  %2805 = vmatpush.msra.mxu3 %v2744_v38  ;;  %2826 = vmatpush.msrb.mxu0 %v2717_v55  ;;  %v2918_v38 = vld [vmem:[#allocation10 + $0x190] sm:$0xff]  ;;  %v2889_v55 = vld [vmem:[#allocation10 + $0xa8] sm:$0xff] }
 0x211   : > { %v2490_v37 = vadd.f32 %v2489_v60, %v2415_v9  ;;  %v2715_v9 = vld [vmem:[#allocation8 + $0x68] sm:$0xff]  ;;  %v2713_v60 = vld [vmem:[#allocation8 + $0x58] sm:$0xff] }
 0x212   : > { %2806 = vmatpush.msra.mxu3 %v2742_v44  ;;  %2827 = vmatpush.msrb.mxu0 %v2715_v9  ;;  %v2888_v44 = vld [vmem:[#allocation10 + $0xa0] sm:$0xff] }
 0x213   : > { %v2513_v42 = vadd.f32 %v2512_v3, %v2490_v37  ;;  %v2738_v3 = vld [vmem:[#allocation8 + $0x120] sm:$0xff]  ;;  %v2736_v37 = vld [vmem:[#allocation8 + $0x110] sm:$0xff] }
 0x214   : > { %2807 = vmatpush.msra.mxu3 %v2740_v11  ;;  %2828 = vmatpush.msrb.mxu0 %v2713_v60  ;;  %v2916_v9 = vld [vmem:[#allocation10 + $0x180] sm:$0xff]  ;;  %v2914_v60 = vld [vmem:[#allocation10 + $0x170] sm:$0xff] }
 0x215   : > { %v2525_v46 = vadd.f32 %v2521_v53, %v2513_v42  ;;  %v2735_v42 = vld [vmem:[#allocation8 + $0x108] sm:$0xff] }
 0x216   : > { %v2443_v25 = vpop.f32.mrf.mxu3  ;;  %2808 = vmatpush.msra.mxu3 %v2738_v3  ;;  %2856 = vmatpush.msra.mxu1 %v2735_v42 }
 0x217   : > { %v2529_v61 = vmax.f32 %v2525_v46, 0.0  ;;  %v2444_v21 = vadd.f32 %v2443_v25, %v2369_v10  ;;  %v2704_v10 = vld [vmem:[#allocation8 + $0x10] sm:$0xff]  ;;  %v2705_v46 = vld [vmem:[#allocation8 + $0x18] sm:$0xff] }
 0x218   : > { %v2492_v56 = vpop.f32.mrf.mxu1  ;;  %2809 = vmatpush.msra.mxu3 %v2736_v37  ;;  %2786 = vmatpush.msrb.mxu2 %v2704_v10  ;;  %v2931_v25 = vld [vmem:[#allocation10 + $0x1f8] sm:$0xff] }
 0x219   : > { %v2467_v32 = vadd.f32 %v2466_v12, %v2444_v21  ;;  %v2493_v27 = vadd.f32 %v2492_v56, %v2418_v5  ;;  %2641 = vmatmul.f32.vlgmr.msrb.gmra.mxu3 %v2529_v61  ;;  %2687 = vmatmul.f32.vlgmr.msrb.gmra.mxu1 %v2529_v61  ;;  %v2930_v12 = vld [vmem:[#allocation10 + $0x1f0] sm:$0xff]  ;;  %v2928_v5 = vld [vmem:[#allocation10 + $0x1e0] sm:$0xff]  ;;  %v2929_v61 = vld [vmem:[#allocation10 + $0x1e8] sm:$0xff] }
 0x21a   : > { %2810 = vmatpush.msra.mxu3 %v2734_v20  ;;  %2787 = vmatpush.msrb.mxu2 %v2702_v18  ;;  %v2926_v21 = vld [vmem:[#allocation10 + $0x1d0] sm:$0xff] }
 0x21b   : > { %v2524_v34 = vadd.f32 %v2520_v14, %v2467_v32  ;;  %v2516_v63 = vadd.f32 %v2515_v19, %v2493_v27  ;;  %3007 = vmatpush.msrb.mxu1 %v2931_v25  ;;  %v2898_v56 = vld [vmem:[#allocation10 + $0xf0] sm:$0xff]  ;;  %v2899_v32 = vld [vmem:[#allocation10 + $0xf8] sm:$0xff]  ;;  %v2896_v19 = vld [vmem:[#allocation10 + $0xe0] sm:$0xff] }
 0x21c   : > { %2961 = vmatpush.msrb.mxu3 %v2930_v12  ;;  %v777_v27 = vld [vmem:[%s5195_s5] sm:$0x3] }
 0x21d   : > { %v2528_v29 = vmax.f32 %v2524_v34, 0.0  ;;  %v2527_v43 = vadd.f32 %v2521_v53, %v2516_v63  ;;  %v2711_v53 = vld [vmem:[#allocation8 + $0x48] sm:$0xff]  ;;  %3008 = vmatpush.msrb.mxu1 %v2929_v61  ;;  %v2924_v34 = vld [vmem:[#allocation10 + $0x1c0] sm:$0xff]  ;;  %v779_v59 = vperm.slane %v777_v27, 0 }
 0x21e   : > { %v2446_v13 = vpop.f32.mrf.mxu3  ;;  %2829 = vmatpush.msrb.mxu0 %v2711_v53  ;;  %2962 = vmatpush.msrb.mxu3 %v2928_v5  ;;  %v2925_v63 = vld [vmem:[#allocation10 + $0x1c8] sm:$0xff] }
 0x21f   : > { %v2447_v45 = vadd.f32 %v2446_v13, %v2372_v7  ;;  %2618 = vmatmul.f32.vlgmr.msra.gmra.mxu2 %v2528_v29  ;;  %2664 = vmatmul.f32.vlgmr.msra.gmra.mxu0 %v2528_v29  ;;  %v2531_v31 = vmax.f32 %v2527_v43, 0.0  ;;  %v2897_v7 = vld [vmem:[#allocation10 + $0xe8] sm:$0xff]  ;;  %v4812_v29 = vld [vmem:[%s5139_s11] sm:$0x3]  ;;  %v2894_v43 = vld [vmem:[#allocation10 + $0xd0] sm:$0xff]  ;;  %v4827_v35 = vadd.f32 %v4257_v17, %v779_v59 }
 0x220   : > { %2830 = vmatpush.msrb.mxu0 %v2709_v30  ;;  %2938 = vmatpush.msra.mxu2 %v2898_v56  ;;  %v2895_v13 = vld [vmem:[#allocation10 + $0xd8] sm:$0xff]  ;;  %v2598_v3 = vperm.slane %v4812_v29, 0 }
 0x221   : > { %v2470_v8 = vadd.f32 %v2469_v52, %v2447_v45  ;;  %2644 = vmatmul.f32.gmra.mxu3 %v2531_v31  ;;  %2690 = vmatmul.f32.gmra.mxu1 %v2531_v31  ;;  %v2922_v45 = vld [vmem:[#allocation10 + $0x1b0] sm:$0xff]  ;;  %v2923_v31 = vld [vmem:[#allocation10 + $0x1b8] sm:$0xff]  ;;  %v2892_v52 = vld [vmem:[#allocation10 + $0xc0] sm:$0xff] }
 0x222   : > { %2831 = vmatpush.msrb.mxu0 %v2707_v39  ;;  %2963 = vmatpush.msrb.mxu3 %v2926_v21  ;;  %v2887_v56 = vld [vmem:[#allocation10 + $0x98] sm:$0xff] }
 0x223   : > { %v2526_v0 = vadd.f32 %v2520_v14, %v2470_v8  ;;  %v2927_v14 = vld [vmem:[#allocation10 + $0x1d8] sm:$0xff]  ;;  %2939 = vmatpush.msra.mxu2 %v2896_v19  ;;  %v2893_v8 = vld [vmem:[#allocation10 + $0xc8] sm:$0xff]  ;;  %v2910_v19 = vld [vmem:[#allocation10 + $0x150] sm:$0xff] }
 0x224   : > { %2832 = vmatpush.msrb.mxu0 %v2705_v46  ;;  %3009 = vmatpush.msrb.mxu1 %v2927_v14  ;;  %v2912_v14 = vld [vmem:[#allocation10 + $0x160] sm:$0xff] }
 0x225   : > { %v2530_v26 = vmax.f32 %v2526_v0, 0.0  ;;  %2964 = vmatpush.msrb.mxu3 %v2924_v34  ;;  %v780_v0 = vperm.slane %v777_v27, 1  ;;  %2940 = vmatpush.msra.mxu2 %v2894_v43  ;;  %v2884_v27 = vld [vmem:[#allocation10 + $0x80] sm:$0xff]  ;;  %v2885_v34 = vld [vmem:[#allocation10 + $0x88] sm:$0xff]  ;;  %v2883_v43 = vld [vmem:[#allocation10 + $0x78] sm:$0xff] }
 0x226   : > { %2833 = vmatpush.msrb.mxu0 %v2703_v6  ;;  %3010 = vmatpush.msrb.mxu1 %v2925_v63  ;;  %v4846_v6 = vadd.f32 %v4269_v4, %v779_v59  ;;  %v2886_v4 = vld [vmem:[#allocation10 + $0x90] sm:$0xff]  ;;  %v2911_v63 = vld [vmem:[#allocation10 + $0x158] sm:$0xff] }
 0x227   : > { %2621 = vmatmul.f32.gmra.mxu2 %v2530_v26  ;;  %2667 = vmatmul.f32.gmra.mxu0 %v2530_v26  ;;  %v2599_v26 = vperm.slane %v4812_v29, 1  ;;  %v4816_v54 = vadd.f32 %v4774_v33, %v780_v0  ;;  %v840_v58 = vadd.f32 %v4227_v28, %v780_v0  ;;  %v4824_v28 = vadd.f32 %v4219_v23, %v779_v59  ;;  %v2908_v29 = vld [vmem:[#allocation10 + $0x140] sm:$0xff] }
 0x228   : > { %2984 = vmatpush.msra.mxu0 %v2899_v32  ;;  %2965 = vmatpush.msrb.mxu3 %v2922_v45  ;;  %v4831_v47 = vadd.f32 %v4776_v2, %v780_v0  ;;  %v843_v42 = vadd.f32 %v4237_v41, %v780_v0  ;;  %v4843_v2 = vadd.f32 %v4221_v24, %v779_v59  ;;  %v2913_v32 = vld [vmem:[#allocation10 + $0x168] sm:$0xff]  ;;  %v2880_v45 = vld [vmem:[#allocation10 + $0x60] sm:$0xff]  ;;  %v2878_v0 = vld [vmem:[#allocation10 + $0x50] sm:$0xff] }
 0x229   : > { %3011 = vmatpush.msrb.mxu1 %v2923_v31  ;;  %2941 = vmatpush.msra.mxu2 %v2892_v52  ;;  %v2695_v33 = vsub.f32 %v840_v58, %v4816_v54  ;;  %v2694_v23 = vsub.f32 %v4824_v28, %v4827_v35  ;;  %v2906_v31 = vld [vmem:[#allocation10 + $0x130] sm:$0xff]  ;;  %v2881_v52 = vld [vmem:[#allocation10 + $0x68] sm:$0xff]  ;;  %v2872_v59 = vld [vmem:[#allocation10 + $0x20] sm:$0xff] }
 0x22a   : > { %2985 = vmatpush.msra.mxu0 %v2897_v7  ;;  %2966 = vmatpush.msrb.mxu3 %v2920_v40  ;;  %v2697_v10 = vsub.f32 %v843_v42, %v4831_v47  ;;  %v2696_v61 = vsub.f32 %v4843_v2, %v4846_v6  ;;  %v2882_v7 = vld [vmem:[#allocation10 + $0x70] sm:$0xff]  ;;  %v2879_v40 = vld [vmem:[#allocation10 + $0x58] sm:$0xff]  ;;  %v2873_v58 = vld [vmem:[#allocation10 + $0x28] sm:$0xff] }
 0x22b   : > { %3012 = vmatpush.msrb.mxu1 %v2921_v15  ;;  %2942 = vmatpush.msra.mxu2 %v2890_v16  ;;  %v2905_v15 = vld [vmem:[#allocation10 + $0x128] sm:$0xff]  ;;  %v2876_v16 = vld [vmem:[#allocation10 + $0x40] sm:$0xff] }
 0x22c   : > { %2986 = vmatpush.msra.mxu0 %v2895_v13  ;;  %2967 = vmatpush.msrb.mxu3 %v2918_v38  ;;  %v2909_v13 = vld [vmem:[#allocation10 + $0x148] sm:$0xff] }
 0x22d   : > { %3013 = vmatpush.msrb.mxu1 %v2919_v62  ;;  %2943 = vmatpush.msra.mxu2 %v2888_v44  ;;  %v2877_v38 = vld [vmem:[#allocation10 + $0x48] sm:$0xff]  ;;  %v2903_v62 = vld [vmem:[#allocation10 + $0x118] sm:$0xff] }
 0x22e   : > { %2987 = vmatpush.msra.mxu0 %v2893_v8  ;;  %2968 = vmatpush.msrb.mxu3 %v2916_v9  ;;  %v2907_v8 = vld [vmem:[#allocation10 + $0x138] sm:$0xff] }
 0x22f   : > { %3014 = vmatpush.msrb.mxu1 %v2917_v48  ;;  %2944 = vmatpush.msra.mxu2 %v2886_v4  ;;  %v2875_v44 = vld [vmem:[#allocation10 + $0x38] sm:$0xff]  ;;  %v2868_v48 = vld [vmem:[#allocation10] sm:$0xff] }
 0x230   : > { %2988 = vmatpush.msra.mxu0 %v2891_v36  ;;  %2969 = vmatpush.msrb.mxu3 %v2914_v60  ;;  %v2902_v36 = vld [vmem:[#allocation10 + $0x110] sm:$0xff]  ;;  %v2871_v9 = vld [vmem:[#allocation10 + $0x18] sm:$0xff] }
 0x231   : > { %3015 = vmatpush.msrb.mxu1 %v2915_v57  ;;  %2945 = vmatpush.msra.mxu2 %v2884_v27 }
 0x232   : > { %2989 = vmatpush.msra.mxu0 %v2889_v55  ;;  %2970 = vmatpush.msrb.mxu3 %v2912_v14  ;;  %v2901_v55 = vld [vmem:[#allocation10 + $0x108] sm:$0xff] }
 0x233   : > { %3016 = vmatpush.msrb.mxu1 %v2913_v32  ;;  %2946 = vmatpush.msra.mxu2 %v2882_v7  ;;  %v2932_v32 = vld [vmem:[%s5143_s15] sm:$0x3] }
 0x234   : > { %2990 = vmatpush.msra.mxu0 %v2887_v56  ;;  %2971 = vmatpush.msrb.mxu3 %v2910_v19  ;;  %v2934_v27 = vperm.slane %v2932_v32, 0  ;;  %v2935_v7 = vperm.slane %v2932_v32, 1 }
 0x235   : > { %3017 = vmatpush.msrb.mxu1 %v2911_v63  ;;  %2947 = vmatpush.msra.mxu2 %v2880_v45 }
 0x236   : > { %2991 = vmatpush.msra.mxu0 %v2885_v34  ;;  %2972 = vmatpush.msrb.mxu3 %v2908_v29 }
 0x237   : > { %3018 = vmatpush.msrb.mxu1 %v2909_v13  ;;  %2948 = vmatpush.msra.mxu2 %v2878_v0 }
 0x238   : > { %2992 = vmatpush.msra.mxu0 %v2883_v43  ;;  %2973 = vmatpush.msrb.mxu3 %v2906_v31 }
 0x239   : > { %3019 = vmatpush.msrb.mxu1 %v2907_v8  ;;  %2949 = vmatpush.msra.mxu2 %v2876_v16 }
 0x23a   : > { %2993 = vmatpush.msra.mxu0 %v2881_v52 }
 0x23b   : > { %3020 = vmatpush.msrb.mxu1 %v2905_v15 }
 0x23c   : > { %2994 = vmatpush.msra.mxu0 %v2879_v40 }
 0x23d   : > { %3021 = vmatpush.msrb.mxu1 %v2903_v62 }
 0x23e   : > { %2995 = vmatpush.msra.mxu0 %v2877_v38 }
 0x23f   : > { %3022 = vmatpush.msrb.mxu1 %v2901_v55 }
 0x240   : > { %2996 = vmatpush.msra.mxu0 %v2875_v44  ;;  %v3042_v44 = vlaneseq }
 0x242   : > { %2997 = vmatpush.msra.mxu0 %v2873_v58 }
 0x244   : > { %2998 = vmatpush.msra.mxu0 %v2871_v9 }
 0x296   : > { %v2688_v1 = vpop.f32.mrf.mxu1 }
 0x29c   : > { %v2665_v50 = vpop.f32.mrf.mxu0  ;;  %v2642_v53 = vpop.f32.mrf.mxu3 }
 0x29d   : > { %v2666_v11 = vadd.f32 %v2665_v50, %v2599_v26  ;;  %v2900_v50 = vld [vmem:[#allocation10 + $0x100] sm:$0xff] }
 0x29e   : > { %v2691_v39 = vpop.f32.mrf.mxu1 }
 0x29f   : > { %v4820_v51 = vadd.f32 %v2688_v1, %v2666_v11  ;;  %v2874_v1 = vld [vmem:[#allocation10 + $0x30] sm:$0xff] }
 0x2a0   : > { %2950 = vmatpush.msra.mxu2 %v2874_v1  ;;  %v2870_v11 = vld [vmem:[#allocation10 + $0x10] sm:$0xff] }
 0x2a1   : > { %v2699_v37 = vadd.f32 %v2695_v33, %v4820_v51  ;;  %v2869_v33 = vld [vmem:[#allocation10 + $0x8] sm:$0xff] }
 0x2a2   : > { %v2619_v22 = vpop.f32.mrf.mxu2  ;;  %2951 = vmatpush.msra.mxu2 %v2872_v59  ;;  %2999 = vmatpush.msra.mxu0 %v2869_v33  ;;  %v4864_v59 = vand.u32 127, %v3042_v44 }
 0x2a3   : > { %v2620_v20 = vadd.f32 %v2619_v22, %v2598_v3  ;;  %2811 = vmatmul.f32.vlgmr.msra.gmra.mxu3 %v2699_v37  ;;  %2857 = vmatmul.f32.vlgmr.msra.gmra.mxu1 %v2699_v37 }
 0x2a4   : > { %v2668_v30 = vpop.f32.mrf.mxu0  ;;  %v2645_v5 = vpop.f32.mrf.mxu3  ;;  %2952 = vmatpush.msra.mxu2 %v2870_v11  ;;  %vm3044_vm9 = vcmp.lt.s32.totalorder %v4864_v59, 32  ;;  %vm3061_vm6 = vcmp.lt.s32.totalorder %v4864_v59, 64 }
 0x2a5   : > { %v4836_v17 = vadd.f32 %v2642_v53, %v2620_v20  ;;  %v2669_v49 = vadd.f32 %v2668_v30, %v2599_v26  ;;  %v2904_v26 = vld [vmem:[#allocation10 + $0x120] sm:$0xff] }
 0x2a6   : > { %2974 = vmatpush.msrb.mxu3 %v2904_v26  ;;  %2953 = vmatpush.msra.mxu2 %v2868_v48 }
 0x2a7   : > { %v2698_v46 = vadd.f32 %v2694_v23, %v4836_v17  ;;  %v4840_v18 = vadd.f32 %v2691_v39, %v2669_v49 }
 0x2a8   : > { %2975 = vmatpush.msrb.mxu3 %v2902_v36 }
 0x2a9   : > { %2788 = vmatmul.f32.vlgmr.msrb.gmra.mxu2 %v2698_v46  ;;  %2834 = vmatmul.f32.vlgmr.msrb.gmra.mxu0 %v2698_v46  ;;  %v2701_v41 = vadd.f32 %v2697_v10, %v4840_v18 }
 0x2aa   : > { %v2622_v12 = vpop.f32.mrf.mxu2  ;;  %2976 = vmatpush.msrb.mxu3 %v2900_v50 }
 0x2ab   : > { %v2623_v25 = vadd.f32 %v2622_v12, %v2598_v3  ;;  %2814 = vmatmul.f32.gmra.mxu3 %v2701_v41  ;;  %2860 = vmatmul.f32.gmra.mxu1 %v2701_v41  ;;  %v2766_v3 = vld [vmem:[%s5141_s13] sm:$0x3] }
 0x2ac   : > { %v2769_v60 = vperm.slane %v2766_v3, 1  ;;  %v2768_v20 = vperm.slane %v2766_v3, 0 }
 0x2ad   : > { %v4851_v21 = vadd.f32 %v2645_v5, %v2623_v25 }
 0x2af   : > { %v2700_v24 = vadd.f32 %v2696_v61, %v4851_v21 }
 0x2b1   : > { %2791 = vmatmul.f32.gmra.mxu2 %v2700_v24  ;;  %2837 = vmatmul.f32.gmra.mxu0 %v2700_v24 }
 0x320   : > { %v2858_v57 = vpop.f32.mrf.mxu1 }
 0x326   : > { %v2835_v37 = vpop.f32.mrf.mxu0  ;;  %v2812_v42 = vpop.f32.mrf.mxu3 }
 0x327   : > { %v2836_v53 = vadd.f32 %v2835_v37, %v2769_v60 }
 0x328   : > { %v2861_v41 = vpop.f32.mrf.mxu1 }
 0x329   : > { %v2859_v22 = vadd.f32 %v2858_v57, %v2836_v53 }
 0x32b   : > { %v2865_v30 = vmax.f32 %v2859_v22, 0.0 }
 0x32c   : > { %v2789_v23 = vpop.f32.mrf.mxu2 }
 0x32d   : > { %v2790_v49 = vadd.f32 %v2789_v23, %v2768_v20  ;;  %2977 = vmatmul.f32.vlgmr.msrb.gmra.mxu3 %v2865_v30  ;;  %3023 = vmatmul.f32.vlgmr.msrb.gmra.mxu1 %v2865_v30 }
 0x32e   : > { %v2838_v39 = vpop.f32.mrf.mxu0  ;;  %v2815_v4 = vpop.f32.mrf.mxu3 }
 0x32f   : > { %v2813_v10 = vadd.f32 %v2812_v42, %v2790_v49  ;;  %v2839_v46 = vadd.f32 %v2838_v39, %v2769_v60 }
 0x331   : > { %v2864_v12 = vmax.f32 %v2813_v10, 0.0  ;;  %v2862_v25 = vadd.f32 %v2861_v41, %v2839_v46 }
 0x333   : > { %2954 = vmatmul.f32.vlgmr.msra.gmra.mxu2 %v2864_v12  ;;  %3000 = vmatmul.f32.vlgmr.msra.gmra.mxu0 %v2864_v12  ;;  %v2867_v5 = vmax.f32 %v2862_v25, 0.0 }
 0x334   : > { %v2792_v61 = vpop.f32.mrf.mxu2 }
 0x335   : > { %v2793_v24 = vadd.f32 %v2792_v61, %v2768_v20  ;;  %2980 = vmatmul.f32.gmra.mxu3 %v2867_v5  ;;  %3026 = vmatmul.f32.gmra.mxu1 %v2867_v5 }
 0x337   : > { %v2816_v14 = vadd.f32 %v2815_v4, %v2793_v24 }
 0x339   : > { %v2866_v56 = vmax.f32 %v2816_v14, 0.0 }
 0x33b   : > { %2957 = vmatmul.f32.gmra.mxu2 %v2866_v56  ;;  %3003 = vmatmul.f32.gmra.mxu0 %v2866_v56 }
 0x3aa   : > { %v3024_v31 = vpop.f32.mrf.mxu1 }
 0x3b0   : > { %v2978_v19 = vpop.f32.mrf.mxu3  ;;  %v3001_v34 = vpop.f32.mrf.mxu0 }
 0x3b1   : > { %v3002_v13 = vadd.f32 %v3001_v34, %v2935_v7 }
 0x3b2   : > { %v3027_v62 = vpop.f32.mrf.mxu1 }
 0x3b3   : > { %v3025_v8 = vadd.f32 %v3024_v31, %v3002_v13  ;;  %v3167_v31 = vld [vmem:[%s5144_s16 + $0xf8] sm:$0xff] }
 0x3b4   : > { %3191 = vmatpush.msra.mxu3 %v3167_v31 }
 0x3b5   : > { %v3031_v16 = vmul.f32 0.17677669, %v3025_v8  ;;  %v3166_v8 = vld [vmem:[%s5144_s16 + $0xf0] sm:$0xff] }
 0x3b6   : > { %v2955_v63 = vpop.f32.mrf.mxu2  ;;  %3192 = vmatpush.msra.mxu3 %v3166_v8  ;;  %v3216_v8 = vld [vmem:[%s5145_s17 + $0x10] sm:$0xff] }
 0x3b7   : > { %v2956_v29 = vadd.f32 %v2955_v63, %v2934_v27 }
 0x3b8   : > { %v2981_v26 = vpop.f32.mrf.mxu3  ;;  %v3004_v40 = vpop.f32.mrf.mxu0 }
 0x3b9   : > { %v2979_v43 = vadd.f32 %v2978_v19, %v2956_v29  ;;  %v3005_v36 = vadd.f32 %v3004_v40, %v2935_v7  ;;  %v3148_v40 = vld [vmem:[%s5144_s16 + $0x60] sm:$0xff] }
 0x3bb   : > { %v3030_v45 = vmul.f32 0.17677669, %v2979_v43  ;;  %v3028_v1 = vadd.f32 %v3027_v62, %v3005_v36  ;;  %v3163_v62 = vld [vmem:[%s5144_s16 + $0xd8] sm:$0xff] }
 0x3bd   : > { %3034 = vrot.lane.b32.xlu0 %v3030_v45, %s3940_s25  ;;  %v3033_v50 = vmul.f32 0.17677669, %v3028_v1 }
 0x3be   : > { %v2958_v52 = vpop.f32.mrf.mxu2 }
 0x3bf   : > { %v2959_v0 = vadd.f32 %v2958_v52, %v2934_v27  ;;  %v3150_v52 = vld [vmem:[%s5144_s16 + $0x70] sm:$0xff] }
 0x3c1   : > { %v2982_v15 = vadd.f32 %v2981_v26, %v2959_v0  ;;  %v3149_v0 = vld [vmem:[%s5144_s16 + $0x68] sm:$0xff] }
 0x3c2   : > { %v3165_v26 = vld [vmem:[%s5144_s16 + $0xe8] sm:$0xff] }
 0x3c3   : > { %v3032_v38 = vmul.f32 0.17677669, %v2982_v15  ;;  %v3164_v15 = vld [vmem:[%s5144_s16 + $0xe0] sm:$0xff]  ;;  %3193 = vmatpush.msra.mxu3 %v3165_v26  ;;  %v3129_v26 = vadd.f32 %v4820_v51, %v4816_v54 }
 0x3c5   : > { %3036 = vrot.lane.b32.xlu1 %v3032_v38, %s3940_s25  ;;  %3038 = vrot.lane.b32.xlu0 %v3031_v16, %s3940_s25 }
 0x3c6   : > { %3194 = vmatpush.msra.mxu3 %v3164_v15 }
 0x3c8   : > { %3195 = vmatpush.msra.mxu3 %v3163_v62 }
 0x3cd   : > { %3040 = vrot.lane.b32.xlu1 %v3033_v50, %s3940_s25 }
 0x42f   : > { %v3035_v55 = vpop.permute.xlu0 %3034 }
 0x437   : > { %v3037_v58 = vpop.permute.xlu1 %3036  ;;  %v3039_v11 = vpop.permute.xlu0 %3038 }
 0x438   : > { %v3047_v9 = vsel %vm3044_vm9, %v3039_v11, %v3035_v55  ;;  %v3045_v33 = vsel %vm3044_vm9, %v3035_v55, %v3039_v11  ;;  %v3162_v11 = vld [vmem:[%s5144_s16 + $0xd0] sm:$0xff] }
 0x439   : > { %v3049_v48 = vmax.f32 %v3030_v45, %v3047_v9  ;;  %v3050_v22 = vmax.f32 %v3031_v16, %v3045_v33  ;;  %v3145_v9 = vld [vmem:[%s5144_s16 + $0x48] sm:$0xff]  ;;  %3196 = vmatpush.msra.mxu3 %v3162_v11  ;;  %v3144_v33 = vld [vmem:[%s5144_s16 + $0x40] sm:$0xff] }
 0x43b   : > { %3053 = vrot.lane.b32.xlu2 %v3049_v48, %s3941_s12 }
 0x43f   : > { %v3041_v3 = vpop.permute.xlu1 %3040 }
 0x440   : > { %v3046_v60 = vsel %vm3044_vm9, %v3037_v58, %v3041_v3  ;;  %v3048_v57 = vsel %vm3044_vm9, %v3041_v3, %v3037_v58  ;;  %v3146_v58 = vld [vmem:[%s5144_s16 + $0x50] sm:$0xff]  ;;  %v3160_v3 = vld [vmem:[%s5144_s16 + $0xc0] sm:$0xff] }
 0x441   : > { %v3051_v37 = vmax.f32 %v3032_v38, %v3048_v57  ;;  %v3052_v53 = vmax.f32 %v3033_v50, %v3046_v60 }
 0x443   : > { %3059 = vrot.lane.b32.xlu1 %v3052_v53, %s3941_s12  ;;  %3055 = vrot.lane.b32.xlu0 %v3051_v37, %s3941_s12 }
 0x444   : > { %3057 = vrot.lane.b32.xlu2 %v3050_v22, %s3941_s12 }
 0x495   : > { %v3054_v20 = vpop.permute.xlu2 %3053 }
 0x49e   : > { %v3058_v30 = vpop.permute.xlu2 %3057 }
 0x49f   : > { %v3062_v42 = vsel %vm3061_vm6, %v3054_v20, %v3058_v30  ;;  %v3064_v23 = vsel %vm3061_vm6, %v3058_v30, %v3054_v20  ;;  %v3143_v30 = vld [vmem:[%s5144_s16 + $0x38] sm:$0xff] }
 0x4a0   : > { %v3066_v49 = vmax.f32 %v3049_v48, %v3064_v23  ;;  %v3067_v39 = vmax.f32 %v3050_v22, %v3062_v42  ;;  %v3161_v48 = vld [vmem:[%s5144_s16 + $0xc8] sm:$0xff]  ;;  %v3159_v42 = vld [vmem:[%s5144_s16 + $0xb8] sm:$0xff]  ;;  %v3142_v23 = vld [vmem:[%s5144_s16 + $0x30] sm:$0xff] }
 0x4a1   : > { %3197 = vmatpush.msra.mxu3 %v3161_v48 }
 0x4a2   : > { %v3070_v10 = vmax.f32 %v3066_v49, %v3067_v39  ;;  %v3158_v49 = vld [vmem:[%s5144_s16 + $0xb0] sm:$0xff]  ;;  %v3141_v39 = vld [vmem:[%s5144_s16 + $0x28] sm:$0xff] }
 0x4a3   : > { %3198 = vmatpush.msra.mxu3 %v3160_v3 }
 0x4a4   : > { %v3072_v46 = vsub.f32 %v3030_v45, %v3070_v10  ;;  %v3073_v41 = vsub.f32 %v3031_v16, %v3070_v10  ;;  %v3151_v45 = vld [vmem:[%s5144_s16 + $0x78] sm:$0xff]  ;;  %v3157_v10 = vld [vmem:[%s5144_s16 + $0xa8] sm:$0xff] }
 0x4a5   : > { %3168 = vmatpush.msrb.mxu2 %v3151_v45  ;;  %3199 = vmatpush.msra.mxu3 %v3159_v42 }
 0x4a6   : > { %v3076_v12 = vmul.f32 1.442695, %v3072_v46  ;;  %v3078_v25 = vmul.f32 1.442695, %v3073_v41  ;;  %v3140_v46 = vld [vmem:[%s5144_s16 + $0x20] sm:$0xff] }
 0x4a7   : > { %3169 = vmatpush.msrb.mxu2 %v3150_v52  ;;  %3200 = vmatpush.msra.mxu3 %v3158_v49  ;;  %v3156_v41 = vld [vmem:[%s5144_s16 + $0xa0] sm:$0xff]  ;;  %v3217_v52 = vld [vmem:[%s5145_s17 + $0x18] sm:$0xff] }
 0x4a8   : > { %3656 = vpow2.f32 %v3076_v12  ;;  %v3139_v12 = vld [vmem:[%s5144_s16 + $0x18] sm:$0xff]  ;;  %3240 = vmatpush.msrb.mxu0 %v3217_v52 }
 0x4a9   : > { %3658 = vpow2.f32 %v3078_v25  ;;  %3170 = vmatpush.msrb.mxu2 %v3149_v0  ;;  %3201 = vmatpush.msra.mxu3 %v3157_v10  ;;  %v3155_v25 = vld [vmem:[%s5144_s16 + $0x98] sm:$0xff] }
 0x4aa   : > { %3241 = vmatpush.msrb.mxu0 %v3216_v8 }
 0x4ab   : > { %3171 = vmatpush.msrb.mxu2 %v3148_v40  ;;  %3202 = vmatpush.msra.mxu3 %v3156_v41  ;;  %v3128_v40 = vadd.f32 %v4836_v17, %v4827_v35 }
 0x4ad   : > { %3203 = vmatpush.msra.mxu3 %v3155_v25 }
 0x4ae   : > { %v4884_v5 = vpop.eup %3656 }
 0x4af   : > { %v4886_v61 = vpop.eup %3658  ;;  %3084 = vrot.lane.b32.xlu2 %v4884_v5, %s3940_s25 }
 0x4b0   : > { %3088 = vrot.lane.b32.xlu0 %v4886_v61, %s3940_s25 }
 0x4b5   : > { %v3060_v24 = vpop.permute.xlu1 %3059  ;;  %v3056_v4 = vpop.permute.xlu0 %3055 }
 0x4b6   : > { %v3063_v14 = vsel %vm3061_vm6, %v3056_v4, %v3060_v24  ;;  %v3065_v56 = vsel %vm3061_vm6, %v3060_v24, %v3056_v4  ;;  %v3138_v24 = vld [vmem:[%s5144_s16 + $0x10] sm:$0xff] }
 0x4b7   : > { %v3068_v32 = vmax.f32 %v3051_v37, %v3065_v56  ;;  %v3069_v27 = vmax.f32 %v3052_v53, %v3063_v14  ;;  %v3154_v4 = vld [vmem:[%s5144_s16 + $0x90] sm:$0xff]  ;;  %v3137_v14 = vld [vmem:[%s5144_s16 + $0x8] sm:$0xff] }
 0x4b8   : > { %v3153_v56 = vld [vmem:[%s5144_s16 + $0x88] sm:$0xff]  ;;  %3204 = vmatpush.msra.mxu3 %v3154_v4 }
 0x4b9   : > { %v3071_v19 = vmax.f32 %v3068_v32, %v3069_v27  ;;  %v3136_v32 = vld [vmem:[%s5144_s16] sm:$0xff] }
 0x4ba   : > { %v3152_v27 = vld [vmem:[%s5144_s16 + $0x80] sm:$0xff]  ;;  %3205 = vmatpush.msra.mxu3 %v3153_v56 }
 0x4bb   : > { %v3074_v34 = vsub.f32 %v3032_v38, %v3071_v19  ;;  %v3075_v63 = vsub.f32 %v3033_v50, %v3071_v19  ;;  %v3147_v38 = vld [vmem:[%s5144_s16 + $0x58] sm:$0xff] }
 0x4bc   : > { %3172 = vmatpush.msrb.mxu2 %v3147_v38  ;;  %3206 = vmatpush.msra.mxu3 %v3152_v27 }
 0x4bd   : > { %v3080_v7 = vmul.f32 1.442695, %v3074_v34  ;;  %v3082_v29 = vmul.f32 1.442695, %v3075_v63 }
 0x4be   : > { %3173 = vmatpush.msrb.mxu2 %v3146_v58  ;;  %v3131_v58 = vadd.f32 %v4840_v18, %v4831_v47 }
 0x4bf   : > { %3660 = vpow2.f32 %v3080_v7 }
 0x4c0   : > { %3662 = vpow2.f32 %v3082_v29  ;;  %3174 = vmatpush.msrb.mxu2 %v3145_v9 }
 0x4c2   : > { %3175 = vmatpush.msrb.mxu2 %v3144_v33 }
 0x4c4   : > { %3176 = vmatpush.msrb.mxu2 %v3143_v30 }
 0x4c5   : > { %v4896_v43 = vpop.eup %3660 }
 0x4c6   : > { %v4898_v13 = vpop.eup %3662  ;;  %3086 = vrot.lane.b32.xlu1 %v4896_v43, %s3940_s25  ;;  %3177 = vmatpush.msrb.mxu2 %v3142_v23 }
 0x4c7   : > { %3090 = vrot.lane.b32.xlu2 %v4898_v13, %s3940_s25 }
 0x4c8   : > { %3178 = vmatpush.msrb.mxu2 %v3141_v39 }
 0x4ca   : > { %3179 = vmatpush.msrb.mxu2 %v3140_v46 }
 0x4cc   : > { %3180 = vmatpush.msrb.mxu2 %v3139_v12 }
 0x4ce   : > { %3181 = vmatpush.msrb.mxu2 %v3138_v24 }
 0x4d0   : > { %3182 = vmatpush.msrb.mxu2 %v3137_v14 }
 0x4d2   : > { %3183 = vmatpush.msrb.mxu2 %v3136_v32 }
 0x509   : > { %v3085_v16 = vpop.permute.xlu2 %3084 }
 0x521   : > { %v3091_v60 = vpop.permute.xlu2 %3090 }
 0x522   : > { %v3089_v36 = vpop.permute.xlu0 %3088 }
 0x523   : > { %v3092_v1 = vsel %vm3044_vm9, %v3085_v16, %v3089_v36  ;;  %v3094_v50 = vsel %vm3044_vm9, %v3089_v36, %v3085_v16 }
 0x524   : > { %v4939_v44 = vadd.f32 %v4884_v5, %v3094_v50  ;;  %v3097_v55 = vadd.f32 %v4886_v61, %v3092_v1 }
 0x526   : > { %3100 = vrot.lane.b32.xlu0 %v4939_v44, %s3941_s12  ;;  %3104 = vrot.lane.b32.xlu1 %v3097_v55, %s3941_s12 }
 0x538   : > { %v3087_v57 = vpop.permute.xlu1 %3086 }
 0x539   : > { %v3093_v37 = vsel %vm3044_vm9, %v3087_v57, %v3091_v60  ;;  %v3095_v53 = vsel %vm3044_vm9, %v3091_v60, %v3087_v57 }
 0x53a   : > { %v4968_v22 = vadd.f32 %v4896_v43, %v3095_v53  ;;  %v4971_v20 = vadd.f32 %v4898_v13, %v3093_v37 }
 0x53c   : > { %3102 = vrot.lane.b32.xlu2 %v4968_v22, %s3941_s12  ;;  %3106 = vrot.lane.b32.xlu0 %v4971_v20, %s3941_s12  ;;  %s3838_s12 = scalar_lea.hbm %s5196_s21, 64 }
 0x53d   : > { %p3840_p4 = scmp.lt.s32.totalorder %s3838_s12, %s3834_s23 }
 0x53f   : > { %p3841_p7 = por %p3840_p4, %p3839_p3 }
 0x541   : > { %p3842_p8 = pnand %p3841_p7, %p3837_p2 }
 0x596   : > { %v3103_v62 = vpop.permute.xlu2 %3102 }
 0x598   : > { %v3101_v19 = vpop.permute.xlu0 %3100  ;;  %v3105_v34 = vpop.permute.xlu1 %3104 }
 0x599   : > { %v3108_v63 = vsel %vm3061_vm6, %v3101_v19, %v3105_v34  ;;  %v3110_v7 = vsel %vm3061_vm6, %v3105_v34, %v3101_v19 }
 0x59a   : > { %v3112_v29 = vadd.f32 %v3110_v7, %v4939_v44  ;;  %v3113_v45 = vadd.f32 %v3108_v63, %v3097_v55  ;;  %v3130_v44 = vadd.f32 %v4851_v21, %v4846_v6  ;;  %v3214_v6 = vld [vmem:[%s5145_s17] sm:$0xff] }
 0x59c   : > { %v3116_v31 = vadd.f32 %v3113_v45, %v3112_v29 }
 0x59e   : > { %3664 = vrcp.f32 %v3116_v31 }
 0x5a4   : > { %v3665_v0 = vpop.eup %3664 }
 0x5a5   : > { %v3120_v15 = vmul.f32 %v3665_v0, %v4884_v5  ;;  %v3121_v16 = vmul.f32 %v3665_v0, %v4886_v61 }
 0x5a7   : > { %3124 = vst [vmem:[%s5046_s0] sm:$0xff] %v3120_v15  ;;  %v3132_v36 = vmul.f32 %v3128_v40, %v3120_v15  ;;  %v3133_v38 = vmul.f32 %v3129_v26, %v3121_v16 }
 0x5a8   : > { %3125 = vst [vmem:[%s5046_s0 + $0x8] sm:$0xff] %v3121_v16 }
 0x5a9   : > { %3184 = vmatmul.f32.vlgmr.msrb.gmra.mxu2 %v3132_v36  ;;  %3207 = vmatmul.f32.vlgmr.msra.gmra.mxu3 %v3133_v38 }
 0x5ae   : > { %v3107_v54 = vpop.permute.xlu0 %3106 }
 0x5af   : > { %v3109_v51 = vsel %vm3061_vm6, %v3103_v62, %v3107_v54  ;;  %v3111_v35 = vsel %vm3061_vm6, %v3107_v54, %v3103_v62 }
 0x5b0   : > { %v3114_v17 = vadd.f32 %v3111_v35, %v4968_v22  ;;  %v3115_v5 = vadd.f32 %v3109_v51, %v4971_v20 }
 0x5b2   : > { %v3117_v61 = vadd.f32 %v3115_v5, %v3114_v17 }
 0x5b4   : > { %3666 = vrcp.f32 %v3117_v61 }
 0x5ba   : > { %v3667_v1 = vpop.eup %3666 }
 0x5bb   : > { %v3122_v50 = vmul.f32 %v3667_v1, %v4896_v43  ;;  %v3123_v55 = vmul.f32 %v3667_v1, %v4898_v13  ;;  %v3215_v43 = vld [vmem:[%s5145_s17 + $0x8] sm:$0xff] }
 0x5bc   : > { %3242 = vmatpush.msrb.mxu0 %v3215_v43 }
 0x5bd   : > { %3126 = vst [vmem:[%s5046_s0 + $0x10] sm:$0xff] %v3122_v50  ;;  %v3134_v59 = vmul.f32 %v3130_v44, %v3122_v50  ;;  %v3135_v11 = vmul.f32 %v3131_v58, %v3123_v55 }
 0x5be   : > { %3127 = vst [vmem:[%s5046_s0 + $0x18] sm:$0xff] %v3123_v55  ;;  %3243 = vmatpush.msrb.mxu0 %v3214_v6 }
 0x5bf   : > { %3187 = vmatmul.f32.gmra.mxu2 %v3134_v59  ;;  %3210 = vmatmul.f32.gmra.mxu3 %v3135_v11 }
 0x62c   : > { %v3185_v47 = vpop.f32.mrf.mxu2  ;;  %v3208_v18 = vpop.f32.mrf.mxu3 }
 0x62d   : > { %v3209_v21 = vadd.f32 %v3208_v18, %v3185_v47 }
 0x62f   : > { %3531 = vmatmul.msk.f32.vlgmr.msrb.gmra.mxu0 %vm853_vm0, %v3209_v21 }
 0x642   : > { %v3188_v13 = vpop.f32.mrf.mxu2  ;;  %v3211_v9 = vpop.f32.mrf.mxu3 }
 0x643   : > { %v3212_v48 = vadd.f32 %v3211_v9, %v3188_v13 }
 0x645   : > { %3532 = vmatmul.msk.f32.gmra.mxu0 %vm853_vm0, %v3212_v48 }
 0x646   : > { %3845 = shalt.err (!%p3842_p8)
}
 0x647   : > { %s3942_s8 = smov 256   ;;  %s3943_s25 = smov 16  }
 0x648   : > { %3566 = dma.vmem_to_hbm [thread:$0]  (%p4089_p5), %s3292_s29, 512, %s3294_s19, %s3261_s20, %s3942_s8, %s3942_s8, %s3943_s25  }
 0x649   : > { %s5197_s5 = sld [smem:[#allocation33_spill]]  ;;  %s3477_s26 = sshll.u32 %s5031_s28, 4 }
 0x64a   : > { %s742_s1 = scalar_lea.vmem [#allocation11], %s3477_s26  ;;  %s3542_s23 = sshll.u32 %s4072_s2, 4 }
 0x64b   : > { %s5198_s0 = sld [smem:[#allocation34_spill]]  ;;  %s3273_s29 = sshll.u32 %s742_s1, 4  ;;  %s3274_s29 = int_to_ptr.vmem [resolvable:$true] %s3273_s29 }
 0x64f   : > { %v3655_v33 = vld [vmem:[%s5197_s5] ss:$0 sm:$0xff]  ;;  %s3256_s5 = scalar_lea.sflag [#allocation4], %s5031_s28 }
 0x651   : > { %s3272_s3 = scalar_lea.hbm %s5198_s0, %s3542_s23  ;;  %s3866_s27 = scalar_lea.hbm %s5198_s0, 32 }
 0x652   : > { %s3275_s19 = sshll.u32 %s3272_s3, 4  ;;  %s3276_s19 = int_to_ptr.hbm [resolvable:$true] %s3275_s19 }
 0x653   : > { %s3860_s20 = sshra.s32 %s3276_s19, 4  ;;  %s3861_s20 = int_to_ptr.hbm [resolvable:$true] %s3860_s20 }
 0x654   : > { %s3862_s8 = scalar_lea.hbm %s3861_s20, 16  ;;  %p3867_p12 = scmp.lt.s32.totalorder %s3861_s20, %s5198_s0 }
 0x655   : > { %p3863_p9 = scmp.ne.s32.totalorder %s3861_s20, %s3862_s8  ;;  %p3868_p13 = scmp.lt.s32.totalorder %s3866_s27, %s3862_s8 }
 0x657   : > { %p3864_p10 = pnand %p3863_p9, %p4089_p5  ;;  %p3869_p0 = por %p3868_p13, %p3867_p12 }
 0x659   : > { %p3865_p11 = pneg %p3864_p10 }
 0x65b   : > { %p3870_p1 = pnand %p3869_p0, %p3865_p11 }
 0x6ac   : > { %v3245_v3 = vpop.f32.mrf.mxu0 }
 0x6ad   : > { %v3246_v60 = vadd.f32 %v3655_v33, %v3245_v3 }
 0x6af   : > { %v3251_v57 = vadd.f32 %v3246_v60, %v4824_v28 }
 0x6b1   : > { %3253 = vst.msk [vmem:[%s742_s1] sm:$0xff] %vm853_vm0, %v3251_v57 }
 0x6c2   : > { %v3248_v37 = vpop.f32.mrf.mxu0 }
 0x6c3   : > { %v3249_v53 = vadd.f32 %v3655_v33, %v3248_v37 }
 0x6c5   : > { %v3252_v22 = vadd.f32 %v3249_v53, %v4843_v2 }
 0x6c7   : > { %3254 = vst.msk [vmem:[%s742_s1 + $0x8] sm:$0xff] %vm853_vm0, %v3252_v22 }
 0x6c8   : > { %3873 = shalt.err (!%p3870_p1)
}
 0x6c9   : > { %s3944_s28 = smov 128   ;;  %s3945_s1 = smov 8  }
 0x6ca   : > { %3565 = dma.vmem_to_hbm [thread:$0]  (%p4089_p5), %s3274_s29, 256, %s3276_s19, %s3256_s5, %s3944_s28, %s3944_s28, %s3945_s1  }
 0x6cb PF: > { %s5199_s23 = sld [smem:[#allocation21_spill]] }
 0x6cc   : > { %s5200_s24 = sld [smem:[#allocation19_spill]] }
 0x6d1   : > { %p3602_p2 = scmp.ge.s32.totalorder %s5199_s23, 2 }
 0x6d2   : > { %s3308_s3 = sand.u32 1, %s5200_s24  }
 0x6d3   : > { %p3586_p3 = pnand %p3602_p2, %p4093_p6  ;;  %s3309_s2 = scalar_lea.sflag [#allocation4], %s3308_s3 }
 0x6d5   : > { %p3587_p4 = pneg %p3586_p3 }
 0x6d7   : > { %3903 = dma.done.wait (%p3587_p4), %s3309_s2, 256  }
 0x6d8   : > { %3905 = vsyncadd (%p3587_p4), %s3309_s2, 4294967040  ;;  %s3319_s20 = scalar_lea.sflag [#allocation13], %s3308_s3 }
 0x6d9   : > { %3907 = dma.done.wait (%p3587_p4), %s3319_s20, 512  }
 0x6da   : > { %3909 = vsyncadd (%p3587_p4), %s3319_s20, 4294966784  ;;  %s5202_s24 = sld [smem:[#allocation22_spill]]  ;;  %s5205_s1 = smov %s3916_s22 }
 0x6db   : > { %s5203_s8 = sld [smem:[#allocation20_spill]] }
 0x6dc   : > { %s5204_s23 = sld [smem:[#allocation23_spill]] }
 0x6e0   : > { %p37_p5 = scmp.ge.s32.totalorder %s5202_s24, 4  }
 0x6e1   : > { %s5206_s22 = smov %s5203_s8 }
 0x6e2   :  { %39 = sbr.rel (!%p37_p5) target bundleno = 20 (0x14), region = 175 }
 0x6e7   :  { %3325 = vsyncpa [#allocation3], 1 }
 0x6e8   :  { %3327 = vsyncpa [#allocation3 + $0x1], 1 }
 0x6e9   :  { %3328 = vsyncpa [#allocation6], 1 }
 0x6ea   :  { %3329 = vsyncpa [#allocation9], 1 }
 0x6eb   :  { %3330 = vsyncpa [#allocation4], 1 }
 0x6ec   :  { %3332 = vsyncpa [#allocation4 + $0x1], 1 }
 0x6ed   :  { %3333 = vsyncpa [#allocation13], 1 }
 0x6ee   :  { %3335 = vsyncpa [#allocation13 + $0x1], 1 }

</bundles_post_ra>
